<compile_context>
chip_gen: v5e
topology: v5e:2x2
jax: 0.10.0
libtpu: 0.0.40
codegen_flags: <defaults>
</compile_context>

<pallas_src>
import math

import jax
import jax.numpy as jnp
from jax.experimental import pallas as pl
from jax.experimental.pallas import tpu as pltpu


# ---------------------------------------------------------------------------
# Pallas kernels
# ---------------------------------------------------------------------------
def conv_relu_pool_kernel(p_ref, w_ref, b_ref, o_ref):
    """Fused 3x3 conv (im2col matmul) + bias + ReLU + 2x2 max-pool.

    p_ref: (4, tm, K) bf16  -- K = 9*Cin patches; axis 0 = 4 pool-window taps.
    w_ref: (K, Cout)  bf16  -- rows are (kh*3+kw)*Cin + ci.
    b_ref: (1, Cout)  f32
    o_ref: (tm, Cout) f32   -- pooled rows, m = b*Hh*Wh + r*Wh + j.
    """
    w = w_ref[...]
    b = b_ref[...]

    def tap(i):
        acc = jnp.dot(p_ref[i], w, preferred_element_type=jnp.float32)
        return jnp.maximum(acc + b, 0.0)

    pooled = jnp.maximum(jnp.maximum(tap(0), tap(1)),
                         jnp.maximum(tap(2), tap(3)))
    o_ref[...] = pooled.astype(o_ref.dtype)


def fc_head_kernel(twist_ref, x_ref,
                   wt1_ref, bt1_ref, wt2_ref, bt2_ref,
                   w1y_ref, w1x_ref, b1_ref,
                   w2_ref, b2_ref, w3_ref, b3_ref,
                   o_ref):
    """Whole FC stack in one kernel: twist MLP, concat-as-two-matmuls, head."""
    f32, bf16 = jnp.float32, jnp.bfloat16
    twist = twist_ref[...]                       # (B, 1) f32
    x = x_ref[...].astype(bf16)                  # (B, 512)

    # twist MLP: 1 -> 256 -> 128 (K == 1 contraction == broadcast multiply)
    y = jnp.maximum(twist * wt1_ref[...].astype(f32) + bt1_ref[...], 0.0)
    y = jnp.dot(y.astype(bf16), wt2_ref[...], preferred_element_type=f32)
    y = jnp.maximum(y + bt2_ref[...], 0.0)

    # concat([y, x], 1) @ W1  ==  y @ W1[:128] + x @ W1[128:]
    z = jnp.dot(y.astype(bf16), w1y_ref[...], preferred_element_type=f32)
    z = z + jnp.dot(x, w1x_ref[...], preferred_element_type=f32)
    z = jnp.maximum(z + b1_ref[...], 0.0)

    z = jnp.dot(z.astype(bf16), w2_ref[...], preferred_element_type=f32)
    z = jnp.maximum(z + b2_ref[...], 0.0)

    z = jnp.dot(z.astype(bf16), w3_ref[...], preferred_element_type=f32)
    o_ref[...] = (z + b3_ref[...]).astype(o_ref.dtype)


# ---------------------------------------------------------------------------
# Wrappers
# ---------------------------------------------------------------------------
def pool_tap_patches(x):
    """x: (B,H,W,C) f32 -> (4, B*Hh*Wh, 9*C) bf16.

    Axis 0 enumerates the 4 pixels of each 2x2 pooling window so the fused
    conv kernel can finish the pool with a pure elementwise max.
    """
    B, H, W, C = x.shape
    Hh, Wh = H // 2, W // 2
    xp = jnp.pad(x, ((0, 0), (1, 1), (1, 1), (0, 0)))
    taps = [xp[:, kh:kh + H, kw:kw + W, :] for kh in range(3) for kw in range(3)]
    pat = jnp.stack(taps, axis=3)                       # (B, H, W, 9, C)
    pat = pat.reshape(B, Hh, 2, Wh, 2, 9 * C)
    pat = pat.transpose(2, 4, 0, 1, 3, 5)               # (2, 2, B, Hh, Wh, 9C)
    return pat.reshape(4, B * Hh * Wh, 9 * C).astype(jnp.bfloat16)


def conv_relu_pool(x, w, b):
    """x: (B,H,W,Cin) -> (B,H//2,W//2,Cout); one fused pallas_call."""
    B, H, W, _ = x.shape
    K, Cout = w.shape
    Hh, Wh = H // 2, W // 2
    M = B * Hh * Wh
    patches = pool_tap_patches(x)
    # Full-M tile (working sets are tiny); split the biggest layer two ways so
    # v7x's two TensorCores can share it (harmless single extra step elsewhere).
    n_tiles = 2 if M >= 2048 else 1
    tm = M // n_tiles
    out = pl.pallas_call(
        conv_relu_pool_kernel,
        out_shape=jax.ShapeDtypeStruct((M, Cout), jnp.float32),
        grid=(n_tiles,),
        in_specs=[
            pl.BlockSpec((4, tm, K), lambda i: (0, i, 0)),
            pl.BlockSpec((K, Cout), lambda i: (0, 0)),
            pl.BlockSpec((1, Cout), lambda i: (0, 0)),
        ],
        out_specs=pl.BlockSpec((tm, Cout), lambda i: (i, 0)),
        compiler_params=pltpu.CompilerParams(
            dimension_semantics=("parallel",)),
    )(patches, w, b)
    return out.reshape(B, Hh, Wh, Cout)


def fc_head(twist, x_flat, fc):
    """Single pallas_call for the twist MLP + concat + head (all VMEM-resident)."""
    B = twist.shape[0]
    vmem = pl.BlockSpec(memory_space=pltpu.MemorySpace.VMEM)
    args = (twist, x_flat, fc["wt1"], fc["bt1"], fc["wt2"], fc["bt2"],
            fc["w1y"], fc["w1x"], fc["b1"], fc["w2"], fc["b2"],
            fc["w3"], fc["b3"])
    return pl.pallas_call(
        fc_head_kernel,
        out_shape=jax.ShapeDtypeStruct((B, 1), jnp.float32),
        in_specs=[vmem] * len(args),
        out_specs=vmem,
    )(*args)


# ---------------------------------------------------------------------------
# Parameters: synthetic PyTorch-layout params -> kernel layout (bf16 weights)
# ---------------------------------------------------------------------------
def init_torch_params(key):
    """PyTorch layout: Conv2d (Cout,Cin,3,3); Linear (out,in); default-style init."""
    def uniform(k, shape, fan_in):
        bound = 1.0 / math.sqrt(fan_in)
        return jax.random.uniform(k, shape, jnp.float32, -bound, bound)

    keys = iter(jax.random.split(key, 32))
    convs = []
    for ci, co in [(1, 16), (16, 32), (32, 64), (64, 128)]:
        fan = ci * 9
        convs.append((uniform(next(keys), (co, ci, 3, 3), fan),
                      uniform(next(keys), (co,), fan)))

    def lin(ins, outs):
        return (uniform(next(keys), (outs, ins), ins),
                uniform(next(keys), (outs,), ins))

    return {"conv": convs,
            "lin1": [lin(1, 256), lin(256, 128)],
            "lin2": [lin(640, 256), lin(256, 128), lin(128, 1)]}


def prepare_params(tp):
    """Convert PyTorch-layout params into the layouts the kernels consume."""
    bf16, f32 = jnp.bfloat16, jnp.float32
    conv = []
    for w, b in tp["conv"]:
        co, ci = w.shape[0], w.shape[1]
        # (Cout,Cin,3,3) -> (kh,kw,Cin,Cout) -> (9*Cin, Cout), tap-major rows
        wk = jnp.transpose(w, (2, 3, 1, 0)).reshape(9 * ci, co).astype(bf16)
        conv.append((wk, b.reshape(1, co).astype(f32)))

    (wt1, bt1), (wt2, bt2) = tp["lin1"]
    (w1, b1), (w2, b2), (w3, b3) = tp["lin2"]
    w1t = jnp.transpose(w1)                      # (640, 256): rows = [y(128), x_nchw(512)]
    w1y = w1t[:128]
    # Rows 128.. are ordered for PyTorch's NCHW flatten (c*4 + h*2 + w).  The
    # conv trunk hands the head an NHWC flatten (h*256 + w*128 + c), so permute
    # the weight rows once here instead of transposing the activation at runtime.
    w1x = (w1t[128:].reshape(128, 2, 2, 256)
                    .transpose(1, 2, 0, 3)
                    .reshape(512, 256))
    fc = {
        "wt1": jnp.transpose(wt1).astype(bf16),  # (1, 256)
        "bt1": bt1.reshape(1, 256).astype(f32),
        "wt2": jnp.transpose(wt2).astype(bf16),  # (256, 128)
        "bt2": bt2.reshape(1, 128).astype(f32),
        "w1y": w1y.astype(bf16),                 # (128, 256)
        "w1x": w1x.astype(bf16),                 # (512, 256)
        "b1": b1.reshape(1, 256).astype(f32),
        "w2": jnp.transpose(w2).astype(bf16),    # (256, 128)
        "b2": b2.reshape(1, 128).astype(f32),
        "w3": jnp.transpose(w3).astype(bf16),    # (128, 1)
        "b3": b3.reshape(1, 1).astype(f32),
    }
    return {"conv": conv, "fc": fc}


# ---------------------------------------------------------------------------
# Forward pass (mirrors NetCV_Conv.forward)
# ---------------------------------------------------------------------------
def netcv_forward(params, img_nchw, twist):
    x = jnp.transpose(img_nchw, (0, 2, 3, 1))    # NCHW -> NHWC (C==1: free)
    for w, b in params["conv"]:
        x = conv_relu_pool(x, w, b)              # fused conv+ReLU+pool kernels
    B = x.shape[0]
    x_flat = x.reshape(B, -1)                    # NHWC flatten (contiguous);
                                                 # head weights pre-permuted to match NCHW view()
    return fc_head(twist, x_flat, params["fc"])  # single fused FC kernel


if __name__ == "__main__":
    key = jax.random.PRNGKey(0)
    kp, ki, kt = jax.random.split(key, 3)
    params = prepare_params(init_torch_params(kp))
    # 32x32 single-channel image => 128 * 2 * 2 = 512 features (matches in_size)
    img = jax.random.normal(ki, (2, 1, 32, 32), jnp.float32)
    twist = jax.random.normal(kt, (2, 1), jnp.float32)

    out = jax.jit(netcv_forward)(params, img, twist)
    out = jax.block_until_ready(out)
    assert out.shape == (2, 1) and out.dtype == jnp.float32
    print("KERNEL_OK")
</pallas_src>

<mosaic_0001>
module attributes {stable_mosaic.version = 11 : i64} {
  func.func @conv_relu_pool_kernel(%arg0: i32, %arg1: memref<4x512x9xbf16, #tpu.memory_space<vmem>>, %arg2: memref<9x16xbf16, #tpu.memory_space<vmem>>, %arg3: memref<1x16xf32, #tpu.memory_space<vmem>>, %arg4: memref<512x16xf32, #tpu.memory_space<vmem>>) attributes {dimension_semantics = [#tpu.dimension_semantics<parallel>], iteration_bounds = array<i64: 1>, scalar_prefetch = 0 : i64, scratch_operands = 0 : i64, tpu.core_type = #tpu.core_type<tc>, window_params = [{transform_indices = @transform_0, window_bounds = array<i64: 4, 512, 9>}, {pipeline_mode = #tpu.pipeline_mode<synchronous>, transform_indices = @transform_1, window_bounds = array<i64: 9, 16>}, {pipeline_mode = #tpu.pipeline_mode<synchronous>, transform_indices = @transform_2, window_bounds = array<i64: 1, 16>}, {transform_indices = @transform_3, window_bounds = array<i64: 512, 16>}]} {
    %c0 = arith.constant 0 : index
    %c0_0 = arith.constant 0 : index
    %0 = vector.load %arg2[%c0, %c0_0] : memref<9x16xbf16, #tpu.memory_space<vmem>>, vector<9x16xbf16>
    %c0_1 = arith.constant 0 : index
    %c0_2 = arith.constant 0 : index
    %1 = vector.load %arg3[%c0_1, %c0_2] : memref<1x16xf32, #tpu.memory_space<vmem>>, vector<1x16xf32>
    %c0_3 = arith.constant 0 : index
    %c0_4 = arith.constant 0 : index
    %c0_5 = arith.constant 0 : index
    %2 = vector.load %arg1[%c0_3, %c0_4, %c0_5] : memref<4x512x9xbf16, #tpu.memory_space<vmem>>, vector<1x512x9xbf16>
    %3 = vector.shape_cast %2 : vector<1x512x9xbf16> to vector<512x9xbf16>
    %cst = arith.constant dense<0.000000e+00> : vector<512x16xf32>
    %4 = tpu.matmul %3, %0, %cst {dimension_numbers = #tpu.dot_dimension_numbers<[1], [0], [0], [1], [0, 0, 1, 1], [], []>} : vector<512x9xbf16>, vector<9x16xbf16>, vector<512x16xf32> -> vector<512x16xf32>
    %5 = vector.broadcast %1 : vector<1x16xf32> to vector<512x16xf32>
    %6 = arith.addf %4, %5 : vector<512x16xf32>
    %cst_6 = arith.constant 0.000000e+00 : f32
    %7 = vector.broadcast %cst_6 : f32 to vector<512x16xf32>
    %8 = arith.maximumf %6, %7 : vector<512x16xf32>
    %c1 = arith.constant 1 : index
    %c0_7 = arith.constant 0 : index
    %c0_8 = arith.constant 0 : index
    %9 = vector.load %arg1[%c1, %c0_7, %c0_8] : memref<4x512x9xbf16, #tpu.memory_space<vmem>>, vector<1x512x9xbf16>
    %10 = vector.shape_cast %9 : vector<1x512x9xbf16> to vector<512x9xbf16>
    %cst_9 = arith.constant dense<0.000000e+00> : vector<512x16xf32>
    %11 = tpu.matmul %10, %0, %cst_9 {dimension_numbers = #tpu.dot_dimension_numbers<[1], [0], [0], [1], [0, 0, 1, 1], [], []>} : vector<512x9xbf16>, vector<9x16xbf16>, vector<512x16xf32> -> vector<512x16xf32>
    %12 = vector.broadcast %1 : vector<1x16xf32> to vector<512x16xf32>
    %13 = arith.addf %11, %12 : vector<512x16xf32>
    %cst_10 = arith.constant 0.000000e+00 : f32
    %14 = vector.broadcast %cst_10 : f32 to vector<512x16xf32>
    %15 = arith.maximumf %13, %14 : vector<512x16xf32>
    %16 = arith.maximumf %8, %15 : vector<512x16xf32>
    %c2 = arith.constant 2 : index
    %c0_11 = arith.constant 0 : index
    %c0_12 = arith.constant 0 : index
    %17 = vector.load %arg1[%c2, %c0_11, %c0_12] : memref<4x512x9xbf16, #tpu.memory_space<vmem>>, vector<1x512x9xbf16>
    %18 = vector.shape_cast %17 : vector<1x512x9xbf16> to vector<512x9xbf16>
    %cst_13 = arith.constant dense<0.000000e+00> : vector<512x16xf32>
    %19 = tpu.matmul %18, %0, %cst_13 {dimension_numbers = #tpu.dot_dimension_numbers<[1], [0], [0], [1], [0, 0, 1, 1], [], []>} : vector<512x9xbf16>, vector<9x16xbf16>, vector<512x16xf32> -> vector<512x16xf32>
    %20 = vector.broadcast %1 : vector<1x16xf32> to vector<512x16xf32>
    %21 = arith.addf %19, %20 : vector<512x16xf32>
    %cst_14 = arith.constant 0.000000e+00 : f32
    %22 = vector.broadcast %cst_14 : f32 to vector<512x16xf32>
    %23 = arith.maximumf %21, %22 : vector<512x16xf32>
    %c3 = arith.constant 3 : index
    %c0_15 = arith.constant 0 : index
    %c0_16 = arith.constant 0 : index
    %24 = vector.load %arg1[%c3, %c0_15, %c0_16] : memref<4x512x9xbf16, #tpu.memory_space<vmem>>, vector<1x512x9xbf16>
    %25 = vector.shape_cast %24 : vector<1x512x9xbf16> to vector<512x9xbf16>
    %cst_17 = arith.constant dense<0.000000e+00> : vector<512x16xf32>
    %26 = tpu.matmul %25, %0, %cst_17 {dimension_numbers = #tpu.dot_dimension_numbers<[1], [0], [0], [1], [0, 0, 1, 1], [], []>} : vector<512x9xbf16>, vector<9x16xbf16>, vector<512x16xf32> -> vector<512x16xf32>
    %27 = vector.broadcast %1 : vector<1x16xf32> to vector<512x16xf32>
    %28 = arith.addf %26, %27 : vector<512x16xf32>
    %cst_18 = arith.constant 0.000000e+00 : f32
    %29 = vector.broadcast %cst_18 : f32 to vector<512x16xf32>
    %30 = arith.maximumf %28, %29 : vector<512x16xf32>
    %31 = arith.maximumf %23, %30 : vector<512x16xf32>
    %32 = arith.maximumf %16, %31 : vector<512x16xf32>
    %c0_19 = arith.constant 0 : index
    %c0_20 = arith.constant 0 : index
    %33 = vector.load %arg4[%c0_19, %c0_20] : memref<512x16xf32, #tpu.memory_space<vmem>>, vector<512x16xf32>
    tpu.vector_store %arg4[%c0_19, %c0_20], %32 {strides = array<i32>} : memref<512x16xf32, #tpu.memory_space<vmem>>, vector<512x16xf32>,
    return
  }
  func.func @transform_0(%arg0: i32) -> (i32, i32, i32) {
    %c0_i32 = arith.constant 0 : i32
    %c0_i32_0 = arith.constant 0 : i32
    %c0_i32_1 = arith.constant 0 : i32
    return %c0_i32, %arg0, %c0_i32_0 : i32, i32, i32
  }
  func.func @transform_1(%arg0: i32) -> (i32, i32) {
    %c0_i32 = arith.constant 0 : i32
    %c0_i32_0 = arith.constant 0 : i32
    %c0_i32_1 = arith.constant 0 : i32
    return %c0_i32, %c0_i32_0 : i32, i32
  }
  func.func @transform_2(%arg0: i32) -> (i32, i32) {
    %c0_i32 = arith.constant 0 : i32
    %c0_i32_0 = arith.constant 0 : i32
    %c0_i32_1 = arith.constant 0 : i32
    return %c0_i32, %c0_i32_0 : i32, i32
  }
  func.func @transform_3(%arg0: i32) -> (i32, i32) {
    %c0_i32 = arith.constant 0 : i32
    %c0_i32_0 = arith.constant 0 : i32
    return %arg0, %c0_i32 : i32, i32
  }
}

module attributes {stable_mosaic.version = 11 : i64} {
  func.func @conv_relu_pool_kernel(%arg0: i32, %arg1: memref<4x128x144xbf16, #tpu.memory_space<vmem>>, %arg2: memref<144x32xbf16, #tpu.memory_space<vmem>>, %arg3: memref<1x32xf32, #tpu.memory_space<vmem>>, %arg4: memref<128x32xf32, #tpu.memory_space<vmem>>) attributes {dimension_semantics = [#tpu.dimension_semantics<parallel>], iteration_bounds = array<i64: 1>, scalar_prefetch = 0 : i64, scratch_operands = 0 : i64, tpu.core_type = #tpu.core_type<tc>, window_params = [{transform_indices = @transform_0, window_bounds = array<i64: 4, 128, 144>}, {pipeline_mode = #tpu.pipeline_mode<synchronous>, transform_indices = @transform_1, window_bounds = array<i64: 144, 32>}, {pipeline_mode = #tpu.pipeline_mode<synchronous>, transform_indices = @transform_2, window_bounds = array<i64: 1, 32>}, {transform_indices = @transform_3, window_bounds = array<i64: 128, 32>}]} {
    %c0 = arith.constant 0 : index
    %c0_0 = arith.constant 0 : index
    %0 = vector.load %arg2[%c0, %c0_0] : memref<144x32xbf16, #tpu.memory_space<vmem>>, vector<144x32xbf16>
    %c0_1 = arith.constant 0 : index
    %c0_2 = arith.constant 0 : index
    %1 = vector.load %arg3[%c0_1, %c0_2] : memref<1x32xf32, #tpu.memory_space<vmem>>, vector<1x32xf32>
    %c0_3 = arith.constant 0 : index
    %c0_4 = arith.constant 0 : index
    %c0_5 = arith.constant 0 : index
    %2 = vector.load %arg1[%c0_3, %c0_4, %c0_5] : memref<4x128x144xbf16, #tpu.memory_space<vmem>>, vector<1x128x144xbf16>
    %3 = vector.shape_cast %2 : vector<1x128x144xbf16> to vector<128x144xbf16>
    %cst = arith.constant dense<0.000000e+00> : vector<128x32xf32>
    %4 = tpu.matmul %3, %0, %cst {dimension_numbers = #tpu.dot_dimension_numbers<[1], [0], [0], [1], [0, 0, 1, 1], [], []>} : vector<128x144xbf16>, vector<144x32xbf16>, vector<128x32xf32> -> vector<128x32xf32>
    %5 = vector.broadcast %1 : vector<1x32xf32> to vector<128x32xf32>
    %6 = arith.addf %4, %5 : vector<128x32xf32>
    %cst_6 = arith.constant 0.000000e+00 : f32
    %7 = vector.broadcast %cst_6 : f32 to vector<128x32xf32>
    %8 = arith.maximumf %6, %7 : vector<128x32xf32>
    %c1 = arith.constant 1 : index
    %c0_7 = arith.constant 0 : index
    %c0_8 = arith.constant 0 : index
    %9 = vector.load %arg1[%c1, %c0_7, %c0_8] : memref<4x128x144xbf16, #tpu.memory_space<vmem>>, vector<1x128x144xbf16>
    %10 = vector.shape_cast %9 : vector<1x128x144xbf16> to vector<128x144xbf16>
    %cst_9 = arith.constant dense<0.000000e+00> : vector<128x32xf32>
    %11 = tpu.matmul %10, %0, %cst_9 {dimension_numbers = #tpu.dot_dimension_numbers<[1], [0], [0], [1], [0, 0, 1, 1], [], []>} : vector<128x144xbf16>, vector<144x32xbf16>, vector<128x32xf32> -> vector<128x32xf32>
    %12 = vector.broadcast %1 : vector<1x32xf32> to vector<128x32xf32>
    %13 = arith.addf %11, %12 : vector<128x32xf32>
    %cst_10 = arith.constant 0.000000e+00 : f32
    %14 = vector.broadcast %cst_10 : f32 to vector<128x32xf32>
    %15 = arith.maximumf %13, %14 : vector<128x32xf32>
    %16 = arith.maximumf %8, %15 : vector<128x32xf32>
    %c2 = arith.constant 2 : index
    %c0_11 = arith.constant 0 : index
    %c0_12 = arith.constant 0 : index
    %17 = vector.load %arg1[%c2, %c0_11, %c0_12] : memref<4x128x144xbf16, #tpu.memory_space<vmem>>, vector<1x128x144xbf16>
    %18 = vector.shape_cast %17 : vector<1x128x144xbf16> to vector<128x144xbf16>
    %cst_13 = arith.constant dense<0.000000e+00> : vector<128x32xf32>
    %19 = tpu.matmul %18, %0, %cst_13 {dimension_numbers = #tpu.dot_dimension_numbers<[1], [0], [0], [1], [0, 0, 1, 1], [], []>} : vector<128x144xbf16>, vector<144x32xbf16>, vector<128x32xf32> -> vector<128x32xf32>
    %20 = vector.broadcast %1 : vector<1x32xf32> to vector<128x32xf32>
    %21 = arith.addf %19, %20 : vector<128x32xf32>
    %cst_14 = arith.constant 0.000000e+00 : f32
    %22 = vector.broadcast %cst_14 : f32 to vector<128x32xf32>
    %23 = arith.maximumf %21, %22 : vector<128x32xf32>
    %c3 = arith.constant 3 : index
    %c0_15 = arith.constant 0 : index
    %c0_16 = arith.constant 0 : index
    %24 = vector.load %arg1[%c3, %c0_15, %c0_16] : memref<4x128x144xbf16, #tpu.memory_space<vmem>>, vector<1x128x144xbf16>
    %25 = vector.shape_cast %24 : vector<1x128x144xbf16> to vector<128x144xbf16>
    %cst_17 = arith.constant dense<0.000000e+00> : vector<128x32xf32>
    %26 = tpu.matmul %25, %0, %cst_17 {dimension_numbers = #tpu.dot_dimension_numbers<[1], [0], [0], [1], [0, 0, 1, 1], [], []>} : vector<128x144xbf16>, vector<144x32xbf16>, vector<128x32xf32> -> vector<128x32xf32>
    %27 = vector.broadcast %1 : vector<1x32xf32> to vector<128x32xf32>
    %28 = arith.addf %26, %27 : vector<128x32xf32>
    %cst_18 = arith.constant 0.000000e+00 : f32
    %29 = vector.broadcast %cst_18 : f32 to vector<128x32xf32>
    %30 = arith.maximumf %28, %29 : vector<128x32xf32>
    %31 = arith.maximumf %23, %30 : vector<128x32xf32>
    %32 = arith.maximumf %16, %31 : vector<128x32xf32>
    %c0_19 = arith.constant 0 : index
    %c0_20 = arith.constant 0 : index
    %33 = vector.load %arg4[%c0_19, %c0_20] : memref<128x32xf32, #tpu.memory_space<vmem>>, vector<128x32xf32>
    tpu.vector_store %arg4[%c0_19, %c0_20], %32 {strides = array<i32>} : memref<128x32xf32, #tpu.memory_space<vmem>>, vector<128x32xf32>,
    return
  }
  func.func @transform_0(%arg0: i32) -> (i32, i32, i32) {
    %c0_i32 = arith.constant 0 : i32
    %c0_i32_0 = arith.constant 0 : i32
    %c0_i32_1 = arith.constant 0 : i32
    return %c0_i32, %arg0, %c0_i32_0 : i32, i32, i32
  }
  func.func @transform_1(%arg0: i32) -> (i32, i32) {
    %c0_i32 = arith.constant 0 : i32
    %c0_i32_0 = arith.constant 0 : i32
    %c0_i32_1 = arith.constant 0 : i32
    return %c0_i32, %c0_i32_0 : i32, i32
  }
  func.func @transform_2(%arg0: i32) -> (i32, i32) {
    %c0_i32 = arith.constant 0 : i32
    %c0_i32_0 = arith.constant 0 : i32
    %c0_i32_1 = arith.constant 0 : i32
    return %c0_i32, %c0_i32_0 : i32, i32
  }
  func.func @transform_3(%arg0: i32) -> (i32, i32) {
    %c0_i32 = arith.constant 0 : i32
    %c0_i32_0 = arith.constant 0 : i32
    return %arg0, %c0_i32 : i32, i32
  }
}

module attributes {stable_mosaic.version = 11 : i64} {
  func.func @conv_relu_pool_kernel(%arg0: i32, %arg1: memref<4x32x288xbf16, #tpu.memory_space<vmem>>, %arg2: memref<288x64xbf16, #tpu.memory_space<vmem>>, %arg3: memref<1x64xf32, #tpu.memory_space<vmem>>, %arg4: memref<32x64xf32, #tpu.memory_space<vmem>>) attributes {dimension_semantics = [#tpu.dimension_semantics<parallel>], iteration_bounds = array<i64: 1>, scalar_prefetch = 0 : i64, scratch_operands = 0 : i64, tpu.core_type = #tpu.core_type<tc>, window_params = [{transform_indices = @transform_0, window_bounds = array<i64: 4, 32, 288>}, {pipeline_mode = #tpu.pipeline_mode<synchronous>, transform_indices = @transform_1, window_bounds = array<i64: 288, 64>}, {pipeline_mode = #tpu.pipeline_mode<synchronous>, transform_indices = @transform_2, window_bounds = array<i64: 1, 64>}, {transform_indices = @transform_3, window_bounds = array<i64: 32, 64>}]} {
    %c0 = arith.constant 0 : index
    %c0_0 = arith.constant 0 : index
    %0 = vector.load %arg2[%c0, %c0_0] : memref<288x64xbf16, #tpu.memory_space<vmem>>, vector<288x64xbf16>
    %c0_1 = arith.constant 0 : index
    %c0_2 = arith.constant 0 : index
    %1 = vector.load %arg3[%c0_1, %c0_2] : memref<1x64xf32, #tpu.memory_space<vmem>>, vector<1x64xf32>
    %c0_3 = arith.constant 0 : index
    %c0_4 = arith.constant 0 : index
    %c0_5 = arith.constant 0 : index
    %2 = vector.load %arg1[%c0_3, %c0_4, %c0_5] : memref<4x32x288xbf16, #tpu.memory_space<vmem>>, vector<1x32x288xbf16>
    %3 = vector.shape_cast %2 : vector<1x32x288xbf16> to vector<32x288xbf16>
    %cst = arith.constant dense<0.000000e+00> : vector<32x64xf32>
    %4 = tpu.matmul %3, %0, %cst {dimension_numbers = #tpu.dot_dimension_numbers<[1], [0], [0], [1], [0, 0, 1, 1], [], []>} : vector<32x288xbf16>, vector<288x64xbf16>, vector<32x64xf32> -> vector<32x64xf32>
    %5 = vector.broadcast %1 : vector<1x64xf32> to vector<32x64xf32>
    %6 = arith.addf %4, %5 : vector<32x64xf32>
    %cst_6 = arith.constant 0.000000e+00 : f32
    %7 = vector.broadcast %cst_6 : f32 to vector<32x64xf32>
    %8 = arith.maximumf %6, %7 : vector<32x64xf32>
    %c1 = arith.constant 1 : index
    %c0_7 = arith.constant 0 : index
    %c0_8 = arith.constant 0 : index
    %9 = vector.load %arg1[%c1, %c0_7, %c0_8] : memref<4x32x288xbf16, #tpu.memory_space<vmem>>, vector<1x32x288xbf16>
    %10 = vector.shape_cast %9 : vector<1x32x288xbf16> to vector<32x288xbf16>
    %cst_9 = arith.constant dense<0.000000e+00> : vector<32x64xf32>
    %11 = tpu.matmul %10, %0, %cst_9 {dimension_numbers = #tpu.dot_dimension_numbers<[1], [0], [0], [1], [0, 0, 1, 1], [], []>} : vector<32x288xbf16>, vector<288x64xbf16>, vector<32x64xf32> -> vector<32x64xf32>
    %12 = vector.broadcast %1 : vector<1x64xf32> to vector<32x64xf32>
    %13 = arith.addf %11, %12 : vector<32x64xf32>
    %cst_10 = arith.constant 0.000000e+00 : f32
    %14 = vector.broadcast %cst_10 : f32 to vector<32x64xf32>
    %15 = arith.maximumf %13, %14 : vector<32x64xf32>
    %16 = arith.maximumf %8, %15 : vector<32x64xf32>
    %c2 = arith.constant 2 : index
    %c0_11 = arith.constant 0 : index
    %c0_12 = arith.constant 0 : index
    %17 = vector.load %arg1[%c2, %c0_11, %c0_12] : memref<4x32x288xbf16, #tpu.memory_space<vmem>>, vector<1x32x288xbf16>
    %18 = vector.shape_cast %17 : vector<1x32x288xbf16> to vector<32x288xbf16>
    %cst_13 = arith.constant dense<0.000000e+00> : vector<32x64xf32>
    %19 = tpu.matmul %18, %0, %cst_13 {dimension_numbers = #tpu.dot_dimension_numbers<[1], [0], [0], [1], [0, 0, 1, 1], [], []>} : vector<32x288xbf16>, vector<288x64xbf16>, vector<32x64xf32> -> vector<32x64xf32>
    %20 = vector.broadcast %1 : vector<1x64xf32> to vector<32x64xf32>
    %21 = arith.addf %19, %20 : vector<32x64xf32>
    %cst_14 = arith.constant 0.000000e+00 : f32
    %22 = vector.broadcast %cst_14 : f32 to vector<32x64xf32>
    %23 = arith.maximumf %21, %22 : vector<32x64xf32>
    %c3 = arith.constant 3 : index
    %c0_15 = arith.constant 0 : index
    %c0_16 = arith.constant 0 : index
    %24 = vector.load %arg1[%c3, %c0_15, %c0_16] : memref<4x32x288xbf16, #tpu.memory_space<vmem>>, vector<1x32x288xbf16>
    %25 = vector.shape_cast %24 : vector<1x32x288xbf16> to vector<32x288xbf16>
    %cst_17 = arith.constant dense<0.000000e+00> : vector<32x64xf32>
    %26 = tpu.matmul %25, %0, %cst_17 {dimension_numbers = #tpu.dot_dimension_numbers<[1], [0], [0], [1], [0, 0, 1, 1], [], []>} : vector<32x288xbf16>, vector<288x64xbf16>, vector<32x64xf32> -> vector<32x64xf32>
    %27 = vector.broadcast %1 : vector<1x64xf32> to vector<32x64xf32>
    %28 = arith.addf %26, %27 : vector<32x64xf32>
    %cst_18 = arith.constant 0.000000e+00 : f32
    %29 = vector.broadcast %cst_18 : f32 to vector<32x64xf32>
    %30 = arith.maximumf %28, %29 : vector<32x64xf32>
    %31 = arith.maximumf %23, %30 : vector<32x64xf32>
    %32 = arith.maximumf %16, %31 : vector<32x64xf32>
    %c0_19 = arith.constant 0 : index
    %c0_20 = arith.constant 0 : index
    %33 = vector.load %arg4[%c0_19, %c0_20] : memref<32x64xf32, #tpu.memory_space<vmem>>, vector<32x64xf32>
    tpu.vector_store %arg4[%c0_19, %c0_20], %32 {strides = array<i32>} : memref<32x64xf32, #tpu.memory_space<vmem>>, vector<32x64xf32>,
    return
  }
  func.func @transform_0(%arg0: i32) -> (i32, i32, i32) {
    %c0_i32 = arith.constant 0 : i32
    %c0_i32_0 = arith.constant 0 : i32
    %c0_i32_1 = arith.constant 0 : i32
    return %c0_i32, %arg0, %c0_i32_0 : i32, i32, i32
  }
  func.func @transform_1(%arg0: i32) -> (i32, i32) {
    %c0_i32 = arith.constant 0 : i32
    %c0_i32_0 = arith.constant 0 : i32
    %c0_i32_1 = arith.constant 0 : i32
    return %c0_i32, %c0_i32_0 : i32, i32
  }
  func.func @transform_2(%arg0: i32) -> (i32, i32) {
    %c0_i32 = arith.constant 0 : i32
    %c0_i32_0 = arith.constant 0 : i32
    %c0_i32_1 = arith.constant 0 : i32
    return %c0_i32, %c0_i32_0 : i32, i32
  }
  func.func @transform_3(%arg0: i32) -> (i32, i32) {
    %c0_i32 = arith.constant 0 : i32
    %c0_i32_0 = arith.constant 0 : i32
    return %arg0, %c0_i32 : i32, i32
  }
}

module attributes {stable_mosaic.version = 11 : i64} {
  func.func @conv_relu_pool_kernel(%arg0: i32, %arg1: memref<4x8x576xbf16, #tpu.memory_space<vmem>>, %arg2: memref<576x128xbf16, #tpu.memory_space<vmem>>, %arg3: memref<1x128xf32, #tpu.memory_space<vmem>>, %arg4: memref<8x128xf32, #tpu.memory_space<vmem>>) attributes {dimension_semantics = [#tpu.dimension_semantics<parallel>], iteration_bounds = array<i64: 1>, scalar_prefetch = 0 : i64, scratch_operands = 0 : i64, tpu.core_type = #tpu.core_type<tc>, window_params = [{transform_indices = @transform_0, window_bounds = array<i64: 4, 8, 576>}, {pipeline_mode = #tpu.pipeline_mode<synchronous>, transform_indices = @transform_1, window_bounds = array<i64: 576, 128>}, {pipeline_mode = #tpu.pipeline_mode<synchronous>, transform_indices = @transform_2, window_bounds = array<i64: 1, 128>}, {transform_indices = @transform_3, window_bounds = array<i64: 8, 128>}]} {
    %c0 = arith.constant 0 : index
    %c0_0 = arith.constant 0 : index
    %0 = vector.load %arg2[%c0, %c0_0] : memref<576x128xbf16, #tpu.memory_space<vmem>>, vector<576x128xbf16>
    %c0_1 = arith.constant 0 : index
    %c0_2 = arith.constant 0 : index
    %1 = vector.load %arg3[%c0_1, %c0_2] : memref<1x128xf32, #tpu.memory_space<vmem>>, vector<1x128xf32>
    %c0_3 = arith.constant 0 : index
    %c0_4 = arith.constant 0 : index
    %c0_5 = arith.constant 0 : index
    %2 = vector.load %arg1[%c0_3, %c0_4, %c0_5] : memref<4x8x576xbf16, #tpu.memory_space<vmem>>, vector<1x8x576xbf16>
    %3 = vector.shape_cast %2 : vector<1x8x576xbf16> to vector<8x576xbf16>
    %cst = arith.constant dense<0.000000e+00> : vector<8x128xf32>
    %4 = tpu.matmul %3, %0, %cst {dimension_numbers = #tpu.dot_dimension_numbers<[1], [0], [0], [1], [0, 0, 1, 1], [], []>} : vector<8x576xbf16>, vector<576x128xbf16>, vector<8x128xf32> -> vector<8x128xf32>
    %5 = vector.broadcast %1 : vector<1x128xf32> to vector<8x128xf32>
    %6 = arith.addf %4, %5 : vector<8x128xf32>
    %cst_6 = arith.constant 0.000000e+00 : f32
    %7 = vector.broadcast %cst_6 : f32 to vector<8x128xf32>
    %8 = arith.maximumf %6, %7 : vector<8x128xf32>
    %c1 = arith.constant 1 : index
    %c0_7 = arith.constant 0 : index
    %c0_8 = arith.constant 0 : index
    %9 = vector.load %arg1[%c1, %c0_7, %c0_8] : memref<4x8x576xbf16, #tpu.memory_space<vmem>>, vector<1x8x576xbf16>
    %10 = vector.shape_cast %9 : vector<1x8x576xbf16> to vector<8x576xbf16>
    %cst_9 = arith.constant dense<0.000000e+00> : vector<8x128xf32>
    %11 = tpu.matmul %10, %0, %cst_9 {dimension_numbers = #tpu.dot_dimension_numbers<[1], [0], [0], [1], [0, 0, 1, 1], [], []>} : vector<8x576xbf16>, vector<576x128xbf16>, vector<8x128xf32> -> vector<8x128xf32>
    %12 = vector.broadcast %1 : vector<1x128xf32> to vector<8x128xf32>
    %13 = arith.addf %11, %12 : vector<8x128xf32>
    %cst_10 = arith.constant 0.000000e+00 : f32
    %14 = vector.broadcast %cst_10 : f32 to vector<8x128xf32>
    %15 = arith.maximumf %13, %14 : vector<8x128xf32>
    %16 = arith.maximumf %8, %15 : vector<8x128xf32>
    %c2 = arith.constant 2 : index
    %c0_11 = arith.constant 0 : index
    %c0_12 = arith.constant 0 : index
    %17 = vector.load %arg1[%c2, %c0_11, %c0_12] : memref<4x8x576xbf16, #tpu.memory_space<vmem>>, vector<1x8x576xbf16>
    %18 = vector.shape_cast %17 : vector<1x8x576xbf16> to vector<8x576xbf16>
    %cst_13 = arith.constant dense<0.000000e+00> : vector<8x128xf32>
    %19 = tpu.matmul %18, %0, %cst_13 {dimension_numbers = #tpu.dot_dimension_numbers<[1], [0], [0], [1], [0, 0, 1, 1], [], []>} : vector<8x576xbf16>, vector<576x128xbf16>, vector<8x128xf32> -> vector<8x128xf32>
    %20 = vector.broadcast %1 : vector<1x128xf32> to vector<8x128xf32>
    %21 = arith.addf %19, %20 : vector<8x128xf32>
    %cst_14 = arith.constant 0.000000e+00 : f32
    %22 = vector.broadcast %cst_14 : f32 to vector<8x128xf32>
    %23 = arith.maximumf %21, %22 : vector<8x128xf32>
    %c3 = arith.constant 3 : index
    %c0_15 = arith.constant 0 : index
    %c0_16 = arith.constant 0 : index
    %24 = vector.load %arg1[%c3, %c0_15, %c0_16] : memref<4x8x576xbf16, #tpu.memory_space<vmem>>, vector<1x8x576xbf16>
    %25 = vector.shape_cast %24 : vector<1x8x576xbf16> to vector<8x576xbf16>
    %cst_17 = arith.constant dense<0.000000e+00> : vector<8x128xf32>
    %26 = tpu.matmul %25, %0, %cst_17 {dimension_numbers = #tpu.dot_dimension_numbers<[1], [0], [0], [1], [0, 0, 1, 1], [], []>} : vector<8x576xbf16>, vector<576x128xbf16>, vector<8x128xf32> -> vector<8x128xf32>
    %27 = vector.broadcast %1 : vector<1x128xf32> to vector<8x128xf32>
    %28 = arith.addf %26, %27 : vector<8x128xf32>
    %cst_18 = arith.constant 0.000000e+00 : f32
    %29 = vector.broadcast %cst_18 : f32 to vector<8x128xf32>
    %30 = arith.maximumf %28, %29 : vector<8x128xf32>
    %31 = arith.maximumf %23, %30 : vector<8x128xf32>
    %32 = arith.maximumf %16, %31 : vector<8x128xf32>
    %c0_19 = arith.constant 0 : index
    %c0_20 = arith.constant 0 : index
    %33 = vector.load %arg4[%c0_19, %c0_20] : memref<8x128xf32, #tpu.memory_space<vmem>>, vector<8x128xf32>
    tpu.vector_store %arg4[%c0_19, %c0_20], %32 {strides = array<i32>} : memref<8x128xf32, #tpu.memory_space<vmem>>, vector<8x128xf32>,
    return
  }
  func.func @transform_0(%arg0: i32) -> (i32, i32, i32) {
    %c0_i32 = arith.constant 0 : i32
    %c0_i32_0 = arith.constant 0 : i32
    %c0_i32_1 = arith.constant 0 : i32
    return %c0_i32, %arg0, %c0_i32_0 : i32, i32, i32
  }
  func.func @transform_1(%arg0: i32) -> (i32, i32) {
    %c0_i32 = arith.constant 0 : i32
    %c0_i32_0 = arith.constant 0 : i32
    %c0_i32_1 = arith.constant 0 : i32
    return %c0_i32, %c0_i32_0 : i32, i32
  }
  func.func @transform_2(%arg0: i32) -> (i32, i32) {
    %c0_i32 = arith.constant 0 : i32
    %c0_i32_0 = arith.constant 0 : i32
    %c0_i32_1 = arith.constant 0 : i32
    return %c0_i32, %c0_i32_0 : i32, i32
  }
  func.func @transform_3(%arg0: i32) -> (i32, i32) {
    %c0_i32 = arith.constant 0 : i32
    %c0_i32_0 = arith.constant 0 : i32
    return %arg0, %c0_i32 : i32, i32
  }
}

module attributes {stable_mosaic.version = 11 : i64} {
  func.func @fc_head_kernel(%arg0: memref<2x1xf32, #tpu.memory_space<vmem>>, %arg1: memref<2x512xf32, #tpu.memory_space<vmem>>, %arg2: memref<1x256xbf16, #tpu.memory_space<vmem>>, %arg3: memref<1x256xf32, #tpu.memory_space<vmem>>, %arg4: memref<256x128xbf16, #tpu.memory_space<vmem>>, %arg5: memref<1x128xf32, #tpu.memory_space<vmem>>, %arg6: memref<128x256xbf16, #tpu.memory_space<vmem>>, %arg7: memref<512x256xbf16, #tpu.memory_space<vmem>>, %arg8: memref<1x256xf32, #tpu.memory_space<vmem>>, %arg9: memref<256x128xbf16, #tpu.memory_space<vmem>>, %arg10: memref<1x128xf32, #tpu.memory_space<vmem>>, %arg11: memref<128x1xbf16, #tpu.memory_space<vmem>>, %arg12: memref<1x1xf32, #tpu.memory_space<vmem>>, %arg13: memref<2x1xf32, #tpu.memory_space<vmem>>) attributes {dimension_semantics = [], scalar_prefetch = 0 : i64, scratch_operands = 0 : i64, tpu.core_type = #tpu.core_type<tc>} {
    %c0 = arith.constant 0 : index
    %c0_0 = arith.constant 0 : index
    %0 = vector.load %arg0[%c0, %c0_0] : memref<2x1xf32, #tpu.memory_space<vmem>>, vector<2x1xf32>
    %c0_1 = arith.constant 0 : index
    %c0_2 = arith.constant 0 : index
    %1 = vector.load %arg1[%c0_1, %c0_2] : memref<2x512xf32, #tpu.memory_space<vmem>>, vector<2x512xf32>
    %2 = arith.truncf %1 : vector<2x512xf32> to vector<2x512xbf16>
    %c0_3 = arith.constant 0 : index
    %c0_4 = arith.constant 0 : index
    %3 = vector.load %arg2[%c0_3, %c0_4] : memref<1x256xbf16, #tpu.memory_space<vmem>>, vector<1x256xbf16>
    %4 = arith.extf %3 : vector<1x256xbf16> to vector<1x256xf32>
    %5 = vector.broadcast %0 : vector<2x1xf32> to vector<2x256xf32>
    %6 = vector.broadcast %4 : vector<1x256xf32> to vector<2x256xf32>
    %7 = arith.mulf %5, %6 : vector<2x256xf32>
    %c0_5 = arith.constant 0 : index
    %c0_6 = arith.constant 0 : index
    %8 = vector.load %arg3[%c0_5, %c0_6] : memref<1x256xf32, #tpu.memory_space<vmem>>, vector<1x256xf32>
    %9 = vector.broadcast %8 : vector<1x256xf32> to vector<2x256xf32>
    %10 = arith.addf %7, %9 : vector<2x256xf32>
    %cst = arith.constant 0.000000e+00 : f32
    %11 = vector.broadcast %cst : f32 to vector<2x256xf32>
    %12 = arith.maximumf %10, %11 : vector<2x256xf32>
    %13 = arith.truncf %12 : vector<2x256xf32> to vector<2x256xbf16>
    %c0_7 = arith.constant 0 : index
    %c0_8 = arith.constant 0 : index
    %14 = vector.load %arg4[%c0_7, %c0_8] : memref<256x128xbf16, #tpu.memory_space<vmem>>, vector<256x128xbf16>
    %cst_9 = arith.constant dense<0.000000e+00> : vector<2x128xf32>
    %15 = tpu.matmul %13, %14, %cst_9 {dimension_numbers = #tpu.dot_dimension_numbers<[1], [0], [0], [1], [0, 0, 1, 1], [], []>} : vector<2x256xbf16>, vector<256x128xbf16>, vector<2x128xf32> -> vector<2x128xf32>
    %c0_10 = arith.constant 0 : index
    %c0_11 = arith.constant 0 : index
    %16 = vector.load %arg5[%c0_10, %c0_11] : memref<1x128xf32, #tpu.memory_space<vmem>>, vector<1x128xf32>
    %17 = vector.broadcast %16 : vector<1x128xf32> to vector<2x128xf32>
    %18 = arith.addf %15, %17 : vector<2x128xf32>
    %cst_12 = arith.constant 0.000000e+00 : f32
    %19 = vector.broadcast %cst_12 : f32 to vector<2x128xf32>
    %20 = arith.maximumf %18, %19 : vector<2x128xf32>
    %21 = arith.truncf %20 : vector<2x128xf32> to vector<2x128xbf16>
    %c0_13 = arith.constant 0 : index
    %c0_14 = arith.constant 0 : index
    %22 = vector.load %arg6[%c0_13, %c0_14] : memref<128x256xbf16, #tpu.memory_space<vmem>>, vector<128x256xbf16>
    %cst_15 = arith.constant dense<0.000000e+00> : vector<2x256xf32>
    %23 = tpu.matmul %21, %22, %cst_15 {dimension_numbers = #tpu.dot_dimension_numbers<[1], [0], [0], [1], [0, 0, 1, 1], [], []>} : vector<2x128xbf16>, vector<128x256xbf16>, vector<2x256xf32> -> vector<2x256xf32>
    %c0_16 = arith.constant 0 : index
    %c0_17 = arith.constant 0 : index
    %24 = vector.load %arg7[%c0_16, %c0_17] : memref<512x256xbf16, #tpu.memory_space<vmem>>, vector<512x256xbf16>
    %cst_18 = arith.constant dense<0.000000e+00> : vector<2x256xf32>
    %25 = tpu.matmul %2, %24, %cst_18 {dimension_numbers = #tpu.dot_dimension_numbers<[1], [0], [0], [1], [0, 0, 1, 1], [], []>} : vector<2x512xbf16>, vector<512x256xbf16>, vector<2x256xf32> -> vector<2x256xf32>
    %26 = arith.addf %23, %25 : vector<2x256xf32>
    %c0_19 = arith.constant 0 : index
    %c0_20 = arith.constant 0 : index
    %27 = vector.load %arg8[%c0_19, %c0_20] : memref<1x256xf32, #tpu.memory_space<vmem>>, vector<1x256xf32>
    %28 = vector.broadcast %27 : vector<1x256xf32> to vector<2x256xf32>
    %29 = arith.addf %26, %28 : vector<2x256xf32>
    %cst_21 = arith.constant 0.000000e+00 : f32
    %30 = vector.broadcast %cst_21 : f32 to vector<2x256xf32>
    %31 = arith.maximumf %29, %30 : vector<2x256xf32>
    %32 = arith.truncf %31 : vector<2x256xf32> to vector<2x256xbf16>
    %c0_22 = arith.constant 0 : index
    %c0_23 = arith.constant 0 : index
    %33 = vector.load %arg9[%c0_22, %c0_23] : memref<256x128xbf16, #tpu.memory_space<vmem>>, vector<256x128xbf16>
    %cst_24 = arith.constant dense<0.000000e+00> : vector<2x128xf32>
    %34 = tpu.matmul %32, %33, %cst_24 {dimension_numbers = #tpu.dot_dimension_numbers<[1], [0], [0], [1], [0, 0, 1, 1], [], []>} : vector<2x256xbf16>, vector<256x128xbf16>, vector<2x128xf32> -> vector<2x128xf32>
    %c0_25 = arith.constant 0 : index
    %c0_26 = arith.constant 0 : index
    %35 = vector.load %arg10[%c0_25, %c0_26] : memref<1x128xf32, #tpu.memory_space<vmem>>, vector<1x128xf32>
    %36 = vector.broadcast %35 : vector<1x128xf32> to vector<2x128xf32>
    %37 = arith.addf %34, %36 : vector<2x128xf32>
    %cst_27 = arith.constant 0.000000e+00 : f32
    %38 = vector.broadcast %cst_27 : f32 to vector<2x128xf32>
    %39 = arith.maximumf %37, %38 : vector<2x128xf32>
    %40 = arith.truncf %39 : vector<2x128xf32> to vector<2x128xbf16>
    %c0_28 = arith.constant 0 : index
    %c0_29 = arith.constant 0 : index
    %41 = vector.load %arg11[%c0_28, %c0_29] : memref<128x1xbf16, #tpu.memory_space<vmem>>, vector<128x1xbf16>
    %cst_30 = arith.constant dense<0.000000e+00> : vector<2x1xf32>
    %42 = tpu.matmul %40, %41, %cst_30 {dimension_numbers = #tpu.dot_dimension_numbers<[1], [0], [0], [1], [0, 0, 1, 1], [], []>} : vector<2x128xbf16>, vector<128x1xbf16>, vector<2x1xf32> -> vector<2x1xf32>
    %c0_31 = arith.constant 0 : index
    %c0_32 = arith.constant 0 : index
    %43 = vector.load %arg12[%c0_31, %c0_32] : memref<1x1xf32, #tpu.memory_space<vmem>>, vector<1x1xf32>
    %44 = vector.broadcast %43 : vector<1x1xf32> to vector<2x1xf32>
    %45 = arith.addf %42, %44 : vector<2x1xf32>
    %c0_33 = arith.constant 0 : index
    %c0_34 = arith.constant 0 : index
    %46 = vector.load %arg13[%c0_33, %c0_34] : memref<2x1xf32, #tpu.memory_space<vmem>>, vector<2x1xf32>
    tpu.vector_store %arg13[%c0_33, %c0_34], %45 {strides = array<i32>} : memref<2x1xf32, #tpu.memory_space<vmem>>, vector<2x1xf32>,
    return
  }
}

</mosaic_0001>

<bundles_post_ra>
// kernel: netcv_forward.5
= control target key start
LH: loop header
LB: loop body
LE: loop exit
PB: predicated region body
PF: predicated region fallthrough
CT: control target
= control target key end

     0   :  { %vm347_vm0 = vcmask 1043456   ;;  %vm348_vm1 = vcmask 1044480   ;;  %v3479_v2 = vmov 65535   ;;  %vm250_vm2 = vcmask 72704   ;;  %s4545_s1 = inlined_call_operand.vmem [shape: bf16[9,16], index: 1, kind: input, shape index: {}]   ;;  %s4546_s0 = inlined_call_operand.vmem [shape: bf16[4,512,9], index: 0, kind: input, shape index: {}]   ;;  %s4547_s2 = inlined_call_operand.vmem [shape: f32[1,16], index: 2, kind: input, shape index: {}]   ;;  %s4548_s3 = inlined_call_operand.vmem [shape: f32[512,16], index: 3, kind: output, shape index: {}]  }
   0x1   :  { %v2640_v0 = vld [vmem:[%s4545_s1] sm:$0xf]  ;;  %v3346_v1 = vld [vmem:[%s4545_s1] sm:$0x10]  ;;  %v349_v3 = vsel %vm347_vm0, 4294967295, %v3479_v2  ;;  %v3348_v11 = vld [vmem:[%s4546_s0 + $0x8] sm:$0xff] }
   0x2   :  { %v2641_v4 = vor.u32 %v3346_v1, %v2640_v0  ;;  %v350_v5 = vsel %vm348_vm1, %v349_v3, 0  ;;  %v3347_v7 = vld [vmem:[%s4546_s0] sm:$0xff]  ;;  %v3380_v12 = vld [vmem:[%s4546_s0 + $0x108] sm:$0xff]  ;;  %v3349_v15 = vld [vmem:[%s4546_s0 + $0x10] sm:$0xff]  ;;  %vm2441_vm3 = vcmask 130048  }
   0x3   :  { %v3379_v8 = vld [vmem:[%s4546_s0 + $0x100] sm:$0xff]  ;;  %v3412_v13 = vld [vmem:[%s4546_s0 + $0x208] sm:$0xff]  ;;  %v3381_v16 = vld [vmem:[%s4546_s0 + $0x110] sm:$0xff] }
   0x4   :  { %v352_v6 = vand.u32 %v2641_v4, %v350_v5  ;;  %v3411_v9 = vld [vmem:[%s4546_s0 + $0x200] sm:$0xff]  ;;  %v3444_v14 = vld [vmem:[%s4546_s0 + $0x308] sm:$0xff]  ;;  %v3413_v17 = vld [vmem:[%s4546_s0 + $0x210] sm:$0xff] }
   0x5   :  { %v3443_v10 = vld [vmem:[%s4546_s0 + $0x300] sm:$0xff]  ;;  %v3445_v18 = vld [vmem:[%s4546_s0 + $0x310] sm:$0xff]  ;;  %v3350_v19 = vld [vmem:[%s4546_s0 + $0x18] sm:$0xff] }
   0x6   :  { %361 = vmatpush.bf16.msra.mxu0 %v352_v6  ;;  %915 = vmatpush.bf16.msra.mxu1 %v352_v6  ;;  %v3382_v20 = vld [vmem:[%s4546_s0 + $0x118] sm:$0xff]  ;;  %v3351_v23 = vld [vmem:[%s4546_s0 + $0x20] sm:$0xff]  ;;  %v3352_v27 = vld [vmem:[%s4546_s0 + $0x28] sm:$0xff] }
   0x7   :  { %1533 = vmatpush.bf16.msra.mxu2 %v352_v6  ;;  %2087 = vmatpush.bf16.msra.mxu3 %v352_v6  ;;  %v3414_v21 = vld [vmem:[%s4546_s0 + $0x218] sm:$0xff]  ;;  %v3383_v24 = vld [vmem:[%s4546_s0 + $0x120] sm:$0xff]  ;;  %v3384_v28 = vld [vmem:[%s4546_s0 + $0x128] sm:$0xff] }
   0x8   :  { %v3446_v22 = vld [vmem:[%s4546_s0 + $0x318] sm:$0xff]  ;;  %v3415_v25 = vld [vmem:[%s4546_s0 + $0x220] sm:$0xff]  ;;  %v3416_v29 = vld [vmem:[%s4546_s0 + $0x228] sm:$0xff] }
   0x9   :  { %2642 = vmatmul.msk.bf16.vlgmr.msra.gmra.mxu0 %vm250_vm2, %v3347_v7  ;;  %2866 = vmatmul.msk.bf16.vlgmr.msra.gmra.mxu1 %vm250_vm2, %v3379_v8  ;;  %v3447_v26 = vld [vmem:[%s4546_s0 + $0x320] sm:$0xff]  ;;  %v3448_v30 = vld [vmem:[%s4546_s0 + $0x328] sm:$0xff]  ;;  %v3353_v31 = vld [vmem:[%s4546_s0 + $0x30] sm:$0xff] }
   0xa   :  { %3090 = vmatmul.msk.bf16.vlgmr.msra.gmra.mxu2 %vm250_vm2, %v3411_v9  ;;  %3314 = vmatmul.msk.bf16.vlgmr.msra.gmra.mxu3 %vm250_vm2, %v3443_v10  ;;  %v3385_v32 = vld [vmem:[%s4546_s0 + $0x130] sm:$0xff]  ;;  %v3354_v35 = vld [vmem:[%s4546_s0 + $0x38] sm:$0xff]  ;;  %v3637_v39 = vld [vmem:[%s4547_s2] ss:$0 sm:$0xff] }
   0xb   :  { %v3417_v33 = vld [vmem:[%s4546_s0 + $0x230] sm:$0xff]  ;;  %v3386_v36 = vld [vmem:[%s4546_s0 + $0x138] sm:$0xff]  ;;  %v3355_v40 = vld [vmem:[%s4546_s0 + $0x40] sm:$0xff] }
   0xc   :  { %v3449_v34 = vld [vmem:[%s4546_s0 + $0x330] sm:$0xff]  ;;  %v3418_v37 = vld [vmem:[%s4546_s0 + $0x238] sm:$0xff]  ;;  %v3387_v41 = vld [vmem:[%s4546_s0 + $0x140] sm:$0xff] }
   0xd   :  { %v3450_v38 = vld [vmem:[%s4546_s0 + $0x338] sm:$0xff]  ;;  %v3419_v44 = vld [vmem:[%s4546_s0 + $0x240] sm:$0xff]  ;;  %v3356_v1 = vld [vmem:[%s4546_s0 + $0x48] sm:$0xff] }
   0xe   :  { %v3451_v45 = vld [vmem:[%s4546_s0 + $0x340] sm:$0xff]  ;;  %v3388_v2 = vld [vmem:[%s4546_s0 + $0x148] sm:$0xff] }
   0xf   :  { %v3420_v9 = vld [vmem:[%s4546_s0 + $0x248] sm:$0xff] }
  0x10   :  { %v3452_v10 = vld [vmem:[%s4546_s0 + $0x348] sm:$0xff] }
  0x19   :  { %2643 = vmatmul.msk.bf16.gmra.mxu0 %vm250_vm2, %v3348_v11  ;;  %2867 = vmatmul.msk.bf16.gmra.mxu1 %vm250_vm2, %v3380_v12 }
  0x1a   :  { %3091 = vmatmul.msk.bf16.gmra.mxu2 %vm250_vm2, %v3412_v13  ;;  %3315 = vmatmul.msk.bf16.gmra.mxu3 %vm250_vm2, %v3444_v14 }
  0x29   :  { %2644 = vmatmul.msk.bf16.gmra.mxu0 %vm250_vm2, %v3349_v15  ;;  %2868 = vmatmul.msk.bf16.gmra.mxu1 %vm250_vm2, %v3381_v16 }
  0x2a   :  { %3092 = vmatmul.msk.bf16.gmra.mxu2 %vm250_vm2, %v3413_v17  ;;  %3316 = vmatmul.msk.bf16.gmra.mxu3 %vm250_vm2, %v3445_v18 }
  0x39   :  { %2645 = vmatmul.msk.bf16.gmra.mxu0 %vm250_vm2, %v3350_v19  ;;  %2869 = vmatmul.msk.bf16.gmra.mxu1 %vm250_vm2, %v3382_v20 }
  0x3a   :  { %3093 = vmatmul.msk.bf16.gmra.mxu2 %vm250_vm2, %v3414_v21  ;;  %3317 = vmatmul.msk.bf16.gmra.mxu3 %vm250_vm2, %v3446_v22 }
  0x49   :  { %2646 = vmatmul.msk.bf16.gmra.mxu0 %vm250_vm2, %v3351_v23  ;;  %2870 = vmatmul.msk.bf16.gmra.mxu1 %vm250_vm2, %v3383_v24 }
  0x4a   :  { %3094 = vmatmul.msk.bf16.gmra.mxu2 %vm250_vm2, %v3415_v25  ;;  %3318 = vmatmul.msk.bf16.gmra.mxu3 %vm250_vm2, %v3447_v26 }
  0x59   :  { %2647 = vmatmul.msk.bf16.gmra.mxu0 %vm250_vm2, %v3352_v27  ;;  %2871 = vmatmul.msk.bf16.gmra.mxu1 %vm250_vm2, %v3384_v28 }
  0x5a   :  { %3095 = vmatmul.msk.bf16.gmra.mxu2 %vm250_vm2, %v3416_v29  ;;  %3319 = vmatmul.msk.bf16.gmra.mxu3 %vm250_vm2, %v3448_v30 }
  0x69   :  { %2648 = vmatmul.msk.bf16.gmra.mxu0 %vm250_vm2, %v3353_v31  ;;  %2872 = vmatmul.msk.bf16.gmra.mxu1 %vm250_vm2, %v3385_v32 }
  0x6a   :  { %3096 = vmatmul.msk.bf16.gmra.mxu2 %vm250_vm2, %v3417_v33  ;;  %3320 = vmatmul.msk.bf16.gmra.mxu3 %vm250_vm2, %v3449_v34 }
  0x79   :  { %2649 = vmatmul.msk.bf16.gmra.mxu0 %vm250_vm2, %v3354_v35  ;;  %2873 = vmatmul.msk.bf16.gmra.mxu1 %vm250_vm2, %v3386_v36  ;;  %v3357_v35 = vld [vmem:[%s4546_s0 + $0x50] sm:$0xff] }
  0x7a   :  { %3097 = vmatmul.msk.bf16.gmra.mxu2 %vm250_vm2, %v3418_v37  ;;  %3321 = vmatmul.msk.bf16.gmra.mxu3 %vm250_vm2, %v3450_v38  ;;  %v3389_v36 = vld [vmem:[%s4546_s0 + $0x150] sm:$0xff] }
  0x86   :  { %v363_v42 = vpop.f32.mrf.mxu0  ;;  %v917_v43 = vpop.f32.mrf.mxu1 }
  0x87   :  { %v364_v46 = vadd.f32 %v3637_v39, %v363_v42  ;;  %v918_v47 = vadd.f32 %v3637_v39, %v917_v43 }
  0x89   :  { %2650 = vmatmul.msk.bf16.gmra.mxu0 %vm250_vm2, %v3355_v40  ;;  %2874 = vmatmul.msk.bf16.gmra.mxu1 %vm250_vm2, %v3387_v41  ;;  %v523_v48 = vmax.f32 %v364_v46, 0.0  ;;  %v1077_v49 = vmax.f32 %v918_v47, 0.0 }
  0x8a   :  { %3098 = vmatmul.msk.bf16.gmra.mxu2 %vm250_vm2, %v3419_v44  ;;  %3322 = vmatmul.msk.bf16.gmra.mxu3 %vm250_vm2, %v3451_v45  ;;  %v3421_v44 = vld [vmem:[%s4546_s0 + $0x250] sm:$0xff] }
  0x8b   :  { %v1141_v56 = vmax.f32 %v523_v48, %v1077_v49  ;;  %v3453_v45 = vld [vmem:[%s4546_s0 + $0x350] sm:$0xff] }
  0x8d   :  { %v1535_v50 = vpop.f32.mrf.mxu2  ;;  %v2089_v51 = vpop.f32.mrf.mxu3 }
  0x8e   :  { %v1536_v52 = vadd.f32 %v3637_v39, %v1535_v50  ;;  %v2090_v53 = vadd.f32 %v3637_v39, %v2089_v51  ;;  %v365_v54 = vpop.f32.mrf.mxu0  ;;  %v919_v55 = vpop.f32.mrf.mxu1 }
  0x8f   :  { %v366_v60 = vadd.f32 %v3637_v39, %v365_v54  ;;  %v920_v61 = vadd.f32 %v3637_v39, %v919_v55 }
  0x90   :  { %v1695_v57 = vmax.f32 %v1536_v52, 0.0  ;;  %v2249_v58 = vmax.f32 %v2090_v53, 0.0 }
  0x91   :  { %v524_v3 = vmax.f32 %v366_v60, 0.0  ;;  %v1078_v4 = vmax.f32 %v920_v61, 0.0 }
  0x92   :  { %v2313_v59 = vmax.f32 %v1695_v57, %v2249_v58 }
  0x93   :  { %v1142_v15 = vmax.f32 %v524_v3, %v1078_v4 }
  0x94   :  { %v2377_v62 = vmax.f32 %v1141_v56, %v2313_v59 }
  0x95   :  { %v1537_v63 = vpop.f32.mrf.mxu2  ;;  %v2091_v0 = vpop.f32.mrf.mxu3 }
  0x96   :  { %2442 = vst.msk [vmem:[%s4548_s3] sm:$0xff] %vm2441_vm3, %v2377_v62  ;;  %v1538_v5 = vadd.f32 %v3637_v39, %v1537_v63  ;;  %v2092_v6 = vadd.f32 %v3637_v39, %v2091_v0  ;;  %v368_v7 = vpop.f32.mrf.mxu0  ;;  %v922_v8 = vpop.f32.mrf.mxu1 }
  0x97   :  { %v369_v13 = vadd.f32 %v3637_v39, %v368_v7  ;;  %v923_v14 = vadd.f32 %v3637_v39, %v922_v8  ;;  %v3390_v7 = vld [vmem:[%s4546_s0 + $0x158] sm:$0xff] }
  0x98   :  { %v1696_v11 = vmax.f32 %v1538_v5, 0.0  ;;  %v2250_v12 = vmax.f32 %v2092_v6, 0.0  ;;  %v3358_v6 = vld [vmem:[%s4546_s0 + $0x58] sm:$0xff] }
  0x99   :  { %2651 = vmatmul.msk.bf16.gmra.mxu0 %vm250_vm2, %v3356_v1  ;;  %2875 = vmatmul.msk.bf16.gmra.mxu1 %vm250_vm2, %v3388_v2  ;;  %v525_v18 = vmax.f32 %v369_v13, 0.0  ;;  %v1079_v19 = vmax.f32 %v923_v14, 0.0  ;;  %v3422_v14 = vld [vmem:[%s4546_s0 + $0x258] sm:$0xff] }
  0x9a   :  { %v2314_v16 = vmax.f32 %v1696_v11, %v2250_v12  ;;  %3099 = vmatmul.msk.bf16.gmra.mxu2 %vm250_vm2, %v3420_v9  ;;  %3323 = vmatmul.msk.bf16.gmra.mxu3 %vm250_vm2, %v3452_v10 }
  0x9b   :  { %v1143_v26 = vmax.f32 %v525_v18, %v1079_v19 }
  0x9c   :  { %v2378_v17 = vmax.f32 %v1142_v15, %v2314_v16  ;;  %v3454_v15 = vld [vmem:[%s4546_s0 + $0x358] sm:$0xff] }
  0x9d   :  { %v1540_v20 = vpop.f32.mrf.mxu2  ;;  %v2094_v21 = vpop.f32.mrf.mxu3 }
  0x9e   :  { %2443 = vst.msk [vmem:[%s4548_s3 + $0x8] sm:$0xff] %vm2441_vm3, %v2378_v17  ;;  %v1541_v22 = vadd.f32 %v3637_v39, %v1540_v20  ;;  %v2095_v23 = vadd.f32 %v3637_v39, %v2094_v21  ;;  %v370_v24 = vpop.f32.mrf.mxu0  ;;  %v924_v25 = vpop.f32.mrf.mxu1 }
  0x9f   :  { %v371_v30 = vadd.f32 %v3637_v39, %v370_v24  ;;  %v925_v31 = vadd.f32 %v3637_v39, %v924_v25 }
  0xa0   :  { %v1697_v27 = vmax.f32 %v1541_v22, 0.0  ;;  %v2251_v28 = vmax.f32 %v2095_v23, 0.0 }
  0xa1   :  { %v526_v37 = vmax.f32 %v371_v30, 0.0  ;;  %v1080_v38 = vmax.f32 %v925_v31, 0.0 }
  0xa2   :  { %v2315_v29 = vmax.f32 %v1697_v27, %v2251_v28 }
  0xa3   :  { %v1144_v50 = vmax.f32 %v526_v37, %v1080_v38 }
  0xa4   :  { %v2379_v32 = vmax.f32 %v1143_v26, %v2315_v29 }
  0xa5   :  { %v1542_v33 = vpop.f32.mrf.mxu2  ;;  %v2096_v34 = vpop.f32.mrf.mxu3 }
  0xa6   :  { %2444 = vst.msk [vmem:[%s4548_s3 + $0x10] sm:$0xff] %vm2441_vm3, %v2379_v32  ;;  %v1543_v40 = vadd.f32 %v3637_v39, %v1542_v33  ;;  %v2097_v41 = vadd.f32 %v3637_v39, %v2096_v34  ;;  %v373_v42 = vpop.f32.mrf.mxu0  ;;  %v927_v43 = vpop.f32.mrf.mxu1 }
  0xa7   :  { %v374_v48 = vadd.f32 %v3637_v39, %v373_v42  ;;  %v928_v49 = vadd.f32 %v3637_v39, %v927_v43  ;;  %v3391_v42 = vld [vmem:[%s4546_s0 + $0x160] sm:$0xff] }
  0xa8   :  { %v1698_v46 = vmax.f32 %v1543_v40, 0.0  ;;  %v2252_v47 = vmax.f32 %v2097_v41, 0.0  ;;  %v3359_v41 = vld [vmem:[%s4546_s0 + $0x60] sm:$0xff] }
  0xa9   :  { %2652 = vmatmul.msk.bf16.gmra.mxu0 %vm250_vm2, %v3357_v35  ;;  %2876 = vmatmul.msk.bf16.gmra.mxu1 %vm250_vm2, %v3389_v36  ;;  %v527_v53 = vmax.f32 %v374_v48, 0.0  ;;  %v1081_v54 = vmax.f32 %v928_v49, 0.0  ;;  %v3423_v49 = vld [vmem:[%s4546_s0 + $0x260] sm:$0xff] }
  0xaa   :  { %v2316_v51 = vmax.f32 %v1698_v46, %v2252_v47  ;;  %3100 = vmatmul.msk.bf16.gmra.mxu2 %vm250_vm2, %v3421_v44  ;;  %3324 = vmatmul.msk.bf16.gmra.mxu3 %vm250_vm2, %v3453_v45 }
  0xab   :  { %v1145_v61 = vmax.f32 %v527_v53, %v1081_v54 }
  0xac   :  { %v2380_v52 = vmax.f32 %v1144_v50, %v2316_v51  ;;  %v3455_v50 = vld [vmem:[%s4546_s0 + $0x360] sm:$0xff] }
  0xad   :  { %v1545_v55 = vpop.f32.mrf.mxu2  ;;  %v2099_v56 = vpop.f32.mrf.mxu3 }
  0xae   :  { %2445 = vst.msk [vmem:[%s4548_s3 + $0x18] sm:$0xff] %vm2441_vm3, %v2380_v52  ;;  %v1546_v57 = vadd.f32 %v3637_v39, %v1545_v55  ;;  %v2100_v58 = vadd.f32 %v3637_v39, %v2099_v56  ;;  %v375_v59 = vpop.f32.mrf.mxu0  ;;  %v929_v60 = vpop.f32.mrf.mxu1 }
  0xaf   :  { %v376_v1 = vadd.f32 %v3637_v39, %v375_v59  ;;  %v930_v2 = vadd.f32 %v3637_v39, %v929_v60 }
  0xb0   :  { %v1699_v62 = vmax.f32 %v1546_v57, 0.0  ;;  %v2253_v63 = vmax.f32 %v2100_v58, 0.0 }
  0xb1   :  { %v528_v8 = vmax.f32 %v376_v1, 0.0  ;;  %v1082_v9 = vmax.f32 %v930_v2, 0.0 }
  0xb2   :  { %v2317_v0 = vmax.f32 %v1699_v62, %v2253_v63 }
  0xb3   :  { %v1146_v20 = vmax.f32 %v528_v8, %v1082_v9 }
  0xb4   :  { %v2381_v3 = vmax.f32 %v1145_v61, %v2317_v0 }
  0xb5   :  { %v1547_v4 = vpop.f32.mrf.mxu2  ;;  %v2101_v5 = vpop.f32.mrf.mxu3 }
  0xb6   :  { %2446 = vst.msk [vmem:[%s4548_s3 + $0x20] sm:$0xff] %vm2441_vm3, %v2381_v3  ;;  %v1548_v10 = vadd.f32 %v3637_v39, %v1547_v4  ;;  %v2102_v11 = vadd.f32 %v3637_v39, %v2101_v5  ;;  %v378_v12 = vpop.f32.mrf.mxu0  ;;  %v932_v13 = vpop.f32.mrf.mxu1 }
  0xb7   :  { %v379_v18 = vadd.f32 %v3637_v39, %v378_v12  ;;  %v933_v19 = vadd.f32 %v3637_v39, %v932_v13  ;;  %v3392_v12 = vld [vmem:[%s4546_s0 + $0x168] sm:$0xff] }
  0xb8   :  { %v1700_v16 = vmax.f32 %v1548_v10, 0.0  ;;  %v2254_v17 = vmax.f32 %v2102_v11, 0.0  ;;  %v3360_v11 = vld [vmem:[%s4546_s0 + $0x68] sm:$0xff] }
  0xb9   :  { %2653 = vmatmul.msk.bf16.gmra.mxu0 %vm250_vm2, %v3358_v6  ;;  %2877 = vmatmul.msk.bf16.gmra.mxu1 %vm250_vm2, %v3390_v7  ;;  %v529_v23 = vmax.f32 %v379_v18, 0.0  ;;  %v1083_v24 = vmax.f32 %v933_v19, 0.0  ;;  %v3424_v19 = vld [vmem:[%s4546_s0 + $0x268] sm:$0xff] }
  0xba   :  { %v2318_v21 = vmax.f32 %v1700_v16, %v2254_v17  ;;  %3101 = vmatmul.msk.bf16.gmra.mxu2 %vm250_vm2, %v3422_v14  ;;  %3325 = vmatmul.msk.bf16.gmra.mxu3 %vm250_vm2, %v3454_v15 }
  0xbb   :  { %v1147_v31 = vmax.f32 %v529_v23, %v1083_v24 }
  0xbc   :  { %v2382_v22 = vmax.f32 %v1146_v20, %v2318_v21  ;;  %v3456_v20 = vld [vmem:[%s4546_s0 + $0x368] sm:$0xff] }
  0xbd   :  { %v1550_v25 = vpop.f32.mrf.mxu2  ;;  %v2104_v26 = vpop.f32.mrf.mxu3 }
  0xbe   :  { %2447 = vst.msk [vmem:[%s4548_s3 + $0x28] sm:$0xff] %vm2441_vm3, %v2382_v22  ;;  %v1551_v27 = vadd.f32 %v3637_v39, %v1550_v25  ;;  %v2105_v28 = vadd.f32 %v3637_v39, %v2104_v26  ;;  %v380_v29 = vpop.f32.mrf.mxu0  ;;  %v934_v30 = vpop.f32.mrf.mxu1 }
  0xbf   :  { %v381_v35 = vadd.f32 %v3637_v39, %v380_v29  ;;  %v935_v36 = vadd.f32 %v3637_v39, %v934_v30 }
  0xc0   :  { %v1701_v32 = vmax.f32 %v1551_v27, 0.0  ;;  %v2255_v33 = vmax.f32 %v2105_v28, 0.0 }
  0xc1   :  { %v530_v43 = vmax.f32 %v381_v35, 0.0  ;;  %v1084_v44 = vmax.f32 %v935_v36, 0.0 }
  0xc2   :  { %v2319_v34 = vmax.f32 %v1701_v32, %v2255_v33 }
  0xc3   :  { %v1148_v55 = vmax.f32 %v530_v43, %v1084_v44 }
  0xc4   :  { %v2383_v37 = vmax.f32 %v1147_v31, %v2319_v34 }
  0xc5   :  { %v1552_v38 = vpop.f32.mrf.mxu2  ;;  %v2106_v40 = vpop.f32.mrf.mxu3 }
  0xc6   :  { %2448 = vst.msk [vmem:[%s4548_s3 + $0x30] sm:$0xff] %vm2441_vm3, %v2383_v37  ;;  %v1553_v45 = vadd.f32 %v3637_v39, %v1552_v38  ;;  %v2107_v46 = vadd.f32 %v3637_v39, %v2106_v40  ;;  %v383_v47 = vpop.f32.mrf.mxu0  ;;  %v937_v48 = vpop.f32.mrf.mxu1 }
  0xc7   :  { %v384_v53 = vadd.f32 %v3637_v39, %v383_v47  ;;  %v938_v54 = vadd.f32 %v3637_v39, %v937_v48  ;;  %v3393_v47 = vld [vmem:[%s4546_s0 + $0x170] sm:$0xff] }
  0xc8   :  { %v1702_v51 = vmax.f32 %v1553_v45, 0.0  ;;  %v2256_v52 = vmax.f32 %v2107_v46, 0.0  ;;  %v3361_v46 = vld [vmem:[%s4546_s0 + $0x70] sm:$0xff] }
  0xc9   :  { %2654 = vmatmul.msk.bf16.gmra.mxu0 %vm250_vm2, %v3359_v41  ;;  %2878 = vmatmul.msk.bf16.gmra.mxu1 %vm250_vm2, %v3391_v42  ;;  %v531_v58 = vmax.f32 %v384_v53, 0.0  ;;  %v1085_v59 = vmax.f32 %v938_v54, 0.0  ;;  %v3425_v54 = vld [vmem:[%s4546_s0 + $0x270] sm:$0xff] }
  0xca   :  { %v2320_v56 = vmax.f32 %v1702_v51, %v2256_v52  ;;  %3102 = vmatmul.msk.bf16.gmra.mxu2 %vm250_vm2, %v3423_v49  ;;  %3326 = vmatmul.msk.bf16.gmra.mxu3 %vm250_vm2, %v3455_v50 }
  0xcb   :  { %v1149_v2 = vmax.f32 %v531_v58, %v1085_v59 }
  0xcc   :  { %v2384_v57 = vmax.f32 %v1148_v55, %v2320_v56  ;;  %v3457_v55 = vld [vmem:[%s4546_s0 + $0x370] sm:$0xff] }
  0xcd   :  { %v1555_v60 = vpop.f32.mrf.mxu2  ;;  %v2109_v61 = vpop.f32.mrf.mxu3 }
  0xce   :  { %2449 = vst.msk [vmem:[%s4548_s3 + $0x38] sm:$0xff] %vm2441_vm3, %v2384_v57  ;;  %v1556_v62 = vadd.f32 %v3637_v39, %v1555_v60  ;;  %v2110_v63 = vadd.f32 %v3637_v39, %v2109_v61  ;;  %v385_v0 = vpop.f32.mrf.mxu0  ;;  %v939_v1 = vpop.f32.mrf.mxu1 }
  0xcf   :  { %v386_v6 = vadd.f32 %v3637_v39, %v385_v0  ;;  %v940_v7 = vadd.f32 %v3637_v39, %v939_v1 }
  0xd0   :  { %v1703_v3 = vmax.f32 %v1556_v62, 0.0  ;;  %v2257_v4 = vmax.f32 %v2110_v63, 0.0 }
  0xd1   :  { %v532_v13 = vmax.f32 %v386_v6, 0.0  ;;  %v1086_v14 = vmax.f32 %v940_v7, 0.0 }
  0xd2   :  { %v2321_v5 = vmax.f32 %v1703_v3, %v2257_v4 }
  0xd3   :  { %v1150_v25 = vmax.f32 %v532_v13, %v1086_v14 }
  0xd4   :  { %v2385_v8 = vmax.f32 %v1149_v2, %v2321_v5 }
  0xd5   :  { %v1557_v9 = vpop.f32.mrf.mxu2  ;;  %v2111_v10 = vpop.f32.mrf.mxu3 }
  0xd6   :  { %2450 = vst.msk [vmem:[%s4548_s3 + $0x40] sm:$0xff] %vm2441_vm3, %v2385_v8  ;;  %v1558_v15 = vadd.f32 %v3637_v39, %v1557_v9  ;;  %v2112_v16 = vadd.f32 %v3637_v39, %v2111_v10  ;;  %v388_v17 = vpop.f32.mrf.mxu0  ;;  %v942_v18 = vpop.f32.mrf.mxu1 }
  0xd7   :  { %v389_v23 = vadd.f32 %v3637_v39, %v388_v17  ;;  %v943_v24 = vadd.f32 %v3637_v39, %v942_v18  ;;  %v3394_v17 = vld [vmem:[%s4546_s0 + $0x178] sm:$0xff] }
  0xd8   :  { %v1704_v21 = vmax.f32 %v1558_v15, 0.0  ;;  %v2258_v22 = vmax.f32 %v2112_v16, 0.0  ;;  %v3362_v16 = vld [vmem:[%s4546_s0 + $0x78] sm:$0xff] }
  0xd9   :  { %2655 = vmatmul.msk.bf16.gmra.mxu0 %vm250_vm2, %v3360_v11  ;;  %2879 = vmatmul.msk.bf16.gmra.mxu1 %vm250_vm2, %v3392_v12  ;;  %v533_v28 = vmax.f32 %v389_v23, 0.0  ;;  %v1087_v29 = vmax.f32 %v943_v24, 0.0  ;;  %v3426_v24 = vld [vmem:[%s4546_s0 + $0x278] sm:$0xff] }
  0xda   :  { %v2322_v26 = vmax.f32 %v1704_v21, %v2258_v22  ;;  %3103 = vmatmul.msk.bf16.gmra.mxu2 %vm250_vm2, %v3424_v19  ;;  %3327 = vmatmul.msk.bf16.gmra.mxu3 %vm250_vm2, %v3456_v20 }
  0xdb   :  { %v1151_v36 = vmax.f32 %v533_v28, %v1087_v29 }
  0xdc   :  { %v2386_v27 = vmax.f32 %v1150_v25, %v2322_v26  ;;  %v3458_v25 = vld [vmem:[%s4546_s0 + $0x378] sm:$0xff] }
  0xdd   :  { %v1560_v30 = vpop.f32.mrf.mxu2  ;;  %v2114_v31 = vpop.f32.mrf.mxu3 }
  0xde   :  { %2451 = vst.msk [vmem:[%s4548_s3 + $0x48] sm:$0xff] %vm2441_vm3, %v2386_v27  ;;  %v1561_v32 = vadd.f32 %v3637_v39, %v1560_v30  ;;  %v2115_v33 = vadd.f32 %v3637_v39, %v2114_v31  ;;  %v390_v34 = vpop.f32.mrf.mxu0  ;;  %v944_v35 = vpop.f32.mrf.mxu1 }
  0xdf   :  { %v391_v41 = vadd.f32 %v3637_v39, %v390_v34  ;;  %v945_v42 = vadd.f32 %v3637_v39, %v944_v35 }
  0xe0   :  { %v1705_v37 = vmax.f32 %v1561_v32, 0.0  ;;  %v2259_v38 = vmax.f32 %v2115_v33, 0.0 }
  0xe1   :  { %v534_v48 = vmax.f32 %v391_v41, 0.0  ;;  %v1088_v49 = vmax.f32 %v945_v42, 0.0 }
  0xe2   :  { %v2323_v40 = vmax.f32 %v1705_v37, %v2259_v38 }
  0xe3   :  { %v1152_v60 = vmax.f32 %v534_v48, %v1088_v49 }
  0xe4   :  { %v2387_v43 = vmax.f32 %v1151_v36, %v2323_v40 }
  0xe5   :  { %v1562_v44 = vpop.f32.mrf.mxu2  ;;  %v2116_v45 = vpop.f32.mrf.mxu3 }
  0xe6   :  { %2452 = vst.msk [vmem:[%s4548_s3 + $0x50] sm:$0xff] %vm2441_vm3, %v2387_v43  ;;  %v1563_v50 = vadd.f32 %v3637_v39, %v1562_v44  ;;  %v2117_v51 = vadd.f32 %v3637_v39, %v2116_v45  ;;  %v393_v52 = vpop.f32.mrf.mxu0  ;;  %v947_v53 = vpop.f32.mrf.mxu1 }
  0xe7   :  { %v394_v58 = vadd.f32 %v3637_v39, %v393_v52  ;;  %v948_v59 = vadd.f32 %v3637_v39, %v947_v53  ;;  %v3395_v52 = vld [vmem:[%s4546_s0 + $0x180] sm:$0xff] }
  0xe8   :  { %v1706_v56 = vmax.f32 %v1563_v50, 0.0  ;;  %v2260_v57 = vmax.f32 %v2117_v51, 0.0  ;;  %v3363_v51 = vld [vmem:[%s4546_s0 + $0x80] sm:$0xff] }
  0xe9   :  { %2656 = vmatmul.msk.bf16.gmra.mxu0 %vm250_vm2, %v3361_v46  ;;  %2880 = vmatmul.msk.bf16.gmra.mxu1 %vm250_vm2, %v3393_v47  ;;  %v535_v63 = vmax.f32 %v394_v58, 0.0  ;;  %v1089_v0 = vmax.f32 %v948_v59, 0.0  ;;  %v3427_v59 = vld [vmem:[%s4546_s0 + $0x280] sm:$0xff] }
  0xea   :  { %v2324_v61 = vmax.f32 %v1706_v56, %v2260_v57  ;;  %3104 = vmatmul.msk.bf16.gmra.mxu2 %vm250_vm2, %v3425_v54  ;;  %3328 = vmatmul.msk.bf16.gmra.mxu3 %vm250_vm2, %v3457_v55 }
  0xeb   :  { %v1153_v7 = vmax.f32 %v535_v63, %v1089_v0 }
  0xec   :  { %v2388_v62 = vmax.f32 %v1152_v60, %v2324_v61  ;;  %v3459_v60 = vld [vmem:[%s4546_s0 + $0x380] sm:$0xff] }
  0xed   :  { %v1565_v1 = vpop.f32.mrf.mxu2  ;;  %v2119_v2 = vpop.f32.mrf.mxu3 }
  0xee   :  { %2453 = vst.msk [vmem:[%s4548_s3 + $0x58] sm:$0xff] %vm2441_vm3, %v2388_v62  ;;  %v1566_v3 = vadd.f32 %v3637_v39, %v1565_v1  ;;  %v2120_v4 = vadd.f32 %v3637_v39, %v2119_v2  ;;  %v395_v5 = vpop.f32.mrf.mxu0  ;;  %v949_v6 = vpop.f32.mrf.mxu1 }
  0xef   :  { %v396_v11 = vadd.f32 %v3637_v39, %v395_v5  ;;  %v950_v12 = vadd.f32 %v3637_v39, %v949_v6 }
  0xf0   :  { %v1707_v8 = vmax.f32 %v1566_v3, 0.0  ;;  %v2261_v9 = vmax.f32 %v2120_v4, 0.0 }
  0xf1   :  { %v536_v18 = vmax.f32 %v396_v11, 0.0  ;;  %v1090_v19 = vmax.f32 %v950_v12, 0.0 }
  0xf2   :  { %v2325_v10 = vmax.f32 %v1707_v8, %v2261_v9 }
  0xf3   :  { %v1154_v30 = vmax.f32 %v536_v18, %v1090_v19 }
  0xf4   :  { %v2389_v13 = vmax.f32 %v1153_v7, %v2325_v10 }
  0xf5   :  { %v1567_v14 = vpop.f32.mrf.mxu2  ;;  %v2121_v15 = vpop.f32.mrf.mxu3 }
  0xf6   :  { %2454 = vst.msk [vmem:[%s4548_s3 + $0x60] sm:$0xff] %vm2441_vm3, %v2389_v13  ;;  %v1568_v20 = vadd.f32 %v3637_v39, %v1567_v14  ;;  %v2122_v21 = vadd.f32 %v3637_v39, %v2121_v15  ;;  %v398_v22 = vpop.f32.mrf.mxu0  ;;  %v952_v23 = vpop.f32.mrf.mxu1 }
  0xf7   :  { %v399_v28 = vadd.f32 %v3637_v39, %v398_v22  ;;  %v953_v29 = vadd.f32 %v3637_v39, %v952_v23  ;;  %v3396_v22 = vld [vmem:[%s4546_s0 + $0x188] sm:$0xff] }
  0xf8   :  { %v1708_v26 = vmax.f32 %v1568_v20, 0.0  ;;  %v2262_v27 = vmax.f32 %v2122_v21, 0.0  ;;  %v3364_v21 = vld [vmem:[%s4546_s0 + $0x88] sm:$0xff] }
  0xf9   :  { %2657 = vmatmul.msk.bf16.gmra.mxu0 %vm250_vm2, %v3362_v16  ;;  %2881 = vmatmul.msk.bf16.gmra.mxu1 %vm250_vm2, %v3394_v17  ;;  %v537_v33 = vmax.f32 %v399_v28, 0.0  ;;  %v1091_v34 = vmax.f32 %v953_v29, 0.0  ;;  %v3428_v29 = vld [vmem:[%s4546_s0 + $0x288] sm:$0xff] }
  0xfa   :  { %v2326_v31 = vmax.f32 %v1708_v26, %v2262_v27  ;;  %3105 = vmatmul.msk.bf16.gmra.mxu2 %vm250_vm2, %v3426_v24  ;;  %3329 = vmatmul.msk.bf16.gmra.mxu3 %vm250_vm2, %v3458_v25 }
  0xfb   :  { %v1155_v42 = vmax.f32 %v537_v33, %v1091_v34 }
  0xfc   :  { %v2390_v32 = vmax.f32 %v1154_v30, %v2326_v31  ;;  %v3460_v30 = vld [vmem:[%s4546_s0 + $0x388] sm:$0xff] }
  0xfd   :  { %v1570_v35 = vpop.f32.mrf.mxu2  ;;  %v2124_v36 = vpop.f32.mrf.mxu3 }
  0xfe   :  { %2455 = vst.msk [vmem:[%s4548_s3 + $0x68] sm:$0xff] %vm2441_vm3, %v2390_v32  ;;  %v1571_v37 = vadd.f32 %v3637_v39, %v1570_v35  ;;  %v2125_v38 = vadd.f32 %v3637_v39, %v2124_v36  ;;  %v400_v40 = vpop.f32.mrf.mxu0  ;;  %v954_v41 = vpop.f32.mrf.mxu1 }
  0xff   :  { %v401_v46 = vadd.f32 %v3637_v39, %v400_v40  ;;  %v955_v47 = vadd.f32 %v3637_v39, %v954_v41 }
 0x100   :  { %v1709_v43 = vmax.f32 %v1571_v37, 0.0  ;;  %v2263_v44 = vmax.f32 %v2125_v38, 0.0 }
 0x101   :  { %v538_v53 = vmax.f32 %v401_v46, 0.0  ;;  %v1092_v54 = vmax.f32 %v955_v47, 0.0 }
 0x102   :  { %v2327_v45 = vmax.f32 %v1709_v43, %v2263_v44 }
 0x103   :  { %v1156_v1 = vmax.f32 %v538_v53, %v1092_v54 }
 0x104   :  { %v2391_v48 = vmax.f32 %v1155_v42, %v2327_v45 }
 0x105   :  { %v1572_v49 = vpop.f32.mrf.mxu2  ;;  %v2126_v50 = vpop.f32.mrf.mxu3 }
 0x106   :  { %2456 = vst.msk [vmem:[%s4548_s3 + $0x70] sm:$0xff] %vm2441_vm3, %v2391_v48  ;;  %v1573_v55 = vadd.f32 %v3637_v39, %v1572_v49  ;;  %v2127_v56 = vadd.f32 %v3637_v39, %v2126_v50  ;;  %v403_v57 = vpop.f32.mrf.mxu0  ;;  %v957_v58 = vpop.f32.mrf.mxu1 }
 0x107   :  { %v404_v63 = vadd.f32 %v3637_v39, %v403_v57  ;;  %v958_v0 = vadd.f32 %v3637_v39, %v957_v58  ;;  %v3397_v57 = vld [vmem:[%s4546_s0 + $0x190] sm:$0xff] }
 0x108   :  { %v1710_v61 = vmax.f32 %v1573_v55, 0.0  ;;  %v2264_v62 = vmax.f32 %v2127_v56, 0.0  ;;  %v3365_v56 = vld [vmem:[%s4546_s0 + $0x90] sm:$0xff] }
 0x109   :  { %2658 = vmatmul.msk.bf16.gmra.mxu0 %vm250_vm2, %v3363_v51  ;;  %2882 = vmatmul.msk.bf16.gmra.mxu1 %vm250_vm2, %v3395_v52  ;;  %v539_v4 = vmax.f32 %v404_v63, 0.0  ;;  %v1093_v5 = vmax.f32 %v958_v0, 0.0  ;;  %v3429_v0 = vld [vmem:[%s4546_s0 + $0x290] sm:$0xff] }
 0x10a   :  { %v2328_v2 = vmax.f32 %v1710_v61, %v2264_v62  ;;  %3106 = vmatmul.msk.bf16.gmra.mxu2 %vm250_vm2, %v3427_v59  ;;  %3330 = vmatmul.msk.bf16.gmra.mxu3 %vm250_vm2, %v3459_v60 }
 0x10b   :  { %v1157_v12 = vmax.f32 %v539_v4, %v1093_v5 }
 0x10c   :  { %v2392_v3 = vmax.f32 %v1156_v1, %v2328_v2  ;;  %v3461_v1 = vld [vmem:[%s4546_s0 + $0x390] sm:$0xff] }
 0x10d   :  { %v1575_v6 = vpop.f32.mrf.mxu2  ;;  %v2129_v7 = vpop.f32.mrf.mxu3 }
 0x10e   :  { %2457 = vst.msk [vmem:[%s4548_s3 + $0x78] sm:$0xff] %vm2441_vm3, %v2392_v3  ;;  %v1576_v8 = vadd.f32 %v3637_v39, %v1575_v6  ;;  %v2130_v9 = vadd.f32 %v3637_v39, %v2129_v7  ;;  %v405_v10 = vpop.f32.mrf.mxu0  ;;  %v959_v11 = vpop.f32.mrf.mxu1 }
 0x10f   :  { %v406_v16 = vadd.f32 %v3637_v39, %v405_v10  ;;  %v960_v17 = vadd.f32 %v3637_v39, %v959_v11 }
 0x110   :  { %v1711_v13 = vmax.f32 %v1576_v8, 0.0  ;;  %v2265_v14 = vmax.f32 %v2130_v9, 0.0 }
 0x111   :  { %v540_v23 = vmax.f32 %v406_v16, 0.0  ;;  %v1094_v24 = vmax.f32 %v960_v17, 0.0 }
 0x112   :  { %v2329_v15 = vmax.f32 %v1711_v13, %v2265_v14 }
 0x113   :  { %v1158_v35 = vmax.f32 %v540_v23, %v1094_v24 }
 0x114   :  { %v2393_v18 = vmax.f32 %v1157_v12, %v2329_v15 }
 0x115   :  { %v1577_v19 = vpop.f32.mrf.mxu2  ;;  %v2131_v20 = vpop.f32.mrf.mxu3 }
 0x116   :  { %2458 = vst.msk [vmem:[%s4548_s3 + $0x80] sm:$0xff] %vm2441_vm3, %v2393_v18  ;;  %v1578_v25 = vadd.f32 %v3637_v39, %v1577_v19  ;;  %v2132_v26 = vadd.f32 %v3637_v39, %v2131_v20  ;;  %v408_v27 = vpop.f32.mrf.mxu0  ;;  %v962_v28 = vpop.f32.mrf.mxu1 }
 0x117   :  { %v409_v33 = vadd.f32 %v3637_v39, %v408_v27  ;;  %v963_v34 = vadd.f32 %v3637_v39, %v962_v28  ;;  %v3398_v27 = vld [vmem:[%s4546_s0 + $0x198] sm:$0xff] }
 0x118   :  { %v1712_v31 = vmax.f32 %v1578_v25, 0.0  ;;  %v2266_v32 = vmax.f32 %v2132_v26, 0.0  ;;  %v3366_v26 = vld [vmem:[%s4546_s0 + $0x98] sm:$0xff] }
 0x119   :  { %2659 = vmatmul.msk.bf16.gmra.mxu0 %vm250_vm2, %v3364_v21  ;;  %2883 = vmatmul.msk.bf16.gmra.mxu1 %vm250_vm2, %v3396_v22  ;;  %v541_v38 = vmax.f32 %v409_v33, 0.0  ;;  %v1095_v40 = vmax.f32 %v963_v34, 0.0  ;;  %v3430_v34 = vld [vmem:[%s4546_s0 + $0x298] sm:$0xff] }
 0x11a   :  { %v2330_v36 = vmax.f32 %v1712_v31, %v2266_v32  ;;  %3107 = vmatmul.msk.bf16.gmra.mxu2 %vm250_vm2, %v3428_v29  ;;  %3331 = vmatmul.msk.bf16.gmra.mxu3 %vm250_vm2, %v3460_v30 }
 0x11b   :  { %v1159_v47 = vmax.f32 %v541_v38, %v1095_v40 }
 0x11c   :  { %v2394_v37 = vmax.f32 %v1158_v35, %v2330_v36  ;;  %v3462_v35 = vld [vmem:[%s4546_s0 + $0x398] sm:$0xff] }
 0x11d   :  { %v1580_v41 = vpop.f32.mrf.mxu2  ;;  %v2134_v42 = vpop.f32.mrf.mxu3 }
 0x11e   :  { %2459 = vst.msk [vmem:[%s4548_s3 + $0x88] sm:$0xff] %vm2441_vm3, %v2394_v37  ;;  %v1581_v43 = vadd.f32 %v3637_v39, %v1580_v41  ;;  %v2135_v44 = vadd.f32 %v3637_v39, %v2134_v42  ;;  %v410_v45 = vpop.f32.mrf.mxu0  ;;  %v964_v46 = vpop.f32.mrf.mxu1 }
 0x11f   :  { %v411_v51 = vadd.f32 %v3637_v39, %v410_v45  ;;  %v965_v52 = vadd.f32 %v3637_v39, %v964_v46 }
 0x120   :  { %v1713_v48 = vmax.f32 %v1581_v43, 0.0  ;;  %v2267_v49 = vmax.f32 %v2135_v44, 0.0 }
 0x121   :  { %v542_v58 = vmax.f32 %v411_v51, 0.0  ;;  %v1096_v59 = vmax.f32 %v965_v52, 0.0 }
 0x122   :  { %v2331_v50 = vmax.f32 %v1713_v48, %v2267_v49 }
 0x123   :  { %v1160_v6 = vmax.f32 %v542_v58, %v1096_v59 }
 0x124   :  { %v2395_v53 = vmax.f32 %v1159_v47, %v2331_v50 }
 0x125   :  { %v1582_v54 = vpop.f32.mrf.mxu2  ;;  %v2136_v55 = vpop.f32.mrf.mxu3 }
 0x126   :  { %2460 = vst.msk [vmem:[%s4548_s3 + $0x90] sm:$0xff] %vm2441_vm3, %v2395_v53  ;;  %v1583_v60 = vadd.f32 %v3637_v39, %v1582_v54  ;;  %v2137_v61 = vadd.f32 %v3637_v39, %v2136_v55  ;;  %v413_v62 = vpop.f32.mrf.mxu0  ;;  %v967_v63 = vpop.f32.mrf.mxu1 }
 0x127   :  { %v414_v4 = vadd.f32 %v3637_v39, %v413_v62  ;;  %v968_v5 = vadd.f32 %v3637_v39, %v967_v63  ;;  %v3399_v62 = vld [vmem:[%s4546_s0 + $0x1a0] sm:$0xff] }
 0x128   :  { %v1714_v2 = vmax.f32 %v1583_v60, 0.0  ;;  %v2268_v3 = vmax.f32 %v2137_v61, 0.0  ;;  %v3367_v61 = vld [vmem:[%s4546_s0 + $0xa0] sm:$0xff] }
 0x129   :  { %2660 = vmatmul.msk.bf16.gmra.mxu0 %vm250_vm2, %v3365_v56  ;;  %2884 = vmatmul.msk.bf16.gmra.mxu1 %vm250_vm2, %v3397_v57  ;;  %v543_v9 = vmax.f32 %v414_v4, 0.0  ;;  %v1097_v10 = vmax.f32 %v968_v5, 0.0  ;;  %v3431_v5 = vld [vmem:[%s4546_s0 + $0x2a0] sm:$0xff] }
 0x12a   :  { %v2332_v7 = vmax.f32 %v1714_v2, %v2268_v3  ;;  %3108 = vmatmul.msk.bf16.gmra.mxu2 %vm250_vm2, %v3429_v0  ;;  %3332 = vmatmul.msk.bf16.gmra.mxu3 %vm250_vm2, %v3461_v1 }
 0x12b   :  { %v1161_v17 = vmax.f32 %v543_v9, %v1097_v10 }
 0x12c   :  { %v2396_v8 = vmax.f32 %v1160_v6, %v2332_v7  ;;  %v3463_v6 = vld [vmem:[%s4546_s0 + $0x3a0] sm:$0xff] }
 0x12d   :  { %v1585_v11 = vpop.f32.mrf.mxu2  ;;  %v2139_v12 = vpop.f32.mrf.mxu3 }
 0x12e   :  { %2461 = vst.msk [vmem:[%s4548_s3 + $0x98] sm:$0xff] %vm2441_vm3, %v2396_v8  ;;  %v1586_v13 = vadd.f32 %v3637_v39, %v1585_v11  ;;  %v2140_v14 = vadd.f32 %v3637_v39, %v2139_v12  ;;  %v415_v15 = vpop.f32.mrf.mxu0  ;;  %v969_v16 = vpop.f32.mrf.mxu1 }
 0x12f   :  { %v416_v21 = vadd.f32 %v3637_v39, %v415_v15  ;;  %v970_v22 = vadd.f32 %v3637_v39, %v969_v16 }
 0x130   :  { %v1715_v18 = vmax.f32 %v1586_v13, 0.0  ;;  %v2269_v19 = vmax.f32 %v2140_v14, 0.0 }
 0x131   :  { %v544_v28 = vmax.f32 %v416_v21, 0.0  ;;  %v1098_v29 = vmax.f32 %v970_v22, 0.0 }
 0x132   :  { %v2333_v20 = vmax.f32 %v1715_v18, %v2269_v19 }
 0x133   :  { %v1162_v41 = vmax.f32 %v544_v28, %v1098_v29 }
 0x134   :  { %v2397_v23 = vmax.f32 %v1161_v17, %v2333_v20 }
 0x135   :  { %v1587_v24 = vpop.f32.mrf.mxu2  ;;  %v2141_v25 = vpop.f32.mrf.mxu3 }
 0x136   :  { %2462 = vst.msk [vmem:[%s4548_s3 + $0xa0] sm:$0xff] %vm2441_vm3, %v2397_v23  ;;  %v1588_v30 = vadd.f32 %v3637_v39, %v1587_v24  ;;  %v2142_v31 = vadd.f32 %v3637_v39, %v2141_v25  ;;  %v418_v32 = vpop.f32.mrf.mxu0  ;;  %v972_v33 = vpop.f32.mrf.mxu1 }
 0x137   :  { %v419_v38 = vadd.f32 %v3637_v39, %v418_v32  ;;  %v973_v40 = vadd.f32 %v3637_v39, %v972_v33  ;;  %v3400_v32 = vld [vmem:[%s4546_s0 + $0x1a8] sm:$0xff] }
 0x138   :  { %v1716_v36 = vmax.f32 %v1588_v30, 0.0  ;;  %v2270_v37 = vmax.f32 %v2142_v31, 0.0  ;;  %v3368_v31 = vld [vmem:[%s4546_s0 + $0xa8] sm:$0xff] }
 0x139   :  { %2661 = vmatmul.msk.bf16.gmra.mxu0 %vm250_vm2, %v3366_v26  ;;  %2885 = vmatmul.msk.bf16.gmra.mxu1 %vm250_vm2, %v3398_v27  ;;  %v545_v44 = vmax.f32 %v419_v38, 0.0  ;;  %v1099_v45 = vmax.f32 %v973_v40, 0.0  ;;  %v3432_v40 = vld [vmem:[%s4546_s0 + $0x2a8] sm:$0xff] }
 0x13a   :  { %v2334_v42 = vmax.f32 %v1716_v36, %v2270_v37  ;;  %3109 = vmatmul.msk.bf16.gmra.mxu2 %vm250_vm2, %v3430_v34  ;;  %3333 = vmatmul.msk.bf16.gmra.mxu3 %vm250_vm2, %v3462_v35 }
 0x13b   :  { %v1163_v52 = vmax.f32 %v545_v44, %v1099_v45 }
 0x13c   :  { %v2398_v43 = vmax.f32 %v1162_v41, %v2334_v42  ;;  %v3464_v41 = vld [vmem:[%s4546_s0 + $0x3a8] sm:$0xff] }
 0x13d   :  { %v1590_v46 = vpop.f32.mrf.mxu2  ;;  %v2144_v47 = vpop.f32.mrf.mxu3 }
 0x13e   :  { %2463 = vst.msk [vmem:[%s4548_s3 + $0xa8] sm:$0xff] %vm2441_vm3, %v2398_v43  ;;  %v1591_v48 = vadd.f32 %v3637_v39, %v1590_v46  ;;  %v2145_v49 = vadd.f32 %v3637_v39, %v2144_v47  ;;  %v420_v50 = vpop.f32.mrf.mxu0  ;;  %v974_v51 = vpop.f32.mrf.mxu1 }
 0x13f   :  { %v421_v56 = vadd.f32 %v3637_v39, %v420_v50  ;;  %v975_v57 = vadd.f32 %v3637_v39, %v974_v51 }
 0x140   :  { %v1717_v53 = vmax.f32 %v1591_v48, 0.0  ;;  %v2271_v54 = vmax.f32 %v2145_v49, 0.0 }
 0x141   :  { %v546_v63 = vmax.f32 %v421_v56, 0.0  ;;  %v1100_v0 = vmax.f32 %v975_v57, 0.0 }
 0x142   :  { %v2335_v55 = vmax.f32 %v1717_v53, %v2271_v54 }
 0x143   :  { %v1164_v11 = vmax.f32 %v546_v63, %v1100_v0 }
 0x144   :  { %v2399_v58 = vmax.f32 %v1163_v52, %v2335_v55 }
 0x145   :  { %v1592_v59 = vpop.f32.mrf.mxu2  ;;  %v2146_v60 = vpop.f32.mrf.mxu3 }
 0x146   :  { %2464 = vst.msk [vmem:[%s4548_s3 + $0xb0] sm:$0xff] %vm2441_vm3, %v2399_v58  ;;  %v1593_v1 = vadd.f32 %v3637_v39, %v1592_v59  ;;  %v2147_v2 = vadd.f32 %v3637_v39, %v2146_v60  ;;  %v423_v3 = vpop.f32.mrf.mxu0  ;;  %v977_v4 = vpop.f32.mrf.mxu1 }
 0x147   :  { %v424_v9 = vadd.f32 %v3637_v39, %v423_v3  ;;  %v978_v10 = vadd.f32 %v3637_v39, %v977_v4  ;;  %v3401_v3 = vld [vmem:[%s4546_s0 + $0x1b0] sm:$0xff] }
 0x148   :  { %v1718_v7 = vmax.f32 %v1593_v1, 0.0  ;;  %v2272_v8 = vmax.f32 %v2147_v2, 0.0  ;;  %v3369_v2 = vld [vmem:[%s4546_s0 + $0xb0] sm:$0xff] }
 0x149   :  { %2662 = vmatmul.msk.bf16.gmra.mxu0 %vm250_vm2, %v3367_v61  ;;  %2886 = vmatmul.msk.bf16.gmra.mxu1 %vm250_vm2, %v3399_v62  ;;  %v547_v14 = vmax.f32 %v424_v9, 0.0  ;;  %v1101_v15 = vmax.f32 %v978_v10, 0.0  ;;  %v3433_v10 = vld [vmem:[%s4546_s0 + $0x2b0] sm:$0xff] }
 0x14a   :  { %v2336_v12 = vmax.f32 %v1718_v7, %v2272_v8  ;;  %3110 = vmatmul.msk.bf16.gmra.mxu2 %vm250_vm2, %v3431_v5  ;;  %3334 = vmatmul.msk.bf16.gmra.mxu3 %vm250_vm2, %v3463_v6 }
 0x14b   :  { %v1165_v22 = vmax.f32 %v547_v14, %v1101_v15 }
 0x14c   :  { %v2400_v13 = vmax.f32 %v1164_v11, %v2336_v12  ;;  %v3465_v11 = vld [vmem:[%s4546_s0 + $0x3b0] sm:$0xff] }
 0x14d   :  { %v1595_v16 = vpop.f32.mrf.mxu2  ;;  %v2149_v17 = vpop.f32.mrf.mxu3 }
 0x14e   :  { %2465 = vst.msk [vmem:[%s4548_s3 + $0xb8] sm:$0xff] %vm2441_vm3, %v2400_v13  ;;  %v1596_v18 = vadd.f32 %v3637_v39, %v1595_v16  ;;  %v2150_v19 = vadd.f32 %v3637_v39, %v2149_v17  ;;  %v425_v20 = vpop.f32.mrf.mxu0  ;;  %v979_v21 = vpop.f32.mrf.mxu1 }
 0x14f   :  { %v426_v26 = vadd.f32 %v3637_v39, %v425_v20  ;;  %v980_v27 = vadd.f32 %v3637_v39, %v979_v21  ;;  %v4058_v39 = vld [vmem:[%s4547_s2] ss:$0 sm:$0xff] }
 0x150   :  { %v1719_v23 = vmax.f32 %v1596_v18, 0.0  ;;  %v2273_v24 = vmax.f32 %v2150_v19, 0.0 }
 0x151   :  { %v548_v33 = vmax.f32 %v426_v26, 0.0  ;;  %v1102_v34 = vmax.f32 %v980_v27, 0.0 }
 0x152   :  { %v2337_v25 = vmax.f32 %v1719_v23, %v2273_v24 }
 0x153   :  { %v1166_v46 = vmax.f32 %v548_v33, %v1102_v34 }
 0x154   :  { %v2401_v28 = vmax.f32 %v1165_v22, %v2337_v25 }
 0x155   :  { %v1597_v29 = vpop.f32.mrf.mxu2  ;;  %v2151_v30 = vpop.f32.mrf.mxu3 }
 0x156   :  { %2466 = vst.msk [vmem:[%s4548_s3 + $0xc0] sm:$0xff] %vm2441_vm3, %v2401_v28  ;;  %v1598_v35 = vadd.f32 %v4058_v39, %v1597_v29  ;;  %v2152_v36 = vadd.f32 %v4058_v39, %v2151_v30  ;;  %v428_v37 = vpop.f32.mrf.mxu0  ;;  %v982_v38 = vpop.f32.mrf.mxu1 }
 0x157   :  { %v429_v44 = vadd.f32 %v4058_v39, %v428_v37  ;;  %v983_v45 = vadd.f32 %v4058_v39, %v982_v38  ;;  %v3402_v37 = vld [vmem:[%s4546_s0 + $0x1b8] sm:$0xff] }
 0x158   :  { %v1720_v42 = vmax.f32 %v1598_v35, 0.0  ;;  %v2274_v43 = vmax.f32 %v2152_v36, 0.0  ;;  %v3370_v36 = vld [vmem:[%s4546_s0 + $0xb8] sm:$0xff] }
 0x159   :  { %2663 = vmatmul.msk.bf16.gmra.mxu0 %vm250_vm2, %v3368_v31  ;;  %2887 = vmatmul.msk.bf16.gmra.mxu1 %vm250_vm2, %v3400_v32  ;;  %v549_v49 = vmax.f32 %v429_v44, 0.0  ;;  %v1103_v50 = vmax.f32 %v983_v45, 0.0  ;;  %v3434_v45 = vld [vmem:[%s4546_s0 + $0x2b8] sm:$0xff] }
 0x15a   :  { %v2338_v47 = vmax.f32 %v1720_v42, %v2274_v43  ;;  %3111 = vmatmul.msk.bf16.gmra.mxu2 %vm250_vm2, %v3432_v40  ;;  %3335 = vmatmul.msk.bf16.gmra.mxu3 %vm250_vm2, %v3464_v41 }
 0x15b   :  { %v1167_v57 = vmax.f32 %v549_v49, %v1103_v50 }
 0x15c   :  { %v2402_v48 = vmax.f32 %v1166_v46, %v2338_v47  ;;  %v3466_v46 = vld [vmem:[%s4546_s0 + $0x3b8] sm:$0xff] }
 0x15d   :  { %v1600_v51 = vpop.f32.mrf.mxu2  ;;  %v2154_v52 = vpop.f32.mrf.mxu3 }
 0x15e   :  { %2467 = vst.msk [vmem:[%s4548_s3 + $0xc8] sm:$0xff] %vm2441_vm3, %v2402_v48  ;;  %v1601_v53 = vadd.f32 %v4058_v39, %v1600_v51  ;;  %v2155_v54 = vadd.f32 %v4058_v39, %v2154_v52  ;;  %v430_v55 = vpop.f32.mrf.mxu0  ;;  %v984_v56 = vpop.f32.mrf.mxu1 }
 0x15f   :  { %v431_v61 = vadd.f32 %v4058_v39, %v430_v55  ;;  %v985_v62 = vadd.f32 %v4058_v39, %v984_v56 }
 0x160   :  { %v1721_v58 = vmax.f32 %v1601_v53, 0.0  ;;  %v2275_v59 = vmax.f32 %v2155_v54, 0.0 }
 0x161   :  { %v550_v4 = vmax.f32 %v431_v61, 0.0  ;;  %v1104_v5 = vmax.f32 %v985_v62, 0.0 }
 0x162   :  { %v2339_v60 = vmax.f32 %v1721_v58, %v2275_v59 }
 0x163   :  { %v1168_v16 = vmax.f32 %v550_v4, %v1104_v5 }
 0x164   :  { %v2403_v63 = vmax.f32 %v1167_v57, %v2339_v60 }
 0x165   :  { %v1602_v0 = vpop.f32.mrf.mxu2  ;;  %v2156_v1 = vpop.f32.mrf.mxu3 }
 0x166   :  { %2468 = vst.msk [vmem:[%s4548_s3 + $0xd0] sm:$0xff] %vm2441_vm3, %v2403_v63  ;;  %v1603_v6 = vadd.f32 %v4058_v39, %v1602_v0  ;;  %v2157_v7 = vadd.f32 %v4058_v39, %v2156_v1  ;;  %v433_v8 = vpop.f32.mrf.mxu0  ;;  %v987_v9 = vpop.f32.mrf.mxu1 }
 0x167   :  { %v434_v14 = vadd.f32 %v4058_v39, %v433_v8  ;;  %v988_v15 = vadd.f32 %v4058_v39, %v987_v9  ;;  %v3403_v8 = vld [vmem:[%s4546_s0 + $0x1c0] sm:$0xff] }
 0x168   :  { %v1722_v12 = vmax.f32 %v1603_v6, 0.0  ;;  %v2276_v13 = vmax.f32 %v2157_v7, 0.0  ;;  %v3371_v7 = vld [vmem:[%s4546_s0 + $0xc0] sm:$0xff] }
 0x169   :  { %2664 = vmatmul.msk.bf16.gmra.mxu0 %vm250_vm2, %v3369_v2  ;;  %2888 = vmatmul.msk.bf16.gmra.mxu1 %vm250_vm2, %v3401_v3  ;;  %v551_v19 = vmax.f32 %v434_v14, 0.0  ;;  %v1105_v20 = vmax.f32 %v988_v15, 0.0  ;;  %v3435_v15 = vld [vmem:[%s4546_s0 + $0x2c0] sm:$0xff] }
 0x16a   :  { %v2340_v17 = vmax.f32 %v1722_v12, %v2276_v13  ;;  %3112 = vmatmul.msk.bf16.gmra.mxu2 %vm250_vm2, %v3433_v10  ;;  %3336 = vmatmul.msk.bf16.gmra.mxu3 %vm250_vm2, %v3465_v11 }
 0x16b   :  { %v1169_v27 = vmax.f32 %v551_v19, %v1105_v20 }
 0x16c   :  { %v2404_v18 = vmax.f32 %v1168_v16, %v2340_v17  ;;  %v3467_v16 = vld [vmem:[%s4546_s0 + $0x3c0] sm:$0xff] }
 0x16d   :  { %v1605_v21 = vpop.f32.mrf.mxu2  ;;  %v2159_v22 = vpop.f32.mrf.mxu3 }
 0x16e   :  { %2469 = vst.msk [vmem:[%s4548_s3 + $0xd8] sm:$0xff] %vm2441_vm3, %v2404_v18  ;;  %v1606_v23 = vadd.f32 %v4058_v39, %v1605_v21  ;;  %v2160_v24 = vadd.f32 %v4058_v39, %v2159_v22  ;;  %v435_v25 = vpop.f32.mrf.mxu0  ;;  %v989_v26 = vpop.f32.mrf.mxu1 }
 0x16f   :  { %v436_v31 = vadd.f32 %v4058_v39, %v435_v25  ;;  %v990_v32 = vadd.f32 %v4058_v39, %v989_v26 }
 0x170   :  { %v1723_v28 = vmax.f32 %v1606_v23, 0.0  ;;  %v2277_v29 = vmax.f32 %v2160_v24, 0.0 }
 0x171   :  { %v552_v38 = vmax.f32 %v436_v31, 0.0  ;;  %v1106_v40 = vmax.f32 %v990_v32, 0.0 }
 0x172   :  { %v2341_v30 = vmax.f32 %v1723_v28, %v2277_v29 }
 0x173   :  { %v1170_v51 = vmax.f32 %v552_v38, %v1106_v40 }
 0x174   :  { %v2405_v33 = vmax.f32 %v1169_v27, %v2341_v30 }
 0x175   :  { %v1607_v34 = vpop.f32.mrf.mxu2  ;;  %v2161_v35 = vpop.f32.mrf.mxu3 }
 0x176   :  { %2470 = vst.msk [vmem:[%s4548_s3 + $0xe0] sm:$0xff] %vm2441_vm3, %v2405_v33  ;;  %v1608_v41 = vadd.f32 %v4058_v39, %v1607_v34  ;;  %v2162_v42 = vadd.f32 %v4058_v39, %v2161_v35  ;;  %v438_v43 = vpop.f32.mrf.mxu0  ;;  %v992_v44 = vpop.f32.mrf.mxu1 }
 0x177   :  { %v439_v49 = vadd.f32 %v4058_v39, %v438_v43  ;;  %v993_v50 = vadd.f32 %v4058_v39, %v992_v44  ;;  %v3404_v43 = vld [vmem:[%s4546_s0 + $0x1c8] sm:$0xff] }
 0x178   :  { %v1724_v47 = vmax.f32 %v1608_v41, 0.0  ;;  %v2278_v48 = vmax.f32 %v2162_v42, 0.0  ;;  %v3372_v42 = vld [vmem:[%s4546_s0 + $0xc8] sm:$0xff] }
 0x179   :  { %2665 = vmatmul.msk.bf16.gmra.mxu0 %vm250_vm2, %v3370_v36  ;;  %2889 = vmatmul.msk.bf16.gmra.mxu1 %vm250_vm2, %v3402_v37  ;;  %v553_v54 = vmax.f32 %v439_v49, 0.0  ;;  %v1107_v55 = vmax.f32 %v993_v50, 0.0  ;;  %v3436_v50 = vld [vmem:[%s4546_s0 + $0x2c8] sm:$0xff] }
 0x17a   :  { %v2342_v52 = vmax.f32 %v1724_v47, %v2278_v48  ;;  %3113 = vmatmul.msk.bf16.gmra.mxu2 %vm250_vm2, %v3434_v45  ;;  %3337 = vmatmul.msk.bf16.gmra.mxu3 %vm250_vm2, %v3466_v46 }
 0x17b   :  { %v1171_v62 = vmax.f32 %v553_v54, %v1107_v55 }
 0x17c   :  { %v2406_v53 = vmax.f32 %v1170_v51, %v2342_v52  ;;  %v3468_v51 = vld [vmem:[%s4546_s0 + $0x3c8] sm:$0xff] }
 0x17d   :  { %v1610_v56 = vpop.f32.mrf.mxu2  ;;  %v2164_v57 = vpop.f32.mrf.mxu3 }
 0x17e   :  { %2471 = vst.msk [vmem:[%s4548_s3 + $0xe8] sm:$0xff] %vm2441_vm3, %v2406_v53  ;;  %v1611_v58 = vadd.f32 %v4058_v39, %v1610_v56  ;;  %v2165_v59 = vadd.f32 %v4058_v39, %v2164_v57  ;;  %v440_v60 = vpop.f32.mrf.mxu0  ;;  %v994_v61 = vpop.f32.mrf.mxu1 }
 0x17f   :  { %v441_v2 = vadd.f32 %v4058_v39, %v440_v60  ;;  %v995_v3 = vadd.f32 %v4058_v39, %v994_v61 }
 0x180   :  { %v1725_v63 = vmax.f32 %v1611_v58, 0.0  ;;  %v2279_v0 = vmax.f32 %v2165_v59, 0.0 }
 0x181   :  { %v554_v9 = vmax.f32 %v441_v2, 0.0  ;;  %v1108_v10 = vmax.f32 %v995_v3, 0.0 }
 0x182   :  { %v2343_v1 = vmax.f32 %v1725_v63, %v2279_v0 }
 0x183   :  { %v1172_v21 = vmax.f32 %v554_v9, %v1108_v10 }
 0x184   :  { %v2407_v4 = vmax.f32 %v1171_v62, %v2343_v1 }
 0x185   :  { %v1612_v5 = vpop.f32.mrf.mxu2  ;;  %v2166_v6 = vpop.f32.mrf.mxu3 }
 0x186   :  { %2472 = vst.msk [vmem:[%s4548_s3 + $0xf0] sm:$0xff] %vm2441_vm3, %v2407_v4  ;;  %v1613_v11 = vadd.f32 %v4058_v39, %v1612_v5  ;;  %v2167_v12 = vadd.f32 %v4058_v39, %v2166_v6  ;;  %v443_v13 = vpop.f32.mrf.mxu0  ;;  %v997_v14 = vpop.f32.mrf.mxu1 }
 0x187   :  { %v444_v19 = vadd.f32 %v4058_v39, %v443_v13  ;;  %v998_v20 = vadd.f32 %v4058_v39, %v997_v14  ;;  %v3405_v13 = vld [vmem:[%s4546_s0 + $0x1d0] sm:$0xff] }
 0x188   :  { %v1726_v17 = vmax.f32 %v1613_v11, 0.0  ;;  %v2280_v18 = vmax.f32 %v2167_v12, 0.0  ;;  %v3373_v12 = vld [vmem:[%s4546_s0 + $0xd0] sm:$0xff] }
 0x189   :  { %2666 = vmatmul.msk.bf16.gmra.mxu0 %vm250_vm2, %v3371_v7  ;;  %2890 = vmatmul.msk.bf16.gmra.mxu1 %vm250_vm2, %v3403_v8  ;;  %v555_v24 = vmax.f32 %v444_v19, 0.0  ;;  %v1109_v25 = vmax.f32 %v998_v20, 0.0  ;;  %v3437_v20 = vld [vmem:[%s4546_s0 + $0x2d0] sm:$0xff] }
 0x18a   :  { %v2344_v22 = vmax.f32 %v1726_v17, %v2280_v18  ;;  %3114 = vmatmul.msk.bf16.gmra.mxu2 %vm250_vm2, %v3435_v15  ;;  %3338 = vmatmul.msk.bf16.gmra.mxu3 %vm250_vm2, %v3467_v16 }
 0x18b   :  { %v1173_v32 = vmax.f32 %v555_v24, %v1109_v25 }
 0x18c   :  { %v2408_v23 = vmax.f32 %v1172_v21, %v2344_v22  ;;  %v3469_v21 = vld [vmem:[%s4546_s0 + $0x3d0] sm:$0xff] }
 0x18d   :  { %v1615_v26 = vpop.f32.mrf.mxu2  ;;  %v2169_v27 = vpop.f32.mrf.mxu3 }
 0x18e   :  { %2473 = vst.msk [vmem:[%s4548_s3 + $0xf8] sm:$0xff] %vm2441_vm3, %v2408_v23  ;;  %v1616_v28 = vadd.f32 %v4058_v39, %v1615_v26  ;;  %v2170_v29 = vadd.f32 %v4058_v39, %v2169_v27  ;;  %v445_v30 = vpop.f32.mrf.mxu0  ;;  %v999_v31 = vpop.f32.mrf.mxu1 }
 0x18f   :  { %v446_v36 = vadd.f32 %v4058_v39, %v445_v30  ;;  %v1000_v37 = vadd.f32 %v4058_v39, %v999_v31 }
 0x190   :  { %v1727_v33 = vmax.f32 %v1616_v28, 0.0  ;;  %v2281_v34 = vmax.f32 %v2170_v29, 0.0 }
 0x191   :  { %v556_v44 = vmax.f32 %v446_v36, 0.0  ;;  %v1110_v45 = vmax.f32 %v1000_v37, 0.0 }
 0x192   :  { %v2345_v35 = vmax.f32 %v1727_v33, %v2281_v34 }
 0x193   :  { %v1174_v56 = vmax.f32 %v556_v44, %v1110_v45 }
 0x194   :  { %v2409_v38 = vmax.f32 %v1173_v32, %v2345_v35 }
 0x195   :  { %v1617_v40 = vpop.f32.mrf.mxu2  ;;  %v2171_v41 = vpop.f32.mrf.mxu3 }
 0x196   :  { %2474 = vst.msk [vmem:[%s4548_s3 + $0x100] sm:$0xff] %vm2441_vm3, %v2409_v38  ;;  %v1618_v46 = vadd.f32 %v4058_v39, %v1617_v40  ;;  %v2172_v47 = vadd.f32 %v4058_v39, %v2171_v41  ;;  %v448_v48 = vpop.f32.mrf.mxu0  ;;  %v1002_v49 = vpop.f32.mrf.mxu1 }
 0x197   :  { %v449_v54 = vadd.f32 %v4058_v39, %v448_v48  ;;  %v1003_v55 = vadd.f32 %v4058_v39, %v1002_v49  ;;  %v3406_v48 = vld [vmem:[%s4546_s0 + $0x1d8] sm:$0xff] }
 0x198   :  { %v1728_v52 = vmax.f32 %v1618_v46, 0.0  ;;  %v2282_v53 = vmax.f32 %v2172_v47, 0.0  ;;  %v3374_v47 = vld [vmem:[%s4546_s0 + $0xd8] sm:$0xff] }
 0x199   :  { %2667 = vmatmul.msk.bf16.gmra.mxu0 %vm250_vm2, %v3372_v42  ;;  %2891 = vmatmul.msk.bf16.gmra.mxu1 %vm250_vm2, %v3404_v43  ;;  %v557_v59 = vmax.f32 %v449_v54, 0.0  ;;  %v1111_v60 = vmax.f32 %v1003_v55, 0.0  ;;  %v3438_v55 = vld [vmem:[%s4546_s0 + $0x2d8] sm:$0xff] }
 0x19a   :  { %v2346_v57 = vmax.f32 %v1728_v52, %v2282_v53  ;;  %3115 = vmatmul.msk.bf16.gmra.mxu2 %vm250_vm2, %v3436_v50  ;;  %3339 = vmatmul.msk.bf16.gmra.mxu3 %vm250_vm2, %v3468_v51 }
 0x19b   :  { %v1175_v3 = vmax.f32 %v557_v59, %v1111_v60 }
 0x19c   :  { %v2410_v58 = vmax.f32 %v1174_v56, %v2346_v57  ;;  %v3470_v56 = vld [vmem:[%s4546_s0 + $0x3d8] sm:$0xff] }
 0x19d   :  { %v1620_v61 = vpop.f32.mrf.mxu2  ;;  %v2174_v62 = vpop.f32.mrf.mxu3 }
 0x19e   :  { %2475 = vst.msk [vmem:[%s4548_s3 + $0x108] sm:$0xff] %vm2441_vm3, %v2410_v58  ;;  %v1621_v63 = vadd.f32 %v4058_v39, %v1620_v61  ;;  %v2175_v0 = vadd.f32 %v4058_v39, %v2174_v62  ;;  %v450_v1 = vpop.f32.mrf.mxu0  ;;  %v1004_v2 = vpop.f32.mrf.mxu1 }
 0x19f   :  { %v451_v7 = vadd.f32 %v4058_v39, %v450_v1  ;;  %v1005_v8 = vadd.f32 %v4058_v39, %v1004_v2 }
 0x1a0   :  { %v1729_v4 = vmax.f32 %v1621_v63, 0.0  ;;  %v2283_v5 = vmax.f32 %v2175_v0, 0.0 }
 0x1a1   :  { %v558_v14 = vmax.f32 %v451_v7, 0.0  ;;  %v1112_v15 = vmax.f32 %v1005_v8, 0.0 }
 0x1a2   :  { %v2347_v6 = vmax.f32 %v1729_v4, %v2283_v5 }
 0x1a3   :  { %v1176_v26 = vmax.f32 %v558_v14, %v1112_v15 }
 0x1a4   :  { %v2411_v9 = vmax.f32 %v1175_v3, %v2347_v6 }
 0x1a5   :  { %v1622_v10 = vpop.f32.mrf.mxu2  ;;  %v2176_v11 = vpop.f32.mrf.mxu3 }
 0x1a6   :  { %2476 = vst.msk [vmem:[%s4548_s3 + $0x110] sm:$0xff] %vm2441_vm3, %v2411_v9  ;;  %v1623_v16 = vadd.f32 %v4058_v39, %v1622_v10  ;;  %v2177_v17 = vadd.f32 %v4058_v39, %v2176_v11  ;;  %v453_v18 = vpop.f32.mrf.mxu0  ;;  %v1007_v19 = vpop.f32.mrf.mxu1 }
 0x1a7   :  { %v454_v24 = vadd.f32 %v4058_v39, %v453_v18  ;;  %v1008_v25 = vadd.f32 %v4058_v39, %v1007_v19  ;;  %v3407_v18 = vld [vmem:[%s4546_s0 + $0x1e0] sm:$0xff] }
 0x1a8   :  { %v1730_v22 = vmax.f32 %v1623_v16, 0.0  ;;  %v2284_v23 = vmax.f32 %v2177_v17, 0.0  ;;  %v3375_v17 = vld [vmem:[%s4546_s0 + $0xe0] sm:$0xff] }
 0x1a9   :  { %2668 = vmatmul.msk.bf16.gmra.mxu0 %vm250_vm2, %v3373_v12  ;;  %2892 = vmatmul.msk.bf16.gmra.mxu1 %vm250_vm2, %v3405_v13  ;;  %v559_v29 = vmax.f32 %v454_v24, 0.0  ;;  %v1113_v30 = vmax.f32 %v1008_v25, 0.0  ;;  %v3439_v25 = vld [vmem:[%s4546_s0 + $0x2e0] sm:$0xff] }
 0x1aa   :  { %v2348_v27 = vmax.f32 %v1730_v22, %v2284_v23  ;;  %3116 = vmatmul.msk.bf16.gmra.mxu2 %vm250_vm2, %v3437_v20  ;;  %3340 = vmatmul.msk.bf16.gmra.mxu3 %vm250_vm2, %v3469_v21 }
 0x1ab   :  { %v1177_v37 = vmax.f32 %v559_v29, %v1113_v30 }
 0x1ac   :  { %v2412_v28 = vmax.f32 %v1176_v26, %v2348_v27  ;;  %v3471_v26 = vld [vmem:[%s4546_s0 + $0x3e0] sm:$0xff] }
 0x1ad   :  { %v1625_v31 = vpop.f32.mrf.mxu2  ;;  %v2179_v32 = vpop.f32.mrf.mxu3 }
 0x1ae   :  { %2477 = vst.msk [vmem:[%s4548_s3 + $0x118] sm:$0xff] %vm2441_vm3, %v2412_v28  ;;  %v1626_v33 = vadd.f32 %v4058_v39, %v1625_v31  ;;  %v2180_v34 = vadd.f32 %v4058_v39, %v2179_v32  ;;  %v455_v35 = vpop.f32.mrf.mxu0  ;;  %v1009_v36 = vpop.f32.mrf.mxu1 }
 0x1af   :  { %v456_v42 = vadd.f32 %v4058_v39, %v455_v35  ;;  %v1010_v43 = vadd.f32 %v4058_v39, %v1009_v36 }
 0x1b0   :  { %v1731_v38 = vmax.f32 %v1626_v33, 0.0  ;;  %v2285_v40 = vmax.f32 %v2180_v34, 0.0 }
 0x1b1   :  { %v560_v49 = vmax.f32 %v456_v42, 0.0  ;;  %v1114_v50 = vmax.f32 %v1010_v43, 0.0 }
 0x1b2   :  { %v2349_v41 = vmax.f32 %v1731_v38, %v2285_v40 }
 0x1b3   :  { %v1178_v61 = vmax.f32 %v560_v49, %v1114_v50 }
 0x1b4   :  { %v2413_v44 = vmax.f32 %v1177_v37, %v2349_v41 }
 0x1b5   :  { %v1627_v45 = vpop.f32.mrf.mxu2  ;;  %v2181_v46 = vpop.f32.mrf.mxu3 }
 0x1b6   :  { %2478 = vst.msk [vmem:[%s4548_s3 + $0x120] sm:$0xff] %vm2441_vm3, %v2413_v44  ;;  %v1628_v51 = vadd.f32 %v4058_v39, %v1627_v45  ;;  %v2182_v52 = vadd.f32 %v4058_v39, %v2181_v46  ;;  %v458_v53 = vpop.f32.mrf.mxu0  ;;  %v1012_v54 = vpop.f32.mrf.mxu1 }
 0x1b7   :  { %v459_v59 = vadd.f32 %v4058_v39, %v458_v53  ;;  %v1013_v60 = vadd.f32 %v4058_v39, %v1012_v54  ;;  %v3408_v53 = vld [vmem:[%s4546_s0 + $0x1e8] sm:$0xff] }
 0x1b8   :  { %v1732_v57 = vmax.f32 %v1628_v51, 0.0  ;;  %v2286_v58 = vmax.f32 %v2182_v52, 0.0  ;;  %v3376_v52 = vld [vmem:[%s4546_s0 + $0xe8] sm:$0xff] }
 0x1b9   :  { %2669 = vmatmul.msk.bf16.gmra.mxu0 %vm250_vm2, %v3374_v47  ;;  %2893 = vmatmul.msk.bf16.gmra.mxu1 %vm250_vm2, %v3406_v48  ;;  %v561_v0 = vmax.f32 %v459_v59, 0.0  ;;  %v1115_v1 = vmax.f32 %v1013_v60, 0.0  ;;  %v3440_v60 = vld [vmem:[%s4546_s0 + $0x2e8] sm:$0xff] }
 0x1ba   :  { %v2350_v62 = vmax.f32 %v1732_v57, %v2286_v58  ;;  %3117 = vmatmul.msk.bf16.gmra.mxu2 %vm250_vm2, %v3438_v55  ;;  %3341 = vmatmul.msk.bf16.gmra.mxu3 %vm250_vm2, %v3470_v56 }
 0x1bb   :  { %v1179_v8 = vmax.f32 %v561_v0, %v1115_v1 }
 0x1bc   :  { %v2414_v63 = vmax.f32 %v1178_v61, %v2350_v62  ;;  %v3472_v61 = vld [vmem:[%s4546_s0 + $0x3e8] sm:$0xff] }
 0x1bd   :  { %v1630_v2 = vpop.f32.mrf.mxu2  ;;  %v2184_v3 = vpop.f32.mrf.mxu3 }
 0x1be   :  { %2479 = vst.msk [vmem:[%s4548_s3 + $0x128] sm:$0xff] %vm2441_vm3, %v2414_v63  ;;  %v1631_v4 = vadd.f32 %v4058_v39, %v1630_v2  ;;  %v2185_v5 = vadd.f32 %v4058_v39, %v2184_v3  ;;  %v460_v6 = vpop.f32.mrf.mxu0  ;;  %v1014_v7 = vpop.f32.mrf.mxu1 }
 0x1bf   :  { %v461_v12 = vadd.f32 %v4058_v39, %v460_v6  ;;  %v1015_v13 = vadd.f32 %v4058_v39, %v1014_v7 }
 0x1c0   :  { %v1733_v9 = vmax.f32 %v1631_v4, 0.0  ;;  %v2287_v10 = vmax.f32 %v2185_v5, 0.0 }
 0x1c1   :  { %v562_v19 = vmax.f32 %v461_v12, 0.0  ;;  %v1116_v20 = vmax.f32 %v1015_v13, 0.0 }
 0x1c2   :  { %v2351_v11 = vmax.f32 %v1733_v9, %v2287_v10 }
 0x1c3   :  { %v1180_v31 = vmax.f32 %v562_v19, %v1116_v20 }
 0x1c4   :  { %v2415_v14 = vmax.f32 %v1179_v8, %v2351_v11 }
 0x1c5   :  { %v1632_v15 = vpop.f32.mrf.mxu2  ;;  %v2186_v16 = vpop.f32.mrf.mxu3 }
 0x1c6   :  { %2480 = vst.msk [vmem:[%s4548_s3 + $0x130] sm:$0xff] %vm2441_vm3, %v2415_v14  ;;  %v1633_v21 = vadd.f32 %v4058_v39, %v1632_v15  ;;  %v2187_v22 = vadd.f32 %v4058_v39, %v2186_v16  ;;  %v463_v23 = vpop.f32.mrf.mxu0  ;;  %v1017_v24 = vpop.f32.mrf.mxu1 }
 0x1c7   :  { %v464_v29 = vadd.f32 %v4058_v39, %v463_v23  ;;  %v1018_v30 = vadd.f32 %v4058_v39, %v1017_v24  ;;  %v3409_v23 = vld [vmem:[%s4546_s0 + $0x1f0] sm:$0xff] }
 0x1c8   :  { %v1734_v27 = vmax.f32 %v1633_v21, 0.0  ;;  %v2288_v28 = vmax.f32 %v2187_v22, 0.0  ;;  %v3377_v22 = vld [vmem:[%s4546_s0 + $0xf0] sm:$0xff] }
 0x1c9   :  { %2670 = vmatmul.msk.bf16.gmra.mxu0 %vm250_vm2, %v3375_v17  ;;  %2894 = vmatmul.msk.bf16.gmra.mxu1 %vm250_vm2, %v3407_v18  ;;  %v563_v34 = vmax.f32 %v464_v29, 0.0  ;;  %v1117_v35 = vmax.f32 %v1018_v30, 0.0  ;;  %v3441_v30 = vld [vmem:[%s4546_s0 + $0x2f0] sm:$0xff] }
 0x1ca   :  { %v2352_v32 = vmax.f32 %v1734_v27, %v2288_v28  ;;  %3118 = vmatmul.msk.bf16.gmra.mxu2 %vm250_vm2, %v3439_v25  ;;  %3342 = vmatmul.msk.bf16.gmra.mxu3 %vm250_vm2, %v3471_v26 }
 0x1cb   :  { %v1181_v43 = vmax.f32 %v563_v34, %v1117_v35 }
 0x1cc   :  { %v2416_v33 = vmax.f32 %v1180_v31, %v2352_v32  ;;  %v3473_v31 = vld [vmem:[%s4546_s0 + $0x3f0] sm:$0xff] }
 0x1cd   :  { %v1635_v36 = vpop.f32.mrf.mxu2  ;;  %v2189_v37 = vpop.f32.mrf.mxu3 }
 0x1ce   :  { %2481 = vst.msk [vmem:[%s4548_s3 + $0x138] sm:$0xff] %vm2441_vm3, %v2416_v33  ;;  %v1636_v38 = vadd.f32 %v4058_v39, %v1635_v36  ;;  %v2190_v40 = vadd.f32 %v4058_v39, %v2189_v37  ;;  %v465_v41 = vpop.f32.mrf.mxu0  ;;  %v1019_v42 = vpop.f32.mrf.mxu1 }
 0x1cf   :  { %v466_v47 = vadd.f32 %v4058_v39, %v465_v41  ;;  %v1020_v48 = vadd.f32 %v4058_v39, %v1019_v42 }
 0x1d0   :  { %v1735_v44 = vmax.f32 %v1636_v38, 0.0  ;;  %v2289_v45 = vmax.f32 %v2190_v40, 0.0 }
 0x1d1   :  { %v564_v54 = vmax.f32 %v466_v47, 0.0  ;;  %v1118_v55 = vmax.f32 %v1020_v48, 0.0 }
 0x1d2   :  { %v2353_v46 = vmax.f32 %v1735_v44, %v2289_v45 }
 0x1d3   :  { %v1182_v2 = vmax.f32 %v564_v54, %v1118_v55 }
 0x1d4   :  { %v2417_v49 = vmax.f32 %v1181_v43, %v2353_v46 }
 0x1d5   :  { %v1637_v50 = vpop.f32.mrf.mxu2  ;;  %v2191_v51 = vpop.f32.mrf.mxu3 }
 0x1d6   :  { %2482 = vst.msk [vmem:[%s4548_s3 + $0x140] sm:$0xff] %vm2441_vm3, %v2417_v49  ;;  %v1638_v56 = vadd.f32 %v4058_v39, %v1637_v50  ;;  %v2192_v57 = vadd.f32 %v4058_v39, %v2191_v51  ;;  %v468_v58 = vpop.f32.mrf.mxu0  ;;  %v1022_v59 = vpop.f32.mrf.mxu1 }
 0x1d7   :  { %v469_v0 = vadd.f32 %v4058_v39, %v468_v58  ;;  %v1023_v1 = vadd.f32 %v4058_v39, %v1022_v59  ;;  %v3410_v58 = vld [vmem:[%s4546_s0 + $0x1f8] sm:$0xff] }
 0x1d8   :  { %v1736_v62 = vmax.f32 %v1638_v56, 0.0  ;;  %v2290_v63 = vmax.f32 %v2192_v57, 0.0  ;;  %v3378_v57 = vld [vmem:[%s4546_s0 + $0xf8] sm:$0xff] }
 0x1d9   :  { %2671 = vmatmul.msk.bf16.gmra.mxu0 %vm250_vm2, %v3376_v52  ;;  %2895 = vmatmul.msk.bf16.gmra.mxu1 %vm250_vm2, %v3408_v53  ;;  %v565_v5 = vmax.f32 %v469_v0, 0.0  ;;  %v1119_v6 = vmax.f32 %v1023_v1, 0.0  ;;  %v3442_v1 = vld [vmem:[%s4546_s0 + $0x2f8] sm:$0xff] }
 0x1da   :  { %v2354_v3 = vmax.f32 %v1736_v62, %v2290_v63  ;;  %3119 = vmatmul.msk.bf16.gmra.mxu2 %vm250_vm2, %v3440_v60  ;;  %3343 = vmatmul.msk.bf16.gmra.mxu3 %vm250_vm2, %v3472_v61 }
 0x1db   :  { %v1183_v13 = vmax.f32 %v565_v5, %v1119_v6 }
 0x1dc   :  { %v2418_v4 = vmax.f32 %v1182_v2, %v2354_v3  ;;  %v3474_v2 = vld [vmem:[%s4546_s0 + $0x3f8] sm:$0xff] }
 0x1dd   :  { %v1640_v7 = vpop.f32.mrf.mxu2  ;;  %v2194_v8 = vpop.f32.mrf.mxu3 }
 0x1de   :  { %2483 = vst.msk [vmem:[%s4548_s3 + $0x148] sm:$0xff] %vm2441_vm3, %v2418_v4  ;;  %v1641_v9 = vadd.f32 %v4058_v39, %v1640_v7  ;;  %v2195_v10 = vadd.f32 %v4058_v39, %v2194_v8  ;;  %v470_v11 = vpop.f32.mrf.mxu0  ;;  %v1024_v12 = vpop.f32.mrf.mxu1 }
 0x1df   :  { %v471_v17 = vadd.f32 %v4058_v39, %v470_v11  ;;  %v1025_v18 = vadd.f32 %v4058_v39, %v1024_v12 }
 0x1e0   :  { %v1737_v14 = vmax.f32 %v1641_v9, 0.0  ;;  %v2291_v15 = vmax.f32 %v2195_v10, 0.0 }
 0x1e1   :  { %v566_v24 = vmax.f32 %v471_v17, 0.0  ;;  %v1120_v25 = vmax.f32 %v1025_v18, 0.0 }
 0x1e2   :  { %v2355_v16 = vmax.f32 %v1737_v14, %v2291_v15 }
 0x1e3   :  { %v1184_v36 = vmax.f32 %v566_v24, %v1120_v25 }
 0x1e4   :  { %v2419_v19 = vmax.f32 %v1183_v13, %v2355_v16 }
 0x1e5   :  { %v1642_v20 = vpop.f32.mrf.mxu2  ;;  %v2196_v21 = vpop.f32.mrf.mxu3 }
 0x1e6   :  { %2484 = vst.msk [vmem:[%s4548_s3 + $0x150] sm:$0xff] %vm2441_vm3, %v2419_v19  ;;  %v1643_v26 = vadd.f32 %v4058_v39, %v1642_v20  ;;  %v2197_v27 = vadd.f32 %v4058_v39, %v2196_v21  ;;  %v473_v28 = vpop.f32.mrf.mxu0  ;;  %v1027_v29 = vpop.f32.mrf.mxu1 }
 0x1e7   :  { %v474_v34 = vadd.f32 %v4058_v39, %v473_v28  ;;  %v1028_v35 = vadd.f32 %v4058_v39, %v1027_v29 }
 0x1e8   :  { %v1738_v32 = vmax.f32 %v1643_v26, 0.0  ;;  %v2292_v33 = vmax.f32 %v2197_v27, 0.0 }
 0x1e9   :  { %2672 = vmatmul.msk.bf16.gmra.mxu0 %vm250_vm2, %v3377_v22  ;;  %2896 = vmatmul.msk.bf16.gmra.mxu1 %vm250_vm2, %v3409_v23  ;;  %v567_v40 = vmax.f32 %v474_v34, 0.0  ;;  %v1121_v41 = vmax.f32 %v1028_v35, 0.0 }
 0x1ea   :  { %v2356_v37 = vmax.f32 %v1738_v32, %v2292_v33  ;;  %3120 = vmatmul.msk.bf16.gmra.mxu2 %vm250_vm2, %v3441_v30  ;;  %3344 = vmatmul.msk.bf16.gmra.mxu3 %vm250_vm2, %v3473_v31 }
 0x1eb   :  { %v1185_v48 = vmax.f32 %v567_v40, %v1121_v41 }
 0x1ec   :  { %v2420_v38 = vmax.f32 %v1184_v36, %v2356_v37 }
 0x1ed   :  { %v1645_v42 = vpop.f32.mrf.mxu2  ;;  %v2199_v43 = vpop.f32.mrf.mxu3 }
 0x1ee   :  { %2485 = vst.msk [vmem:[%s4548_s3 + $0x158] sm:$0xff] %vm2441_vm3, %v2420_v38  ;;  %v1646_v44 = vadd.f32 %v4058_v39, %v1645_v42  ;;  %v2200_v45 = vadd.f32 %v4058_v39, %v2199_v43  ;;  %v475_v46 = vpop.f32.mrf.mxu0  ;;  %v1029_v47 = vpop.f32.mrf.mxu1 }
 0x1ef   :  { %v476_v52 = vadd.f32 %v4058_v39, %v475_v46  ;;  %v1030_v53 = vadd.f32 %v4058_v39, %v1029_v47 }
 0x1f0   :  { %v1739_v49 = vmax.f32 %v1646_v44, 0.0  ;;  %v2293_v50 = vmax.f32 %v2200_v45, 0.0 }
 0x1f1   :  { %v568_v59 = vmax.f32 %v476_v52, 0.0  ;;  %v1122_v60 = vmax.f32 %v1030_v53, 0.0 }
 0x1f2   :  { %v2357_v51 = vmax.f32 %v1739_v49, %v2293_v50 }
 0x1f3   :  { %v1186_v7 = vmax.f32 %v568_v59, %v1122_v60 }
 0x1f4   :  { %v2421_v54 = vmax.f32 %v1185_v48, %v2357_v51 }
 0x1f5   :  { %v1647_v55 = vpop.f32.mrf.mxu2  ;;  %v2201_v56 = vpop.f32.mrf.mxu3 }
 0x1f6   :  { %2486 = vst.msk [vmem:[%s4548_s3 + $0x160] sm:$0xff] %vm2441_vm3, %v2421_v54  ;;  %v1648_v61 = vadd.f32 %v4058_v39, %v1647_v55  ;;  %v2202_v62 = vadd.f32 %v4058_v39, %v2201_v56  ;;  %v478_v63 = vpop.f32.mrf.mxu0  ;;  %v1032_v0 = vpop.f32.mrf.mxu1 }
 0x1f7   :  { %v479_v5 = vadd.f32 %v4058_v39, %v478_v63  ;;  %v1033_v6 = vadd.f32 %v4058_v39, %v1032_v0 }
 0x1f8   :  { %v1740_v3 = vmax.f32 %v1648_v61, 0.0  ;;  %v2294_v4 = vmax.f32 %v2202_v62, 0.0 }
 0x1f9   :  { %2673 = vmatmul.msk.bf16.gmra.mxu0 %vm250_vm2, %v3378_v57  ;;  %2897 = vmatmul.msk.bf16.gmra.mxu1 %vm250_vm2, %v3410_v58  ;;  %v569_v10 = vmax.f32 %v479_v5, 0.0  ;;  %v1123_v11 = vmax.f32 %v1033_v6, 0.0 }
 0x1fa   :  { %v2358_v8 = vmax.f32 %v1740_v3, %v2294_v4  ;;  %3121 = vmatmul.msk.bf16.gmra.mxu2 %vm250_vm2, %v3442_v1  ;;  %3345 = vmatmul.msk.bf16.gmra.mxu3 %vm250_vm2, %v3474_v2 }
 0x1fb   :  { %v1187_v18 = vmax.f32 %v569_v10, %v1123_v11 }
 0x1fc   :  { %v2422_v9 = vmax.f32 %v1186_v7, %v2358_v8 }
 0x1fd   :  { %v1650_v12 = vpop.f32.mrf.mxu2  ;;  %v2204_v13 = vpop.f32.mrf.mxu3 }
 0x1fe   :  { %2487 = vst.msk [vmem:[%s4548_s3 + $0x168] sm:$0xff] %vm2441_vm3, %v2422_v9  ;;  %v1651_v14 = vadd.f32 %v4058_v39, %v1650_v12  ;;  %v2205_v15 = vadd.f32 %v4058_v39, %v2204_v13  ;;  %v480_v16 = vpop.f32.mrf.mxu0  ;;  %v1034_v17 = vpop.f32.mrf.mxu1 }
 0x1ff   :  { %v481_v22 = vadd.f32 %v4058_v39, %v480_v16  ;;  %v1035_v23 = vadd.f32 %v4058_v39, %v1034_v17 }
 0x200   :  { %v1741_v19 = vmax.f32 %v1651_v14, 0.0  ;;  %v2295_v20 = vmax.f32 %v2205_v15, 0.0 }
 0x201   :  { %v570_v27 = vmax.f32 %v481_v22, 0.0  ;;  %v1124_v28 = vmax.f32 %v1035_v23, 0.0 }
 0x202   :  { %v2359_v21 = vmax.f32 %v1741_v19, %v2295_v20 }
 0x203   :  { %v1188_v37 = vmax.f32 %v570_v27, %v1124_v28 }
 0x204   :  { %v2423_v24 = vmax.f32 %v1187_v18, %v2359_v21 }
 0x205   :  { %v1652_v25 = vpop.f32.mrf.mxu2  ;;  %v2206_v26 = vpop.f32.mrf.mxu3 }
 0x206   :  { %2488 = vst.msk [vmem:[%s4548_s3 + $0x170] sm:$0xff] %vm2441_vm3, %v2423_v24  ;;  %v1653_v29 = vadd.f32 %v4058_v39, %v1652_v25  ;;  %v2207_v30 = vadd.f32 %v4058_v39, %v2206_v26  ;;  %v483_v31 = vpop.f32.mrf.mxu0  ;;  %v1037_v32 = vpop.f32.mrf.mxu1 }
 0x207   :  { %v484_v35 = vadd.f32 %v4058_v39, %v483_v31  ;;  %v1038_v36 = vadd.f32 %v4058_v39, %v1037_v32 }
 0x208   :  { %v1742_v33 = vmax.f32 %v1653_v29, 0.0  ;;  %v2296_v34 = vmax.f32 %v2207_v30, 0.0 }
 0x209   :  { %v571_v41 = vmax.f32 %v484_v35, 0.0  ;;  %v1125_v42 = vmax.f32 %v1038_v36, 0.0 }
 0x20a   :  { %v2360_v38 = vmax.f32 %v1742_v33, %v2296_v34 }
 0x20b   :  { %v1189_v49 = vmax.f32 %v571_v41, %v1125_v42  ;;  %v4449_v42 = vld [vmem:[%s4547_s2] ss:$0 sm:$0xff] }
 0x20c   :  { %v2424_v40 = vmax.f32 %v1188_v37, %v2360_v38 }
 0x20d   :  { %v1655_v43 = vpop.f32.mrf.mxu2  ;;  %v2209_v44 = vpop.f32.mrf.mxu3 }
 0x20e   :  { %2489 = vst.msk [vmem:[%s4548_s3 + $0x178] sm:$0xff] %vm2441_vm3, %v2424_v40  ;;  %v1656_v45 = vadd.f32 %v4058_v39, %v1655_v43  ;;  %v2210_v46 = vadd.f32 %v4058_v39, %v2209_v44  ;;  %v485_v47 = vpop.f32.mrf.mxu0  ;;  %v1039_v48 = vpop.f32.mrf.mxu1 }
 0x20f   :  { %v486_v53 = vadd.f32 %v4058_v39, %v485_v47  ;;  %v1040_v54 = vadd.f32 %v4058_v39, %v1039_v48 }
 0x210   :  { %v1743_v50 = vmax.f32 %v1656_v45, 0.0  ;;  %v2297_v51 = vmax.f32 %v2210_v46, 0.0 }
 0x211   :  { %v572_v58 = vmax.f32 %v486_v53, 0.0  ;;  %v1126_v59 = vmax.f32 %v1040_v54, 0.0 }
 0x212   :  { %v2361_v52 = vmax.f32 %v1743_v50, %v2297_v51 }
 0x213   :  { %v1190_v4 = vmax.f32 %v572_v58, %v1126_v59 }
 0x214   :  { %v2425_v55 = vmax.f32 %v1189_v49, %v2361_v52 }
 0x215   :  { %v1657_v56 = vpop.f32.mrf.mxu2  ;;  %v2211_v57 = vpop.f32.mrf.mxu3 }
 0x216   :  { %2490 = vst.msk [vmem:[%s4548_s3 + $0x180] sm:$0xff] %vm2441_vm3, %v2425_v55  ;;  %v1658_v60 = vadd.f32 %v4058_v39, %v1657_v56  ;;  %v2212_v61 = vadd.f32 %v4058_v39, %v2211_v57  ;;  %v488_v62 = vpop.f32.mrf.mxu0  ;;  %v1042_v63 = vpop.f32.mrf.mxu1 }
 0x217   :  { %v489_v2 = vadd.f32 %v4058_v39, %v488_v62  ;;  %v1043_v3 = vadd.f32 %v4058_v39, %v1042_v63 }
 0x218   :  { %v1744_v0 = vmax.f32 %v1658_v60, 0.0  ;;  %v2298_v1 = vmax.f32 %v2212_v61, 0.0 }
 0x219   :  { %v573_v7 = vmax.f32 %v489_v2, 0.0  ;;  %v1127_v8 = vmax.f32 %v1043_v3, 0.0 }
 0x21a   :  { %v2362_v5 = vmax.f32 %v1744_v0, %v2298_v1 }
 0x21b   :  { %v1191_v15 = vmax.f32 %v573_v7, %v1127_v8 }
 0x21c   :  { %v2426_v6 = vmax.f32 %v1190_v4, %v2362_v5 }
 0x21d   :  { %v1660_v9 = vpop.f32.mrf.mxu2  ;;  %v2214_v10 = vpop.f32.mrf.mxu3 }
 0x21e   :  { %2491 = vst.msk [vmem:[%s4548_s3 + $0x188] sm:$0xff] %vm2441_vm3, %v2426_v6  ;;  %v1661_v11 = vadd.f32 %v4058_v39, %v1660_v9  ;;  %v2215_v12 = vadd.f32 %v4058_v39, %v2214_v10  ;;  %v490_v13 = vpop.f32.mrf.mxu0  ;;  %v1044_v14 = vpop.f32.mrf.mxu1 }
 0x21f   :  { %v491_v19 = vadd.f32 %v4058_v39, %v490_v13  ;;  %v1045_v20 = vadd.f32 %v4058_v39, %v1044_v14 }
 0x220   :  { %v1745_v16 = vmax.f32 %v1661_v11, 0.0  ;;  %v2299_v17 = vmax.f32 %v2215_v12, 0.0 }
 0x221   :  { %v574_v24 = vmax.f32 %v491_v19, 0.0  ;;  %v1128_v25 = vmax.f32 %v1045_v20, 0.0 }
 0x222   :  { %v2363_v18 = vmax.f32 %v1745_v16, %v2299_v17 }
 0x223   :  { %v1192_v34 = vmax.f32 %v574_v24, %v1128_v25 }
 0x224   :  { %v2427_v21 = vmax.f32 %v1191_v15, %v2363_v18 }
 0x225   :  { %v1662_v22 = vpop.f32.mrf.mxu2  ;;  %v2216_v23 = vpop.f32.mrf.mxu3 }
 0x226   :  { %2492 = vst.msk [vmem:[%s4548_s3 + $0x190] sm:$0xff] %vm2441_vm3, %v2427_v21  ;;  %v1663_v26 = vadd.f32 %v4058_v39, %v1662_v22  ;;  %v2217_v27 = vadd.f32 %v4058_v39, %v2216_v23  ;;  %v493_v28 = vpop.f32.mrf.mxu0  ;;  %v1047_v29 = vpop.f32.mrf.mxu1 }
 0x227   :  { %v494_v32 = vadd.f32 %v4058_v39, %v493_v28  ;;  %v1048_v33 = vadd.f32 %v4058_v39, %v1047_v29 }
 0x228   :  { %v1746_v30 = vmax.f32 %v1663_v26, 0.0  ;;  %v2300_v31 = vmax.f32 %v2217_v27, 0.0 }
 0x229   :  { %v575_v37 = vmax.f32 %v494_v32, 0.0  ;;  %v1129_v38 = vmax.f32 %v1048_v33, 0.0 }
 0x22a   :  { %v2364_v35 = vmax.f32 %v1746_v30, %v2300_v31 }
 0x22b   :  { %v1193_v46 = vmax.f32 %v575_v37, %v1129_v38 }
 0x22c   :  { %v2428_v36 = vmax.f32 %v1192_v34, %v2364_v35 }
 0x22d   :  { %v1665_v40 = vpop.f32.mrf.mxu2  ;;  %v2219_v41 = vpop.f32.mrf.mxu3 }
 0x22e   :  { %2493 = vst.msk [vmem:[%s4548_s3 + $0x198] sm:$0xff] %vm2441_vm3, %v2428_v36  ;;  %v1666_v43 = vadd.f32 %v4449_v42, %v1665_v40  ;;  %v2220_v39 = vadd.f32 %v4449_v42, %v2219_v41  ;;  %v495_v44 = vpop.f32.mrf.mxu0  ;;  %v1049_v45 = vpop.f32.mrf.mxu1 }
 0x22f   :  { %v496_v50 = vadd.f32 %v4449_v42, %v495_v44  ;;  %v1050_v51 = vadd.f32 %v4449_v42, %v1049_v45 }
 0x230   :  { %v1747_v47 = vmax.f32 %v1666_v43, 0.0  ;;  %v2301_v48 = vmax.f32 %v2220_v39, 0.0 }
 0x231   :  { %v576_v55 = vmax.f32 %v496_v50, 0.0  ;;  %v1130_v56 = vmax.f32 %v1050_v51, 0.0 }
 0x232   :  { %v2365_v49 = vmax.f32 %v1747_v47, %v2301_v48 }
 0x233   :  { %v1194_v1 = vmax.f32 %v576_v55, %v1130_v56 }
 0x234   :  { %v2429_v52 = vmax.f32 %v1193_v46, %v2365_v49 }
 0x235   :  { %v1667_v53 = vpop.f32.mrf.mxu2  ;;  %v2221_v54 = vpop.f32.mrf.mxu3 }
 0x236   :  { %2494 = vst.msk [vmem:[%s4548_s3 + $0x1a0] sm:$0xff] %vm2441_vm3, %v2429_v52  ;;  %v1668_v57 = vadd.f32 %v4449_v42, %v1667_v53  ;;  %v2222_v58 = vadd.f32 %v4449_v42, %v2221_v54  ;;  %v498_v59 = vpop.f32.mrf.mxu0  ;;  %v1052_v60 = vpop.f32.mrf.mxu1 }
 0x237   :  { %v499_v63 = vadd.f32 %v4449_v42, %v498_v59  ;;  %v1053_v0 = vadd.f32 %v4449_v42, %v1052_v60 }
 0x238   :  { %v1748_v61 = vmax.f32 %v1668_v57, 0.0  ;;  %v2302_v62 = vmax.f32 %v2222_v58, 0.0 }
 0x239   :  { %v577_v4 = vmax.f32 %v499_v63, 0.0  ;;  %v1131_v5 = vmax.f32 %v1053_v0, 0.0 }
 0x23a   :  { %v2366_v2 = vmax.f32 %v1748_v61, %v2302_v62 }
 0x23b   :  { %v1195_v12 = vmax.f32 %v577_v4, %v1131_v5 }
 0x23c   :  { %v2430_v3 = vmax.f32 %v1194_v1, %v2366_v2 }
 0x23d   :  { %v1670_v6 = vpop.f32.mrf.mxu2  ;;  %v2224_v7 = vpop.f32.mrf.mxu3 }
 0x23e   :  { %2495 = vst.msk [vmem:[%s4548_s3 + $0x1a8] sm:$0xff] %vm2441_vm3, %v2430_v3  ;;  %v1671_v8 = vadd.f32 %v4449_v42, %v1670_v6  ;;  %v2225_v9 = vadd.f32 %v4449_v42, %v2224_v7  ;;  %v500_v10 = vpop.f32.mrf.mxu0  ;;  %v1054_v11 = vpop.f32.mrf.mxu1 }
 0x23f   :  { %v501_v16 = vadd.f32 %v4449_v42, %v500_v10  ;;  %v1055_v17 = vadd.f32 %v4449_v42, %v1054_v11 }
 0x240   :  { %v1749_v13 = vmax.f32 %v1671_v8, 0.0  ;;  %v2303_v14 = vmax.f32 %v2225_v9, 0.0 }
 0x241   :  { %v578_v21 = vmax.f32 %v501_v16, 0.0  ;;  %v1132_v22 = vmax.f32 %v1055_v17, 0.0 }
 0x242   :  { %v2367_v15 = vmax.f32 %v1749_v13, %v2303_v14 }
 0x243   :  { %v1196_v31 = vmax.f32 %v578_v21, %v1132_v22 }
 0x244   :  { %v2431_v18 = vmax.f32 %v1195_v12, %v2367_v15 }
 0x245   :  { %v1672_v19 = vpop.f32.mrf.mxu2  ;;  %v2226_v20 = vpop.f32.mrf.mxu3 }
 0x246   :  { %2496 = vst.msk [vmem:[%s4548_s3 + $0x1b0] sm:$0xff] %vm2441_vm3, %v2431_v18  ;;  %v1673_v23 = vadd.f32 %v4449_v42, %v1672_v19  ;;  %v2227_v24 = vadd.f32 %v4449_v42, %v2226_v20  ;;  %v503_v25 = vpop.f32.mrf.mxu0  ;;  %v1057_v26 = vpop.f32.mrf.mxu1 }
 0x247   :  { %v504_v29 = vadd.f32 %v4449_v42, %v503_v25  ;;  %v1058_v30 = vadd.f32 %v4449_v42, %v1057_v26 }
 0x248   :  { %v1750_v27 = vmax.f32 %v1673_v23, 0.0  ;;  %v2304_v28 = vmax.f32 %v2227_v24, 0.0 }
 0x249   :  { %v579_v34 = vmax.f32 %v504_v29, 0.0  ;;  %v1133_v35 = vmax.f32 %v1058_v30, 0.0 }
 0x24a   :  { %v2368_v32 = vmax.f32 %v1750_v27, %v2304_v28 }
 0x24b   :  { %v1197_v39 = vmax.f32 %v579_v34, %v1133_v35 }
 0x24c   :  { %v2432_v33 = vmax.f32 %v1196_v31, %v2368_v32 }
 0x24d   :  { %v1675_v36 = vpop.f32.mrf.mxu2  ;;  %v2229_v37 = vpop.f32.mrf.mxu3 }
 0x24e   :  { %2497 = vst.msk [vmem:[%s4548_s3 + $0x1b8] sm:$0xff] %vm2441_vm3, %v2432_v33  ;;  %v1676_v38 = vadd.f32 %v4449_v42, %v1675_v36  ;;  %v2230_v40 = vadd.f32 %v4449_v42, %v2229_v37  ;;  %v505_v41 = vpop.f32.mrf.mxu0  ;;  %v1059_v43 = vpop.f32.mrf.mxu1 }
 0x24f   :  { %v506_v47 = vadd.f32 %v4449_v42, %v505_v41  ;;  %v1060_v48 = vadd.f32 %v4449_v42, %v1059_v43 }
 0x250   :  { %v1751_v44 = vmax.f32 %v1676_v38, 0.0  ;;  %v2305_v45 = vmax.f32 %v2230_v40, 0.0 }
 0x251   :  { %v580_v52 = vmax.f32 %v506_v47, 0.0  ;;  %v1134_v53 = vmax.f32 %v1060_v48, 0.0 }
 0x252   :  { %v2369_v46 = vmax.f32 %v1751_v44, %v2305_v45 }
 0x253   :  { %v1198_v62 = vmax.f32 %v580_v52, %v1134_v53 }
 0x254   :  { %v2433_v49 = vmax.f32 %v1197_v39, %v2369_v46 }
 0x255   :  { %v1677_v50 = vpop.f32.mrf.mxu2  ;;  %v2231_v51 = vpop.f32.mrf.mxu3 }
 0x256   :  { %2498 = vst.msk [vmem:[%s4548_s3 + $0x1c0] sm:$0xff] %vm2441_vm3, %v2433_v49  ;;  %v1678_v54 = vadd.f32 %v4449_v42, %v1677_v50  ;;  %v2232_v55 = vadd.f32 %v4449_v42, %v2231_v51  ;;  %v508_v56 = vpop.f32.mrf.mxu0  ;;  %v1062_v57 = vpop.f32.mrf.mxu1 }
 0x257   :  { %v509_v60 = vadd.f32 %v4449_v42, %v508_v56  ;;  %v1063_v61 = vadd.f32 %v4449_v42, %v1062_v57 }
 0x258   :  { %v1752_v58 = vmax.f32 %v1678_v54, 0.0  ;;  %v2306_v59 = vmax.f32 %v2232_v55, 0.0 }
 0x259   :  { %v581_v1 = vmax.f32 %v509_v60, 0.0  ;;  %v1135_v2 = vmax.f32 %v1063_v61, 0.0 }
 0x25a   :  { %v2370_v63 = vmax.f32 %v1752_v58, %v2306_v59 }
 0x25b   :  { %v1199_v9 = vmax.f32 %v581_v1, %v1135_v2 }
 0x25c   :  { %v2434_v0 = vmax.f32 %v1198_v62, %v2370_v63 }
 0x25d   :  { %v1680_v3 = vpop.f32.mrf.mxu2  ;;  %v2234_v4 = vpop.f32.mrf.mxu3 }
 0x25e   :  { %2499 = vst.msk [vmem:[%s4548_s3 + $0x1c8] sm:$0xff] %vm2441_vm3, %v2434_v0  ;;  %v1681_v5 = vadd.f32 %v4449_v42, %v1680_v3  ;;  %v2235_v6 = vadd.f32 %v4449_v42, %v2234_v4  ;;  %v510_v7 = vpop.f32.mrf.mxu0  ;;  %v1064_v8 = vpop.f32.mrf.mxu1 }
 0x25f   :  { %v511_v13 = vadd.f32 %v4449_v42, %v510_v7  ;;  %v1065_v14 = vadd.f32 %v4449_v42, %v1064_v8 }
 0x260   :  { %v1753_v10 = vmax.f32 %v1681_v5, 0.0  ;;  %v2307_v11 = vmax.f32 %v2235_v6, 0.0 }
 0x261   :  { %v582_v18 = vmax.f32 %v511_v13, 0.0  ;;  %v1136_v19 = vmax.f32 %v1065_v14, 0.0 }
 0x262   :  { %v2371_v12 = vmax.f32 %v1753_v10, %v2307_v11 }
 0x263   :  { %v1200_v28 = vmax.f32 %v582_v18, %v1136_v19 }
 0x264   :  { %v2435_v15 = vmax.f32 %v1199_v9, %v2371_v12 }
 0x265   :  { %v1682_v16 = vpop.f32.mrf.mxu2  ;;  %v2236_v17 = vpop.f32.mrf.mxu3 }
 0x266   :  { %2500 = vst.msk [vmem:[%s4548_s3 + $0x1d0] sm:$0xff] %vm2441_vm3, %v2435_v15  ;;  %v1683_v20 = vadd.f32 %v4449_v42, %v1682_v16  ;;  %v2237_v21 = vadd.f32 %v4449_v42, %v2236_v17  ;;  %v513_v22 = vpop.f32.mrf.mxu0  ;;  %v1067_v23 = vpop.f32.mrf.mxu1 }
 0x267   :  { %v514_v26 = vadd.f32 %v4449_v42, %v513_v22  ;;  %v1068_v27 = vadd.f32 %v4449_v42, %v1067_v23 }
 0x268   :  { %v1754_v24 = vmax.f32 %v1683_v20, 0.0  ;;  %v2308_v25 = vmax.f32 %v2237_v21, 0.0 }
 0x269   :  { %v583_v31 = vmax.f32 %v514_v26, 0.0  ;;  %v1137_v32 = vmax.f32 %v1068_v27, 0.0 }
 0x26a   :  { %v2372_v29 = vmax.f32 %v1754_v24, %v2308_v25 }
 0x26b   :  { %v1201_v40 = vmax.f32 %v583_v31, %v1137_v32 }
 0x26c   :  { %v2436_v30 = vmax.f32 %v1200_v28, %v2372_v29 }
 0x26d   :  { %v1685_v33 = vpop.f32.mrf.mxu2  ;;  %v2239_v34 = vpop.f32.mrf.mxu3 }
 0x26e   :  { %2501 = vst.msk [vmem:[%s4548_s3 + $0x1d8] sm:$0xff] %vm2441_vm3, %v2436_v30  ;;  %v1686_v35 = vadd.f32 %v4449_v42, %v1685_v33  ;;  %v2240_v36 = vadd.f32 %v4449_v42, %v2239_v34  ;;  %v515_v37 = vpop.f32.mrf.mxu0  ;;  %v1069_v38 = vpop.f32.mrf.mxu1 }
 0x26f   :  { %v516_v44 = vadd.f32 %v4449_v42, %v515_v37  ;;  %v1070_v45 = vadd.f32 %v4449_v42, %v1069_v38 }
 0x270   :  { %v1755_v41 = vmax.f32 %v1686_v35, 0.0  ;;  %v2309_v43 = vmax.f32 %v2240_v36, 0.0 }
 0x271   :  { %v584_v49 = vmax.f32 %v516_v44, 0.0  ;;  %v1138_v50 = vmax.f32 %v1070_v45, 0.0 }
 0x272   :  { %v2373_v39 = vmax.f32 %v1755_v41, %v2309_v43 }
 0x273   :  { %v1202_v59 = vmax.f32 %v584_v49, %v1138_v50 }
 0x274   :  { %v2437_v46 = vmax.f32 %v1201_v40, %v2373_v39 }
 0x275   :  { %v1687_v47 = vpop.f32.mrf.mxu2  ;;  %v2241_v48 = vpop.f32.mrf.mxu3 }
 0x276   :  { %2502 = vst.msk [vmem:[%s4548_s3 + $0x1e0] sm:$0xff] %vm2441_vm3, %v2437_v46  ;;  %v1688_v51 = vadd.f32 %v4449_v42, %v1687_v47  ;;  %v2242_v52 = vadd.f32 %v4449_v42, %v2241_v48  ;;  %v518_v53 = vpop.f32.mrf.mxu0  ;;  %v1072_v54 = vpop.f32.mrf.mxu1 }
 0x277   :  { %v519_v57 = vadd.f32 %v4449_v42, %v518_v53  ;;  %v1073_v58 = vadd.f32 %v4449_v42, %v1072_v54 }
 0x278   :  { %v1756_v55 = vmax.f32 %v1688_v51, 0.0  ;;  %v2310_v56 = vmax.f32 %v2242_v52, 0.0 }
 0x279   :  { %v585_v62 = vmax.f32 %v519_v57, 0.0  ;;  %v1139_v63 = vmax.f32 %v1073_v58, 0.0 }
 0x27a   :  { %v2374_v60 = vmax.f32 %v1756_v55, %v2310_v56 }
 0x27b   :  { %v1203_v6 = vmax.f32 %v585_v62, %v1139_v63 }
 0x27c   :  { %v2438_v61 = vmax.f32 %v1202_v59, %v2374_v60 }
 0x27d   :  { %v1690_v0 = vpop.f32.mrf.mxu2  ;;  %v2244_v1 = vpop.f32.mrf.mxu3 }
 0x27e   :  { %2503 = vst.msk [vmem:[%s4548_s3 + $0x1e8] sm:$0xff] %vm2441_vm3, %v2438_v61  ;;  %v1691_v2 = vadd.f32 %v4449_v42, %v1690_v0  ;;  %v2245_v3 = vadd.f32 %v4449_v42, %v2244_v1  ;;  %v520_v4 = vpop.f32.mrf.mxu0  ;;  %v1074_v5 = vpop.f32.mrf.mxu1 }
 0x27f   :  { %v521_v10 = vadd.f32 %v4449_v42, %v520_v4  ;;  %v1075_v11 = vadd.f32 %v4449_v42, %v1074_v5 }
 0x280   :  { %v1757_v7 = vmax.f32 %v1691_v2, 0.0  ;;  %v2311_v8 = vmax.f32 %v2245_v3, 0.0 }
 0x281   :  { %v586_v15 = vmax.f32 %v521_v10, 0.0  ;;  %v1140_v16 = vmax.f32 %v1075_v11, 0.0 }
 0x282   :  { %v2375_v9 = vmax.f32 %v1757_v7, %v2311_v8 }
 0x283   :  { %v1204_v21 = vmax.f32 %v586_v15, %v1140_v16 }
 0x284   :  { %v2439_v12 = vmax.f32 %v1203_v6, %v2375_v9 }
 0x285   :  { %v1692_v13 = vpop.f32.mrf.mxu2  ;;  %v2246_v14 = vpop.f32.mrf.mxu3 }
 0x286   :  { %2504 = vst.msk [vmem:[%s4548_s3 + $0x1f0] sm:$0xff] %vm2441_vm3, %v2439_v12  ;;  %v1693_v17 = vadd.f32 %v4449_v42, %v1692_v13  ;;  %v2247_v18 = vadd.f32 %v4449_v42, %v2246_v14 }
 0x288   :  { %v1758_v19 = vmax.f32 %v1693_v17, 0.0  ;;  %v2312_v20 = vmax.f32 %v2247_v18, 0.0 }
 0x28a   :  { %v2376_v22 = vmax.f32 %v1758_v19, %v2312_v20 }
 0x28c   :  { %v2440_v23 = vmax.f32 %v1204_v21, %v2376_v22 }
 0x28e   :  { %2505 = vst.msk [vmem:[%s4548_s3 + $0x1f8] sm:$0xff] %vm2441_vm3, %v2440_v23 }

// kernel: netcv_forward.6
= control target key start
LH: loop header
LB: loop body
LE: loop exit
PB: predicated region body
PF: predicated region fallthrough
CT: control target
= control target key end

     0   :  { %vm179_vm0 = vcmask 130048   ;;  %vm1047_vm1 = vcmask 261120   ;;  %s2221_s1 = inlined_call_operand.vmem [shape: bf16[144,32], index: 1, kind: input, shape index: {}]   ;;  %s2222_s0 = inlined_call_operand.vmem [shape: bf16[4,128,144], index: 0, kind: input, shape index: {}]   ;;  %s2223_s2 = inlined_call_operand.vmem [shape: f32[1,32], index: 2, kind: input, shape index: {}]   ;;  %s2224_s3 = inlined_call_operand.vmem [shape: f32[128,32], index: 3, kind: output, shape index: {}]  }
   0x1   :  { %v1447_v0 = vld [vmem:[%s2221_s1 + $0x38] sm:$0xff]  ;;  %v1540_v1 = vld [vmem:[%s2221_s1 + $0x30] sm:$0xff]  ;;  %v1448_v2 = vld [vmem:[%s2221_s1 + $0x40] sm:$0xff] }
   0x2   :  { %204 = vmatpush.bf16.msra.mxu0 %v1447_v0  ;;  %431 = vmatpush.bf16.msra.mxu2 %v1447_v0  ;;  %v1465_v3 = vld [vmem:[%s2222_s0 + $0x84] sm:$0xf]  ;;  %v1196_v4 = vld [vmem:[%s2222_s0 + $0x88] sm:$0xf0]  ;;  %v1443_v11 = vld [vmem:[%s2221_s1 + $0x18] sm:$0xff] }
   0x3   :  { %v1199_v5 = vor.u32 %v1465_v3, %v1196_v4  ;;  %v1449_v6 = vld [vmem:[%s2222_s0 + $0x4] sm:$0xf]  ;;  %v1072_v7 = vld [vmem:[%s2222_s0 + $0x8] sm:$0xf0]  ;;  %487 = vmatpush.bf16.msra.mxu3 %v1448_v2  ;;  %260 = vmatpush.bf16.msra.mxu1 %v1448_v2  ;;  %v1467_v12 = vld [vmem:[%s2222_s0 + $0x94] sm:$0xf] }
   0x4   :  { %v1075_v8 = vor.u32 %v1449_v6, %v1072_v7  ;;  %v1445_v9 = vld [vmem:[%s2221_s1 + $0x28] sm:$0xff]  ;;  %v1444_v10 = vld [vmem:[%s2221_s1 + $0x20] sm:$0xff]  ;;  %v1204_v13 = vld [vmem:[%s2222_s0 + $0x98] sm:$0xf0] }
   0x5   :  { %v1451_v14 = vld [vmem:[%s2222_s0 + $0x14] sm:$0xf]  ;;  %v1080_v15 = vld [vmem:[%s2222_s0 + $0x18] sm:$0xf0]  ;;  %v1207_v17 = vor.u32 %v1467_v12, %v1204_v13  ;;  %v1441_v19 = vld [vmem:[%s2221_s1 + $0x8] sm:$0xff] }
   0x6   :  { %205 = vmatpush.bf16.msra.mxu0 %v1540_v1  ;;  %432 = vmatpush.bf16.msra.mxu2 %v1540_v1  ;;  %v1442_v16 = vld [vmem:[%s2221_s1 + $0x10] sm:$0xff]  ;;  %v1083_v18 = vor.u32 %v1451_v14, %v1080_v15  ;;  %v1440_v20 = vld [vmem:[%s2221_s1] sm:$0xff]  ;;  %v1450_v22 = vld [vmem:[%s2222_s0 + $0x4] sm:$0xf0] }
   0x7   :  { %730 = vmatpush.bf16.msrb.mxu3 %v1448_v2  ;;  %674 = vmatpush.bf16.msrb.mxu1 %v1447_v0  ;;  %v1070_v21 = vld [vmem:[%s2222_s0] sm:$0xf]  ;;  %v1466_v24 = vld [vmem:[%s2222_s0 + $0x84] sm:$0xf0]  ;;  %v1469_v27 = vld [vmem:[%s2222_s0 + $0xa4] sm:$0xf] }
   0x8   :  { %1256 = vmatmul.msk.bf16.vlgmr.msra.gmra.mxu3 %vm179_vm0, %v1199_v5  ;;  %1168 = vmatmul.msk.bf16.vlgmr.msra.gmra.mxu1 %vm179_vm0, %v1075_v8  ;;  %v1194_v23 = vld [vmem:[%s2222_s0 + $0x80] sm:$0xf]  ;;  %v1071_v25 = vor.u32 %v1450_v22, %v1070_v21  ;;  %v1212_v28 = vld [vmem:[%s2222_s0 + $0xa8] sm:$0xf0]  ;;  %v1453_v29 = vld [vmem:[%s2222_s0 + $0x24] sm:$0xf] }
   0x9   :  { %v1195_v26 = vor.u32 %v1466_v24, %v1194_v23  ;;  %v1088_v30 = vld [vmem:[%s2222_s0 + $0x28] sm:$0xf0]  ;;  %v1215_v31 = vor.u32 %v1469_v27, %v1212_v28  ;;  %v1078_v33 = vld [vmem:[%s2222_s0 + $0x10] sm:$0xf]  ;;  %v1452_v34 = vld [vmem:[%s2222_s0 + $0x14] sm:$0xf0] }
   0xa   :  { %206 = vmatpush.bf16.msra.mxu0 %v1445_v9  ;;  %433 = vmatpush.bf16.msra.mxu2 %v1445_v9  ;;  %v1091_v32 = vor.u32 %v1453_v29, %v1088_v30  ;;  %v1202_v35 = vld [vmem:[%s2222_s0 + $0x90] sm:$0xf]  ;;  %v1468_v36 = vld [vmem:[%s2222_s0 + $0x94] sm:$0xf0]  ;;  %v1079_v37 = vor.u32 %v1452_v34, %v1078_v33  ;;  %v1471_v39 = vld [vmem:[%s2222_s0 + $0xb4] sm:$0xf] }
   0xb   :  { %675 = vmatpush.bf16.msrb.mxu1 %v1540_v1  ;;  %v1203_v38 = vor.u32 %v1468_v36, %v1202_v35  ;;  %v1220_v40 = vld [vmem:[%s2222_s0 + $0xb8] sm:$0xf0]  ;;  %v1455_v41 = vld [vmem:[%s2222_s0 + $0x34] sm:$0xf]  ;;  %v1086_v45 = vld [vmem:[%s2222_s0 + $0x20] sm:$0xf] }
   0xc   :  { %v1096_v42 = vld [vmem:[%s2222_s0 + $0x38] sm:$0xf0]  ;;  %v1223_v43 = vor.u32 %v1471_v39, %v1220_v40  ;;  %v1454_v46 = vld [vmem:[%s2222_s0 + $0x24] sm:$0xf0]  ;;  %v1210_v47 = vld [vmem:[%s2222_s0 + $0xa0] sm:$0xf] }
   0xd   :  { %v1099_v44 = vor.u32 %v1455_v41, %v1096_v42  ;;  %v1470_v48 = vld [vmem:[%s2222_s0 + $0xa4] sm:$0xf0]  ;;  %v1087_v49 = vor.u32 %v1454_v46, %v1086_v45  ;;  %v1473_v51 = vld [vmem:[%s2222_s0 + $0xc4] sm:$0xf]  ;;  %v1228_v52 = vld [vmem:[%s2222_s0 + $0xc8] sm:$0xf0] }
   0xe   :  { %207 = vmatpush.bf16.msra.mxu0 %v1444_v10  ;;  %434 = vmatpush.bf16.msra.mxu2 %v1444_v10  ;;  %v1211_v50 = vor.u32 %v1470_v48, %v1210_v47  ;;  %v1457_v53 = vld [vmem:[%s2222_s0 + $0x44] sm:$0xf]  ;;  %v1104_v54 = vld [vmem:[%s2222_s0 + $0x48] sm:$0xf0]  ;;  %v1231_v55 = vor.u32 %v1473_v51, %v1228_v52  ;;  %v1094_v57 = vld [vmem:[%s2222_s0 + $0x30] sm:$0xf] }
   0xf   :  { %676 = vmatpush.bf16.msrb.mxu1 %v1445_v9  ;;  %v1107_v56 = vor.u32 %v1457_v53, %v1104_v54  ;;  %v1456_v58 = vld [vmem:[%s2222_s0 + $0x34] sm:$0xf0]  ;;  %v1218_v59 = vld [vmem:[%s2222_s0 + $0xb0] sm:$0xf]  ;;  %v1475_v63 = vld [vmem:[%s2222_s0 + $0xd4] sm:$0xf] }
  0x10   :  { %v1472_v60 = vld [vmem:[%s2222_s0 + $0xb4] sm:$0xf0]  ;;  %v1095_v61 = vor.u32 %v1456_v58, %v1094_v57  ;;  %v1102_v5 = vld [vmem:[%s2222_s0 + $0x40] sm:$0xf]  ;;  %v1458_v6 = vld [vmem:[%s2222_s0 + $0x44] sm:$0xf0] }
  0x11   :  { %v1219_v62 = vor.u32 %v1472_v60, %v1218_v59  ;;  %v1226_v7 = vld [vmem:[%s2222_s0 + $0xc0] sm:$0xf]  ;;  %v1474_v8 = vld [vmem:[%s2222_s0 + $0xc4] sm:$0xf0]  ;;  %v1244_v12 = vld [vmem:[%s2222_s0 + $0xe8] sm:$0xf0] }
  0x12   :  { %208 = vmatpush.bf16.msra.mxu0 %v1443_v11  ;;  %435 = vmatpush.bf16.msra.mxu2 %v1443_v11  ;;  %v1461_v13 = vld [vmem:[%s2222_s0 + $0x64] sm:$0xf]  ;;  %v1120_v14 = vld [vmem:[%s2222_s0 + $0x68] sm:$0xf0]  ;;  %v1479_v23 = vld [vmem:[%s2222_s0 + $0xf4] sm:$0xf] }
  0x13   :  { %677 = vmatpush.bf16.msrb.mxu1 %v1444_v10  ;;  %v1252_v24 = vld [vmem:[%s2222_s0 + $0xf8] sm:$0xf0]  ;;  %v1118_v29 = vld [vmem:[%s2222_s0 + $0x60] sm:$0xf]  ;;  %v1462_v30 = vld [vmem:[%s2222_s0 + $0x64] sm:$0xf0] }
  0x14   :  { %v1255_v27 = vor.u32 %v1479_v23, %v1252_v24  ;;  %v1119_v33 = vor.u32 %v1462_v30, %v1118_v29  ;;  %v1481_v35 = vld [vmem:[%s2222_s0 + $0x104] sm:$0xf]  ;;  %v1284_v36 = vld [vmem:[%s2222_s0 + $0x108] sm:$0xf0]  ;;  %v1126_v42 = vld [vmem:[%s2222_s0 + $0x70] sm:$0xf] }
  0x15   :  { %v1287_v39 = vor.u32 %v1481_v35, %v1284_v36  ;;  %v1480_v45 = vld [vmem:[%s2222_s0 + $0xf4] sm:$0xf0]  ;;  %v1292_v51 = vld [vmem:[%s2222_s0 + $0x118] sm:$0xf0]  ;;  %v1290_v52 = vld [vmem:[%s2222_s0 + $0x110] sm:$0xf] }
  0x16   :  { %209 = vmatpush.bf16.msra.mxu0 %v1442_v16  ;;  %436 = vmatpush.bf16.msra.mxu2 %v1442_v16  ;;  %v1484_v53 = vld [vmem:[%s2222_s0 + $0x114] sm:$0xf0]  ;;  %v1370_v58 = vld [vmem:[%s2222_s0 + $0x180] sm:$0xf]  ;;  %v1498_v59 = vld [vmem:[%s2222_s0 + $0x184] sm:$0xf0] }
  0x17   :  { %678 = vmatpush.bf16.msrb.mxu1 %v1443_v11  ;;  %v1497_v60 = vld [vmem:[%s2222_s0 + $0x184] sm:$0xf]  ;;  %v1500_v23 = vld [vmem:[%s2222_s0 + $0x194] sm:$0xf0]  ;;  %v1499_v24 = vld [vmem:[%s2222_s0 + $0x194] sm:$0xf] }
  0x18   :  { %1257 = vmatmul.msk.bf16.gmra.mxu3 %vm179_vm0, %v1207_v17  ;;  %1169 = vmatmul.msk.bf16.gmra.mxu1 %vm179_vm0, %v1083_v18  ;;  %v1110_v17 = vld [vmem:[%s2222_s0 + $0x50] sm:$0xf]  ;;  %v1460_v18 = vld [vmem:[%s2222_s0 + $0x54] sm:$0xf0]  ;;  %v1487_v36 = vld [vmem:[%s2222_s0 + $0x134] sm:$0xf] }
  0x19   :  { %v1111_v21 = vor.u32 %v1460_v18, %v1110_v17 }
  0x1a   :  { %210 = vmatpush.bf16.msra.mxu0 %v1441_v19  ;;  %437 = vmatpush.bf16.msra.mxu2 %v1441_v19 }
  0x1b   :  { %679 = vmatpush.bf16.msrb.mxu1 %v1442_v16 }
  0x1e   :  { %211 = vmatpush.bf16.msra.mxu0 %v1440_v20  ;;  %438 = vmatpush.bf16.msra.mxu2 %v1440_v20 }
  0x1f   :  { %680 = vmatpush.bf16.msrb.mxu1 %v1441_v19 }
  0x21   :  { %212 = vmatmul.bf16.vlgmr.msra.gmra.mxu0 %v1071_v25  ;;  %439 = vmatmul.bf16.vlgmr.msra.gmra.mxu2 %v1195_v26  ;;  %v1463_v25 = vld [vmem:[%s2222_s0 + $0x74] sm:$0xf]  ;;  %v1128_v26 = vld [vmem:[%s2222_s0 + $0x78] sm:$0xf0] }
  0x22   :  { %957 = vmatpush.bf16.msrb.mxu2 %v1448_v2  ;;  %901 = vmatpush.bf16.msrb.mxu0 %v1447_v0  ;;  %v1236_v0 = vld [vmem:[%s2222_s0 + $0xd8] sm:$0xf0]  ;;  %v1131_v28 = vor.u32 %v1463_v25, %v1128_v26 }
  0x23   :  { %681 = vmatpush.bf16.msrb.mxu1 %v1440_v20  ;;  %v1112_v2 = vld [vmem:[%s2222_s0 + $0x58] sm:$0xf0]  ;;  %v1239_v3 = vor.u32 %v1475_v63, %v1236_v0  ;;  %v1816_v63 = vld [vmem:[%s2223_s2] ss:$0 sm:$0xff] }
  0x24   :  { %v1380_v25 = vld [vmem:[%s2222_s0 + $0x198] sm:$0xf0] }
  0x26   :  { %902 = vmatpush.bf16.msrb.mxu0 %v1540_v1  ;;  %v1459_v1 = vld [vmem:[%s2222_s0 + $0x54] sm:$0xf] }
  0x27   :  { %v1115_v4 = vor.u32 %v1459_v1, %v1112_v2  ;;  %v1371_v1 = vor.u32 %v1498_v59, %v1370_v58  ;;  %v1501_v58 = vld [vmem:[%s2222_s0 + $0x1a4] sm:$0xf]  ;;  %v1388_v59 = vld [vmem:[%s2222_s0 + $0x1a8] sm:$0xf0] }
  0x28   :  { %1258 = vmatmul.msk.bf16.gmra.mxu3 %vm179_vm0, %v1215_v31  ;;  %1170 = vmatmul.msk.bf16.gmra.mxu1 %vm179_vm0, %v1091_v32  ;;  %v1242_v31 = vld [vmem:[%s2222_s0 + $0xe0] sm:$0xf]  ;;  %v1478_v32 = vld [vmem:[%s2222_s0 + $0xe4] sm:$0xf0] }
  0x29   :  { %v1243_v34 = vor.u32 %v1478_v32, %v1242_v31  ;;  %v1383_v32 = vor.u32 %v1499_v24, %v1380_v25 }
  0x2a   :  { %903 = vmatpush.bf16.msrb.mxu0 %v1445_v9  ;;  %v1103_v9 = vor.u32 %v1458_v6, %v1102_v5  ;;  %v1485_v5 = vld [vmem:[%s2222_s0 + $0x124] sm:$0xf]  ;;  %v1300_v6 = vld [vmem:[%s2222_s0 + $0x128] sm:$0xf0] }
  0x2e   :  { %904 = vmatpush.bf16.msrb.mxu0 %v1444_v10  ;;  %v1227_v10 = vor.u32 %v1474_v8, %v1226_v7  ;;  %v1298_v7 = vld [vmem:[%s2222_s0 + $0x120] sm:$0xf]  ;;  %v1486_v8 = vld [vmem:[%s2222_s0 + $0x124] sm:$0xf0] }
  0x31   :  { %217 = vmatmul.bf16.gmra.mxu0 %v1079_v37  ;;  %444 = vmatmul.bf16.gmra.mxu2 %v1203_v38  ;;  %v1282_v37 = vld [vmem:[%s2222_s0 + $0x100] sm:$0xf]  ;;  %v1482_v38 = vld [vmem:[%s2222_s0 + $0x104] sm:$0xf0] }
  0x32   :  { %905 = vmatpush.bf16.msrb.mxu0 %v1443_v11  ;;  %v1477_v11 = vld [vmem:[%s2222_s0 + $0xe4] sm:$0xf]  ;;  %v1283_v40 = vor.u32 %v1482_v38, %v1282_v37  ;;  %v1308_v37 = vld [vmem:[%s2222_s0 + $0x138] sm:$0xf0]  ;;  %v1306_v38 = vld [vmem:[%s2222_s0 + $0x130] sm:$0xf] }
  0x33   :  { %v1247_v15 = vor.u32 %v1477_v11, %v1244_v12  ;;  %v1303_v11 = vor.u32 %v1485_v5, %v1300_v6  ;;  %v1299_v12 = vor.u32 %v1486_v8, %v1298_v7  ;;  %v1489_v7 = vld [vmem:[%s2222_s0 + $0x144] sm:$0xf]  ;;  %v1316_v8 = vld [vmem:[%s2222_s0 + $0x148] sm:$0xf0] }
  0x36   :  { %906 = vmatpush.bf16.msrb.mxu0 %v1442_v16  ;;  %v1123_v16 = vor.u32 %v1461_v13, %v1120_v14 }
  0x38   :  { %1259 = vmatmul.msk.bf16.gmra.mxu3 %vm179_vm0, %v1223_v43  ;;  %1171 = vmatmul.msk.bf16.gmra.mxu1 %vm179_vm0, %v1099_v44  ;;  %v1464_v43 = vld [vmem:[%s2222_s0 + $0x74] sm:$0xf0]  ;;  %v1250_v44 = vld [vmem:[%s2222_s0 + $0xf0] sm:$0xf] }
  0x39   :  { %v1127_v48 = vor.u32 %v1464_v43, %v1126_v42 }
  0x3a   :  { %907 = vmatpush.bf16.msrb.mxu0 %v1441_v19  ;;  %v1234_v19 = vld [vmem:[%s2222_s0 + $0xd0] sm:$0xf] }
  0x3e   :  { %908 = vmatpush.bf16.msrb.mxu0 %v1440_v20  ;;  %v1476_v20 = vld [vmem:[%s2222_s0 + $0xd4] sm:$0xf0] }
  0x3f   :  { %v1235_v22 = vor.u32 %v1476_v20, %v1234_v19 }
  0x41   :  { %222 = vmatmul.bf16.gmra.mxu0 %v1087_v49  ;;  %449 = vmatmul.bf16.gmra.mxu2 %v1211_v50  ;;  %v1251_v49 = vor.u32 %v1480_v45, %v1250_v44  ;;  %v1483_v50 = vld [vmem:[%s2222_s0 + $0x114] sm:$0xf]  ;;  %v1311_v45 = vor.u32 %v1487_v36, %v1308_v37 }
  0x48   :  { %1260 = vmatmul.msk.bf16.gmra.mxu3 %vm179_vm0, %v1231_v55  ;;  %1172 = vmatmul.msk.bf16.gmra.mxu1 %vm179_vm0, %v1107_v56  ;;  %v1295_v55 = vor.u32 %v1483_v50, %v1292_v51  ;;  %v1291_v56 = vor.u32 %v1484_v53, %v1290_v52 }
  0x51   :  { %227 = vmatmul.bf16.gmra.mxu0 %v1095_v61  ;;  %454 = vmatmul.bf16.gmra.mxu2 %v1219_v62  ;;  %v1372_v61 = vld [vmem:[%s2222_s0 + $0x188] sm:$0xf0] }
  0x52   :  { %v1375_v2 = vor.u32 %v1497_v60, %v1372_v61 }
  0x58   :  { %1261 = vmatmul.msk.bf16.gmra.mxu3 %vm179_vm0, %v1239_v3  ;;  %1173 = vmatmul.msk.bf16.gmra.mxu1 %vm179_vm0, %v1115_v4 }
  0x61   :  { %232 = vmatmul.bf16.gmra.mxu0 %v1103_v9  ;;  %459 = vmatmul.bf16.gmra.mxu2 %v1227_v10 }
  0x68   :  { %1262 = vmatmul.msk.bf16.gmra.mxu3 %vm179_vm0, %v1247_v15  ;;  %1174 = vmatmul.msk.bf16.gmra.mxu1 %vm179_vm0, %v1123_v16 }
  0x71   :  { %237 = vmatmul.bf16.gmra.mxu0 %v1111_v21  ;;  %464 = vmatmul.bf16.gmra.mxu2 %v1235_v22  ;;  %v1378_v22 = vld [vmem:[%s2222_s0 + $0x190] sm:$0xf] }
  0x72   :  { %v1379_v31 = vor.u32 %v1500_v23, %v1378_v22 }
  0x78   :  { %1263 = vmatmul.msk.bf16.gmra.mxu3 %vm179_vm0, %v1255_v27  ;;  %1175 = vmatmul.msk.bf16.gmra.mxu1 %vm179_vm0, %v1131_v28 }
  0x81   :  { %242 = vmatmul.bf16.gmra.mxu0 %v1119_v33  ;;  %469 = vmatmul.bf16.gmra.mxu2 %v1243_v34 }
  0x85   :  { %v262_v41 = vpop.f32.mrf.mxu1 }
  0x88   :  { %1344 = vmatmul.msk.bf16.vlgmr.msrb.gmra.mxu3 %vm179_vm0, %v1287_v39  ;;  %682 = vmatmul.bf16.vlgmr.msrb.gmra.mxu1 %v1283_v40  ;;  %v1488_v39 = vld [vmem:[%s2222_s0 + $0x134] sm:$0xf0] }
  0x8b   :  { %v489_v46 = vpop.f32.mrf.mxu3 }
  0x8d   :  { %v264_v47 = vpop.f32.mrf.mxu1 }
  0x91   :  { %247 = vmatmul.bf16.gmra.mxu0 %v1127_v48  ;;  %474 = vmatmul.bf16.gmra.mxu2 %v1251_v49 }
  0x93   :  { %v491_v54 = vpop.f32.mrf.mxu3 }
  0x95   :  { %v267_v57 = vpop.f32.mrf.mxu1 }
  0x98   :  { %1345 = vmatmul.msk.bf16.gmra.mxu3 %vm179_vm0, %v1295_v55  ;;  %687 = vmatmul.bf16.gmra.mxu1 %v1291_v56  ;;  %v1386_v56 = vld [vmem:[%s2222_s0 + $0x1a0] sm:$0xf] }
  0x9b   :  { %v494_v62 = vpop.f32.mrf.mxu3 }
  0x9d   :  { %v1818_v0 = vpop.f32.mrf.mxu1 }
  0x9e   :  { %v213_v3 = vpop.f32.mrf.mxu0 }
  0x9f   :  { %v214_v4 = vadd.f32 %v1816_v63, %v213_v3  ;;  %v1391_v3 = vor.u32 %v1501_v58, %v1388_v59 }
  0xa1   :  { %v263_v9 = vadd.f32 %v262_v41, %v214_v4  ;;  %909 = vmatmul.bf16.vlgmr.msrb.gmra.mxu0 %v1371_v1  ;;  %1432 = vmatmul.msk.bf16.vlgmr.msrb.gmra.mxu2 %vm179_vm0, %v1375_v2 }
  0xa3   :  { %v1834_v10 = vpop.f32.mrf.mxu3  ;;  %v302_v19 = vmax.f32 %v263_v9, 0.0  ;;  %v1314_v9 = vld [vmem:[%s2222_s0 + $0x140] sm:$0xf] }
  0xa4   :  { %v440_v13 = vpop.f32.mrf.mxu2 }
  0xa5   :  { %v1836_v14 = vpop.f32.mrf.mxu1  ;;  %v441_v15 = vadd.f32 %v1816_v63, %v440_v13 }
  0xa6   :  { %v215_v16 = vpop.f32.mrf.mxu0 }
  0xa7   :  { %v490_v17 = vadd.f32 %v489_v46, %v441_v15  ;;  %v216_v18 = vadd.f32 %v1816_v63, %v215_v16  ;;  %v1307_v46 = vor.u32 %v1488_v39, %v1306_v38 }
  0xa8   :  { %1346 = vmatmul.msk.bf16.gmra.mxu3 %vm179_vm0, %v1303_v11  ;;  %692 = vmatmul.bf16.gmra.mxu1 %v1299_v12  ;;  %v1490_v11 = vld [vmem:[%s2222_s0 + $0x144] sm:$0xf0] }
  0xa9   :  { %v529_v20 = vmax.f32 %v490_v17, 0.0  ;;  %v265_v21 = vadd.f32 %v264_v47, %v216_v18  ;;  %v1319_v17 = vor.u32 %v1489_v7, %v1316_v8  ;;  %v1315_v18 = vor.u32 %v1490_v11, %v1314_v9 }
  0xab   :  { %v1853_v26 = vpop.f32.mrf.mxu3  ;;  %v1855_v27 = vmax.f32 %v302_v19, %v529_v20  ;;  %v303_v40 = vmax.f32 %v265_v21, 0.0 }
  0xac   :  { %v442_v28 = vpop.f32.mrf.mxu2 }
  0xad   :  { %v1857_v29 = vpop.f32.mrf.mxu1  ;;  %v443_v30 = vadd.f32 %v1816_v63, %v442_v28 }
  0xae   :  { %v218_v33 = vpop.f32.mrf.mxu0 }
  0xaf   :  { %v492_v34 = vadd.f32 %v491_v54, %v443_v30  ;;  %v219_v35 = vadd.f32 %v1816_v63, %v218_v33  ;;  %v1394_v30 = vld [vmem:[%s2222_s0 + $0x1b0] sm:$0xf] }
  0xb1   :  { %v530_v41 = vmax.f32 %v492_v34, 0.0  ;;  %v268_v42 = vadd.f32 %v267_v57, %v219_v35  ;;  %914 = vmatmul.bf16.gmra.mxu0 %v1379_v31  ;;  %1433 = vmatmul.msk.bf16.gmra.mxu2 %vm179_vm0, %v1383_v32  ;;  %v1502_v57 = vld [vmem:[%s2222_s0 + $0x1a4] sm:$0xf0]  ;;  %v1504_v31 = vld [vmem:[%s2222_s0 + $0x1b4] sm:$0xf0] }
  0xb2   :  { %v1387_v2 = vor.u32 %v1502_v57, %v1386_v56  ;;  %v1396_v32 = vld [vmem:[%s2222_s0 + $0x1b8] sm:$0xf0]  ;;  %v1395_v37 = vor.u32 %v1504_v31, %v1394_v30 }
  0xb3   :  { %v1874_v43 = vpop.f32.mrf.mxu3  ;;  %v1876_v44 = vmax.f32 %v303_v40, %v530_v41  ;;  %v304_v53 = vmax.f32 %v268_v42, 0.0  ;;  %v1491_v42 = vld [vmem:[%s2222_s0 + $0x154] sm:$0xf] }
  0xb4   :  { %v445_v47 = vpop.f32.mrf.mxu2 }
  0xb5   :  { %v1878_v48 = vpop.f32.mrf.mxu1  ;;  %v446_v49 = vadd.f32 %v1816_v63, %v445_v47  ;;  %v1492_v47 = vld [vmem:[%s2222_s0 + $0x154] sm:$0xf0] }
  0xb6   :  { %v220_v50 = vpop.f32.mrf.mxu0 }
  0xb7   :  { %v495_v51 = vadd.f32 %v494_v62, %v446_v49  ;;  %v221_v52 = vadd.f32 %v1816_v63, %v220_v50 }
  0xb8   :  { %1347 = vmatmul.msk.bf16.gmra.mxu3 %vm179_vm0, %v1311_v45  ;;  %697 = vmatmul.bf16.gmra.mxu1 %v1307_v46  ;;  %v1324_v45 = vld [vmem:[%s2222_s0 + $0x158] sm:$0xf0]  ;;  %v1322_v46 = vld [vmem:[%s2222_s0 + $0x150] sm:$0xf] }
  0xb9   :  { %v531_v54 = vmax.f32 %v495_v51, 0.0  ;;  %v270_v55 = vadd.f32 %v1818_v0, %v221_v52 }
  0xbb   :  { %v1896_v60 = vpop.f32.mrf.mxu3  ;;  %v1898_v61 = vmax.f32 %v304_v53, %v531_v54  ;;  %v305_v12 = vmax.f32 %v270_v55, 0.0  ;;  %v1327_v53 = vor.u32 %v1491_v42, %v1324_v45  ;;  %v1323_v54 = vor.u32 %v1492_v47, %v1322_v46  ;;  %v1412_v42 = vld [vmem:[%s2222_s0 + $0x1d8] sm:$0xf0] }
  0xbc   :  { %v447_v62 = vpop.f32.mrf.mxu2 }
  0xbd   :  { %v1900_v0 = vpop.f32.mrf.mxu1  ;;  %v448_v1 = vadd.f32 %v1816_v63, %v447_v62 }
  0xbe   :  { %v223_v4 = vpop.f32.mrf.mxu0 }
  0xbf   :  { %v497_v5 = vadd.f32 %v1834_v10, %v448_v1  ;;  %v224_v6 = vadd.f32 %v1816_v63, %v223_v4  ;;  %v1506_v4 = vld [vmem:[%s2222_s0 + $0x1c4] sm:$0xf0] }
  0xc1   :  { %v532_v10 = vmax.f32 %v497_v5, 0.0  ;;  %v273_v13 = vadd.f32 %v1836_v14, %v224_v6  ;;  %919 = vmatmul.bf16.gmra.mxu0 %v1387_v2  ;;  %1434 = vmatmul.msk.bf16.gmra.mxu2 %vm179_vm0, %v1391_v3  ;;  %v1402_v3 = vld [vmem:[%s2222_s0 + $0x1c0] sm:$0xf]  ;;  %v1404_v5 = vld [vmem:[%s2222_s0 + $0x1c8] sm:$0xf0] }
  0xc2   :  { %v1403_v11 = vor.u32 %v1506_v4, %v1402_v3 }
  0xc3   :  { %v1919_v15 = vpop.f32.mrf.mxu3  ;;  %v1921_v16 = vmax.f32 %v305_v12, %v532_v10  ;;  %v306_v14 = vmax.f32 %v273_v13, 0.0 }
  0xc4   :  { %v450_v19 = vpop.f32.mrf.mxu2 }
  0xc5   :  { %v1923_v20 = vpop.f32.mrf.mxu1  ;;  %v451_v21 = vadd.f32 %v1816_v63, %v450_v19  ;;  %v1332_v19 = vld [vmem:[%s2222_s0 + $0x168] sm:$0xf0] }
  0xc6   :  { %v225_v22 = vpop.f32.mrf.mxu0 }
  0xc7   :  { %v500_v23 = vadd.f32 %v1853_v26, %v451_v21  ;;  %v226_v24 = vadd.f32 %v1816_v63, %v225_v22  ;;  %v1503_v26 = vld [vmem:[%s2222_s0 + $0x1b4] sm:$0xf]  ;;  %v1330_v21 = vld [vmem:[%s2222_s0 + $0x160] sm:$0xf]  ;;  %v1494_v22 = vld [vmem:[%s2222_s0 + $0x164] sm:$0xf0] }
  0xc8   :  { %1348 = vmatmul.msk.bf16.gmra.mxu3 %vm179_vm0, %v1319_v17  ;;  %702 = vmatmul.bf16.gmra.mxu1 %v1315_v18  ;;  %v1399_v38 = vor.u32 %v1503_v26, %v1396_v32  ;;  %v1493_v18 = vld [vmem:[%s2222_s0 + $0x164] sm:$0xf]  ;;  %v1331_v30 = vor.u32 %v1494_v22, %v1330_v21  ;;  %v1420_v21 = vld [vmem:[%s2222_s0 + $0x1e8] sm:$0xf0] }
  0xc9   :  { %v533_v25 = vmax.f32 %v500_v23, 0.0  ;;  %v275_v28 = vadd.f32 %v1857_v29, %v226_v24 }
  0xcb   :  { %v1942_v33 = vpop.f32.mrf.mxu3  ;;  %v1944_v34 = vmax.f32 %v306_v14, %v533_v25  ;;  %v307_v49 = vmax.f32 %v275_v28, 0.0  ;;  %v1335_v28 = vor.u32 %v1493_v18, %v1332_v19  ;;  %v1418_v18 = vld [vmem:[%s2222_s0 + $0x1e0] sm:$0xf]  ;;  %v1510_v19 = vld [vmem:[%s2222_s0 + $0x1e4] sm:$0xf0] }
  0xcc   :  { %v452_v29 = vpop.f32.mrf.mxu2 }
  0xcd   :  { %v1946_v35 = vpop.f32.mrf.mxu1  ;;  %v453_v36 = vadd.f32 %v1816_v63, %v452_v29 }
  0xce   :  { %v228_v39 = vpop.f32.mrf.mxu0 }
  0xcf   :  { %v502_v40 = vadd.f32 %v1874_v43, %v453_v36  ;;  %v229_v41 = vadd.f32 %v1816_v63, %v228_v39 }
  0xd1   :  { %v534_v43 = vmax.f32 %v502_v40, 0.0  ;;  %v278_v50 = vadd.f32 %v1878_v48, %v229_v41  ;;  %924 = vmatmul.bf16.gmra.mxu0 %v1395_v37  ;;  %1435 = vmatmul.msk.bf16.gmra.mxu2 %vm179_vm0, %v1399_v38  ;;  %v1410_v40 = vld [vmem:[%s2222_s0 + $0x1d0] sm:$0xf]  ;;  %v1508_v41 = vld [vmem:[%s2222_s0 + $0x1d4] sm:$0xf0] }
  0xd3   :  { %v1965_v51 = vpop.f32.mrf.mxu3  ;;  %v1967_v52 = vmax.f32 %v307_v49, %v534_v43  ;;  %v308_v48 = vmax.f32 %v278_v50, 0.0  ;;  %v1411_v43 = vor.u32 %v1508_v41, %v1410_v40 }
  0xd4   :  { %v455_v55 = vpop.f32.mrf.mxu2 }
  0xd5   :  { %v1969_v56 = vpop.f32.mrf.mxu1  ;;  %v456_v57 = vadd.f32 %v1816_v63, %v455_v55 }
  0xd6   :  { %v230_v58 = vpop.f32.mrf.mxu0 }
  0xd7   :  { %v505_v59 = vadd.f32 %v1896_v60, %v456_v57  ;;  %v231_v62 = vadd.f32 %v1816_v63, %v230_v58  ;;  %v1505_v60 = vld [vmem:[%s2222_s0 + $0x1c4] sm:$0xf]  ;;  %v1495_v57 = vld [vmem:[%s2222_s0 + $0x174] sm:$0xf]  ;;  %v1340_v58 = vld [vmem:[%s2222_s0 + $0x178] sm:$0xf0] }
  0xd8   :  { %1349 = vmatmul.msk.bf16.gmra.mxu3 %vm179_vm0, %v1327_v53  ;;  %707 = vmatmul.bf16.gmra.mxu1 %v1323_v54  ;;  %v1407_v12 = vor.u32 %v1505_v60, %v1404_v5  ;;  %v1343_v4 = vor.u32 %v1495_v57, %v1340_v58 }
  0xd9   :  { %v535_v1 = vmax.f32 %v505_v59, 0.0  ;;  %v280_v2 = vadd.f32 %v1900_v0, %v231_v62  ;;  %v1338_v59 = vld [vmem:[%s2222_s0 + $0x170] sm:$0xf]  ;;  %v1496_v62 = vld [vmem:[%s2222_s0 + $0x174] sm:$0xf0] }
  0xda   :  { %v1339_v60 = vor.u32 %v1496_v62, %v1338_v59 }
  0xdb   :  { %v1988_v6 = vpop.f32.mrf.mxu3  ;;  %v1990_v7 = vmax.f32 %v308_v48, %v535_v1  ;;  %v309_v23 = vmax.f32 %v280_v2, 0.0 }
  0xdc   :  { %v457_v0 = vpop.f32.mrf.mxu2 }
  0xdd   :  { %v1992_v8 = vpop.f32.mrf.mxu1  ;;  %v458_v9 = vadd.f32 %v1816_v63, %v457_v0 }
  0xde   :  { %v233_v10 = vpop.f32.mrf.mxu0 }
  0xdf   :  { %v507_v13 = vadd.f32 %v1919_v15, %v458_v9  ;;  %v234_v17 = vadd.f32 %v1816_v63, %v233_v10 }
  0xe1   :  { %v536_v15 = vmax.f32 %v507_v13, 0.0  ;;  %v283_v24 = vadd.f32 %v1923_v20, %v234_v17  ;;  %929 = vmatmul.bf16.gmra.mxu0 %v1403_v11  ;;  %1436 = vmatmul.msk.bf16.gmra.mxu2 %vm179_vm0, %v1407_v12 }
  0xe3   :  { %v2011_v14 = vpop.f32.mrf.mxu3  ;;  %v2013_v25 = vmax.f32 %v309_v23, %v536_v15  ;;  %v310_v20 = vmax.f32 %v283_v24, 0.0 }
  0xe4   :  { %v460_v31 = vpop.f32.mrf.mxu2 }
  0xe5   :  { %v2015_v26 = vpop.f32.mrf.mxu1  ;;  %v461_v32 = vadd.f32 %v1816_v63, %v460_v31 }
  0xe6   :  { %v235_v29 = vpop.f32.mrf.mxu0 }
  0xe7   :  { %v510_v36 = vadd.f32 %v1942_v33, %v461_v32  ;;  %v236_v37 = vadd.f32 %v1816_v63, %v235_v29  ;;  %v1507_v33 = vld [vmem:[%s2222_s0 + $0x1d4] sm:$0xf] }
  0xe8   :  { %1350 = vmatmul.msk.bf16.gmra.mxu3 %vm179_vm0, %v1335_v28  ;;  %712 = vmatmul.bf16.gmra.mxu1 %v1331_v30  ;;  %v1415_v50 = vor.u32 %v1507_v33, %v1412_v42  ;;  %v1419_v28 = vor.u32 %v1510_v19, %v1418_v18 }
  0xe9   :  { %v537_v38 = vmax.f32 %v510_v36, 0.0  ;;  %v285_v39 = vadd.f32 %v1946_v35, %v236_v37 }
  0xeb   :  { %v519_v45 = vpop.f32.mrf.mxu3  ;;  %v2034_v46 = vmax.f32 %v310_v20, %v537_v38  ;;  %v311_v48 = vmax.f32 %v285_v39, 0.0 }
  0xec   :  { %v462_v35 = vpop.f32.mrf.mxu2 }
  0xed   :  { %v294_v47 = vpop.f32.mrf.mxu1  ;;  %v463_v49 = vadd.f32 %v1816_v63, %v462_v35 }
  0xee   :  { %v238_v53 = vpop.f32.mrf.mxu0 }
  0xef   :  { %v512_v54 = vadd.f32 %v1965_v51, %v463_v49  ;;  %v239_v55 = vadd.f32 %v1816_v63, %v238_v53  ;;  %v1512_v53 = vld [vmem:[%s2222_s0 + $0x1f4] sm:$0xf0] }
  0xf1   :  { %v538_v51 = vmax.f32 %v512_v54, 0.0  ;;  %v288_v1 = vadd.f32 %v1969_v56, %v239_v55  ;;  %934 = vmatmul.bf16.gmra.mxu0 %v1411_v43  ;;  %1437 = vmatmul.msk.bf16.gmra.mxu2 %vm179_vm0, %v1415_v50  ;;  %v1511_v54 = vld [vmem:[%s2222_s0 + $0x1f4] sm:$0xf] }
  0xf3   :  { %v521_v2 = vpop.f32.mrf.mxu3  ;;  %v2053_v3 = vmax.f32 %v311_v48, %v538_v51  ;;  %v312_v56 = vmax.f32 %v288_v1, 0.0 }
  0xf4   :  { %v465_v5 = vpop.f32.mrf.mxu2 }
  0xf5   :  { %v297_v0 = vpop.f32.mrf.mxu1  ;;  %v466_v9 = vadd.f32 %v1816_v63, %v465_v5 }
  0xf6   :  { %v240_v11 = vpop.f32.mrf.mxu0 }
  0xf7   :  { %v515_v12 = vadd.f32 %v1988_v6, %v466_v9  ;;  %v241_v10 = vadd.f32 %v1816_v63, %v240_v11  ;;  %v1509_v6 = vld [vmem:[%s2222_s0 + $0x1e4] sm:$0xf] }
  0xf8   :  { %1351 = vmatmul.msk.bf16.gmra.mxu3 %vm179_vm0, %v1343_v4  ;;  %717 = vmatmul.bf16.gmra.mxu1 %v1339_v60  ;;  %v1423_v30 = vor.u32 %v1509_v6, %v1420_v21 }
  0xf9   :  { %v539_v13 = vmax.f32 %v515_v12, 0.0  ;;  %v290_v17 = vadd.f32 %v1992_v8, %v241_v10 }
  0xfb   :  { %v524_v22 = vpop.f32.mrf.mxu3  ;;  %v2072_v23 = vmax.f32 %v312_v56, %v539_v13  ;;  %v313_v36 = vmax.f32 %v290_v17, 0.0 }
  0xfc   :  { %v467_v8 = vpop.f32.mrf.mxu2 }
  0xfd   :  { %v299_v15 = vpop.f32.mrf.mxu1  ;;  %v468_v24 = vadd.f32 %v1816_v63, %v467_v8 }
  0xfe   :  { %v243_v31 = vpop.f32.mrf.mxu0 }
  0xff   :  { %v517_v32 = vadd.f32 %v2011_v14, %v468_v24  ;;  %v244_v29 = vadd.f32 %v1816_v63, %v243_v31 }
 0x101   :  { %v540_v37 = vmax.f32 %v517_v32, 0.0  ;;  %v293_v20 = vadd.f32 %v2015_v26, %v244_v29  ;;  %939 = vmatmul.bf16.gmra.mxu0 %v1419_v28  ;;  %1438 = vmatmul.msk.bf16.gmra.mxu2 %vm179_vm0, %v1423_v30  ;;  %v1426_v26 = vld [vmem:[%s2222_s0 + $0x1f0] sm:$0xf] }
 0x102   :  { %v1427_v62 = vor.u32 %v1512_v53, %v1426_v26 }
 0x103   :  { %v526_v38 = vpop.f32.mrf.mxu3  ;;  %v2079_v39 = vmax.f32 %v313_v36, %v540_v37  ;;  %v314_v49 = vmax.f32 %v293_v20, 0.0 }
 0x104   :  { %v470_v40 = vpop.f32.mrf.mxu2 }
 0x105   :  { %v683_v41 = vpop.f32.mrf.mxu1  ;;  %v471_v33 = vadd.f32 %v1816_v63, %v470_v40 }
 0x106   :  { %v245_v42 = vpop.f32.mrf.mxu0  ;;  %v684_v30 = vadd.f32 %v1816_v63, %v683_v41 }
 0x107   :  { %v520_v35 = vadd.f32 %v519_v45, %v471_v33  ;;  %v246_v14 = vadd.f32 %v1816_v63, %v245_v42  ;;  %v1428_v45 = vld [vmem:[%s2222_s0 + $0x1f8] sm:$0xf0] }
 0x108   :  { %v1431_v48 = vor.u32 %v1511_v54, %v1428_v45 }
 0x109   :  { %v541_v43 = vmax.f32 %v520_v35, 0.0  ;;  %v295_v50 = vadd.f32 %v294_v47, %v246_v14 }
 0x10b   :  { %v732_v55 = vpop.f32.mrf.mxu3  ;;  %v2095_v57 = vmax.f32 %v314_v49, %v541_v43  ;;  %v315_v60 = vmax.f32 %v295_v50, 0.0 }
 0x10c   :  { %v472_v47 = vpop.f32.mrf.mxu2  ;;  %v733_v20 = vadd.f32 %v732_v55, %v684_v30 }
 0x10d   :  { %v685_v58 = vpop.f32.mrf.mxu1  ;;  %v473_v59 = vadd.f32 %v1816_v63, %v472_v47 }
 0x10e   :  { %v248_v51 = vpop.f32.mrf.mxu0  ;;  %v772_v42 = vmax.f32 %v733_v20, 0.0  ;;  %v686_v43 = vadd.f32 %v1816_v63, %v685_v58 }
 0x10f   :  { %v522_v1 = vadd.f32 %v521_v2, %v473_v59  ;;  %v249_v4 = vadd.f32 %v1816_v63, %v248_v51 }
 0x111   :  { %v542_v5 = vmax.f32 %v522_v1, 0.0  ;;  %v298_v9 = vadd.f32 %v297_v0, %v249_v4  ;;  %944 = vmatmul.bf16.gmra.mxu0 %v1427_v62  ;;  %1439 = vmatmul.msk.bf16.gmra.mxu2 %vm179_vm0, %v1431_v48 }
 0x113   :  { %v734_v11 = vpop.f32.mrf.mxu3  ;;  %v2100_v12 = vmax.f32 %v315_v60, %v542_v5  ;;  %v316_v2 = vmax.f32 %v298_v9, 0.0 }
 0x114   :  { %v475_v10 = vpop.f32.mrf.mxu2 }
 0x115   :  { %v688_v56 = vpop.f32.mrf.mxu1  ;;  %v476_v13 = vadd.f32 %v1816_v63, %v475_v10 }
 0x116   :  { %v250_v17 = vpop.f32.mrf.mxu0  ;;  %v689_v55 = vadd.f32 %v1816_v63, %v688_v56 }
 0x117   :  { %v525_v18 = vadd.f32 %v524_v22, %v476_v13  ;;  %v251_v19 = vadd.f32 %v1816_v63, %v250_v17 }
 0x119   :  { %v543_v6 = vmax.f32 %v525_v18, 0.0  ;;  %v300_v21 = vadd.f32 %v299_v15, %v251_v19 }
 0x11b   :  { %v737_v8 = vpop.f32.mrf.mxu3  ;;  %v2104_v24 = vmax.f32 %v316_v2, %v543_v6  ;;  %v317_v36 = vmax.f32 %v300_v21, 0.0 }
 0x11c   :  { %v477_v0 = vpop.f32.mrf.mxu2  ;;  %v738_v51 = vadd.f32 %v737_v8, %v689_v55 }
 0x11d   :  { %v690_v28 = vpop.f32.mrf.mxu1  ;;  %v478_v31 = vadd.f32 %v1816_v63, %v477_v0 }
 0x11e   :  { %v910_v32 = vpop.f32.mrf.mxu0  ;;  %v774_v9 = vmax.f32 %v738_v51, 0.0  ;;  %v691_v56 = vadd.f32 %v1816_v63, %v690_v28 }
 0x11f   :  { %v527_v29 = vadd.f32 %v526_v38, %v478_v31  ;;  %v911_v22 = vadd.f32 %v1816_v63, %v910_v32  ;;  %v735_v38 = vadd.f32 %v734_v11, %v686_v43 }
 0x121   :  { %v544_v37 = vmax.f32 %v527_v29, 0.0  ;;  %v773_v58 = vmax.f32 %v735_v38, 0.0 }
 0x123   :  { %v739_v40 = vpop.f32.mrf.mxu3  ;;  %v2109_v33 = vmax.f32 %v317_v36, %v544_v37 }
 0x124   :  { %v959_v15 = vpop.f32.mrf.mxu2  ;;  %v740_v19 = vadd.f32 %v739_v40, %v691_v56 }
 0x125   :  { %v960_v35 = vadd.f32 %v959_v15, %v911_v22  ;;  %v693_v49 = vpop.f32.mrf.mxu1 }
 0x126   :  { %v912_v14 = vpop.f32.mrf.mxu0  ;;  %v694_v21 = vadd.f32 %v1816_v63, %v693_v49  ;;  %v775_v28 = vmax.f32 %v740_v19, 0.0 }
 0x127   :  { %v999_v41 = vmax.f32 %v960_v35, 0.0  ;;  %v913_v54 = vadd.f32 %v1816_v63, %v912_v14 }
 0x129   :  { %v1015_v50 = vmax.f32 %v772_v42, %v999_v41 }
 0x12b   :  { %v742_v26 = vpop.f32.mrf.mxu3  ;;  %v1031_v53 = vmax.f32 %v1855_v27, %v1015_v50 }
 0x12c   :  { %v961_v45 = vpop.f32.mrf.mxu2  ;;  %v743_v32 = vadd.f32 %v742_v26, %v694_v21 }
 0x12d   :  { %1048 = vst.msk [vmem:[%s2224_s3] sm:$0xff] %vm1047_vm1, %v1031_v53  ;;  %v962_v47 = vadd.f32 %v961_v45, %v913_v54  ;;  %v695_v48 = vpop.f32.mrf.mxu1 }
 0x12e   :  { %v915_v59 = vpop.f32.mrf.mxu0  ;;  %v776_v22 = vmax.f32 %v743_v32, 0.0  ;;  %v696_v42 = vadd.f32 %v1816_v63, %v695_v48 }
 0x12f   :  { %v1000_v62 = vmax.f32 %v962_v47, 0.0  ;;  %v916_v4 = vadd.f32 %v1816_v63, %v915_v59 }
 0x131   :  { %v1016_v1 = vmax.f32 %v773_v58, %v1000_v62 }
 0x133   :  { %v1032_v27 = vmax.f32 %v1876_v44, %v1016_v1  ;;  %v744_v5 = vpop.f32.mrf.mxu3 }
 0x134   :  { %v964_v60 = vpop.f32.mrf.mxu2  ;;  %v745_v43 = vadd.f32 %v744_v5, %v696_v42 }
 0x135   :  { %1049 = vst.msk [vmem:[%s2224_s3 + $0x8] sm:$0xff] %vm1047_vm1, %v1032_v27  ;;  %v965_v11 = vadd.f32 %v964_v60, %v916_v4  ;;  %v698_v18 = vpop.f32.mrf.mxu1 }
 0x136   :  { %v917_v10 = vpop.f32.mrf.mxu0  ;;  %v699_v26 = vadd.f32 %v1816_v63, %v698_v18  ;;  %v777_v45 = vmax.f32 %v745_v43, 0.0 }
 0x137   :  { %v1001_v13 = vmax.f32 %v965_v11, 0.0  ;;  %v918_v44 = vadd.f32 %v1816_v63, %v917_v10 }
 0x139   :  { %v1017_v17 = vmax.f32 %v774_v9, %v1001_v13 }
 0x13b   :  { %v1033_v2 = vmax.f32 %v1898_v61, %v1017_v17  ;;  %v747_v30 = vpop.f32.mrf.mxu3 }
 0x13c   :  { %v966_v6 = vpop.f32.mrf.mxu2  ;;  %v748_v47 = vadd.f32 %v747_v30, %v699_v26 }
 0x13d   :  { %1050 = vst.msk [vmem:[%s2224_s3 + $0x10] sm:$0xff] %vm1047_vm1, %v1033_v2  ;;  %v967_v8 = vadd.f32 %v966_v6, %v918_v44  ;;  %v700_v20 = vpop.f32.mrf.mxu1 }
 0x13e   :  { %v920_v0 = vpop.f32.mrf.mxu0  ;;  %v778_v51 = vmax.f32 %v748_v47, 0.0  ;;  %v701_v27 = vadd.f32 %v1816_v63, %v700_v20 }
 0x13f   :  { %v1002_v31 = vmax.f32 %v967_v8, 0.0  ;;  %v921_v36 = vadd.f32 %v1816_v63, %v920_v0 }
 0x141   :  { %v1018_v29 = vmax.f32 %v775_v28, %v1002_v31 }
 0x143   :  { %v1034_v61 = vmax.f32 %v1921_v16, %v1018_v29  ;;  %v749_v14 = vpop.f32.mrf.mxu3 }
 0x144   :  { %v969_v37 = vpop.f32.mrf.mxu2  ;;  %v750_v11 = vadd.f32 %v749_v14, %v701_v27 }
 0x145   :  { %1051 = vst.msk [vmem:[%s2224_s3 + $0x18] sm:$0xff] %vm1047_vm1, %v1034_v61  ;;  %v970_v40 = vadd.f32 %v969_v37, %v921_v36  ;;  %v703_v54 = vpop.f32.mrf.mxu1 }
 0x146   :  { %v922_v15 = vpop.f32.mrf.mxu0  ;;  %v704_v17 = vadd.f32 %v1816_v63, %v703_v54  ;;  %v779_v2 = vmax.f32 %v750_v11, 0.0 }
 0x147   :  { %v1003_v35 = vmax.f32 %v970_v40, 0.0  ;;  %v923_v16 = vadd.f32 %v1816_v63, %v922_v15 }
 0x149   :  { %v1019_v49 = vmax.f32 %v776_v22, %v1003_v35 }
 0x14b   :  { %v1035_v41 = vmax.f32 %v1944_v34, %v1019_v49  ;;  %v752_v34 = vpop.f32.mrf.mxu3 }
 0x14c   :  { %v971_v50 = vpop.f32.mrf.mxu2  ;;  %v753_v6 = vadd.f32 %v752_v34, %v704_v17 }
 0x14d   :  { %1052 = vst.msk [vmem:[%s2224_s3 + $0x20] sm:$0xff] %vm1047_vm1, %v1035_v41  ;;  %v972_v38 = vadd.f32 %v971_v50, %v923_v16  ;;  %v705_v5 = vpop.f32.mrf.mxu1 }
 0x14e   :  { %v925_v53 = vpop.f32.mrf.mxu0  ;;  %v780_v28 = vmax.f32 %v753_v6, 0.0  ;;  %v706_v36 = vadd.f32 %v1816_v63, %v705_v5 }
 0x14f   :  { %v1004_v55 = vmax.f32 %v972_v38, 0.0  ;;  %v926_v58 = vadd.f32 %v1816_v63, %v925_v53 }
 0x151   :  { %v1020_v59 = vmax.f32 %v777_v45, %v1004_v55 }
 0x153   :  { %v1036_v62 = vmax.f32 %v1967_v52, %v1020_v59  ;;  %v754_v13 = vpop.f32.mrf.mxu3 }
 0x154   :  { %v974_v48 = vpop.f32.mrf.mxu2  ;;  %v755_v20 = vadd.f32 %v754_v13, %v706_v36 }
 0x155   :  { %1053 = vst.msk [vmem:[%s2224_s3 + $0x28] sm:$0xff] %vm1047_vm1, %v1036_v62  ;;  %v975_v1 = vadd.f32 %v974_v48, %v926_v58 }
 0x156   :  { %v927_v4 = vpop.f32.mrf.mxu0  ;;  %v781_v49 = vmax.f32 %v755_v20, 0.0 }
 0x157   :  { %v1005_v60 = vmax.f32 %v975_v1, 0.0  ;;  %v928_v56 = vadd.f32 %v1816_v63, %v927_v4 }
 0x159   :  { %v1021_v9 = vmax.f32 %v778_v51, %v1005_v60 }
 0x15b   :  { %v1037_v10 = vmax.f32 %v1990_v7, %v1021_v9  ;;  %v708_v7 = vpop.f32.mrf.mxu1  ;;  %v757_v29 = vpop.f32.mrf.mxu3 }
 0x15c   :  { %v976_v52 = vpop.f32.mrf.mxu2  ;;  %v709_v42 = vadd.f32 %v1816_v63, %v708_v7 }
 0x15d   :  { %1054 = vst.msk [vmem:[%s2224_s3 + $0x30] sm:$0xff] %vm1047_vm1, %v1037_v10  ;;  %v977_v18 = vadd.f32 %v976_v52, %v928_v56 }
 0x15e   :  { %v930_v19 = vpop.f32.mrf.mxu0  ;;  %v758_v16 = vadd.f32 %v757_v29, %v709_v42 }
 0x15f   :  { %v1006_v44 = vmax.f32 %v977_v18, 0.0  ;;  %v931_v8 = vadd.f32 %v1816_v63, %v930_v19 }
 0x160   :  { %v782_v53 = vmax.f32 %v758_v16, 0.0 }
 0x161   :  { %v1022_v21 = vmax.f32 %v779_v2, %v1006_v44 }
 0x163   :  { %v1038_v0 = vmax.f32 %v2013_v25, %v1022_v21  ;;  %v710_v15 = vpop.f32.mrf.mxu1  ;;  %v759_v41 = vpop.f32.mrf.mxu3 }
 0x164   :  { %v979_v30 = vpop.f32.mrf.mxu2  ;;  %v711_v47 = vadd.f32 %v1816_v63, %v710_v15 }
 0x165   :  { %1055 = vst.msk [vmem:[%s2224_s3 + $0x38] sm:$0xff] %vm1047_vm1, %v1038_v0  ;;  %v980_v31 = vadd.f32 %v979_v30, %v931_v8 }
 0x166   :  { %v932_v32 = vpop.f32.mrf.mxu0  ;;  %v760_v62 = vadd.f32 %v759_v41, %v711_v47 }
 0x167   :  { %v1007_v61 = vmax.f32 %v980_v31, 0.0  ;;  %v933_v40 = vadd.f32 %v1816_v63, %v932_v32 }
 0x168   :  { %v783_v60 = vmax.f32 %v760_v62, 0.0 }
 0x169   :  { %v1023_v37 = vmax.f32 %v780_v28, %v1007_v61 }
 0x16b   :  { %v1039_v22 = vmax.f32 %v2034_v46, %v1023_v37  ;;  %v713_v55 = vpop.f32.mrf.mxu1  ;;  %v762_v34 = vpop.f32.mrf.mxu3 }
 0x16c   :  { %v981_v25 = vpop.f32.mrf.mxu2  ;;  %v714_v1 = vadd.f32 %v1816_v63, %v713_v55 }
 0x16d   :  { %1056 = vst.msk [vmem:[%s2224_s3 + $0x40] sm:$0xff] %vm1047_vm1, %v1039_v22  ;;  %v982_v35 = vadd.f32 %v981_v25, %v933_v40 }
 0x16e   :  { %v935_v14 = vpop.f32.mrf.mxu0  ;;  %v763_v11 = vadd.f32 %v762_v34, %v714_v1 }
 0x16f   :  { %v1008_v43 = vmax.f32 %v982_v35, 0.0  ;;  %v936_v46 = vadd.f32 %v1816_v63, %v935_v14 }
 0x170   :  { %v784_v17 = vmax.f32 %v763_v11, 0.0 }
 0x171   :  { %v1024_v50 = vmax.f32 %v781_v49, %v1008_v43 }
 0x173   :  { %v1040_v26 = vmax.f32 %v2053_v3, %v1024_v50  ;;  %v715_v9 = vpop.f32.mrf.mxu1  ;;  %v764_v52 = vpop.f32.mrf.mxu3 }
 0x174   :  { %v984_v38 = vpop.f32.mrf.mxu2  ;;  %v716_v2 = vadd.f32 %v1816_v63, %v715_v9 }
 0x175   :  { %1057 = vst.msk [vmem:[%s2224_s3 + $0x48] sm:$0xff] %vm1047_vm1, %v1040_v26  ;;  %v985_v54 = vadd.f32 %v984_v38, %v936_v46 }
 0x176   :  { %v937_v45 = vpop.f32.mrf.mxu0  ;;  %v765_v8 = vadd.f32 %v764_v52, %v716_v2 }
 0x177   :  { %v1009_v59 = vmax.f32 %v985_v54, 0.0  ;;  %v938_v3 = vadd.f32 %v1816_v63, %v937_v45 }
 0x178   :  { %v785_v29 = vmax.f32 %v765_v8, 0.0 }
 0x179   :  { %v1025_v58 = vmax.f32 %v782_v53, %v1009_v59 }
 0x17b   :  { %v1041_v48 = vmax.f32 %v2072_v23, %v1025_v58  ;;  %v718_v21 = vpop.f32.mrf.mxu1  ;;  %v767_v31 = vpop.f32.mrf.mxu3 }
 0x17c   :  { %v986_v51 = vpop.f32.mrf.mxu2  ;;  %v719_v30 = vadd.f32 %v1816_v63, %v718_v21 }
 0x17d   :  { %1058 = vst.msk [vmem:[%s2224_s3 + $0x50] sm:$0xff] %vm1047_vm1, %v1041_v48  ;;  %v987_v4 = vadd.f32 %v986_v51, %v938_v3 }
 0x17e   :  { %v940_v27 = vpop.f32.mrf.mxu0  ;;  %v768_v61 = vadd.f32 %v767_v31, %v719_v30 }
 0x17f   :  { %v1010_v5 = vmax.f32 %v987_v4, 0.0  ;;  %v941_v56 = vadd.f32 %v1816_v63, %v940_v27 }
 0x180   :  { %v786_v25 = vmax.f32 %v768_v61, 0.0 }
 0x181   :  { %v1026_v10 = vmax.f32 %v783_v60, %v1010_v5 }
 0x183   :  { %v1042_v23 = vmax.f32 %v2079_v39, %v1026_v10  ;;  %v720_v22 = vpop.f32.mrf.mxu1  ;;  %v769_v14 = vpop.f32.mrf.mxu3 }
 0x184   :  { %v989_v13 = vpop.f32.mrf.mxu2  ;;  %v721_v42 = vadd.f32 %v1816_v63, %v720_v22 }
 0x185   :  { %1059 = vst.msk [vmem:[%s2224_s3 + $0x58] sm:$0xff] %vm1047_vm1, %v1042_v23  ;;  %v990_v18 = vadd.f32 %v989_v13, %v941_v56 }
 0x186   :  { %v942_v19 = vpop.f32.mrf.mxu0  ;;  %v770_v41 = vadd.f32 %v769_v14, %v721_v42 }
 0x187   :  { %v1011_v44 = vmax.f32 %v990_v18, 0.0  ;;  %v943_v39 = vadd.f32 %v1816_v63, %v942_v19 }
 0x188   :  { %v787_v26 = vmax.f32 %v770_v41, 0.0 }
 0x189   :  { %v1027_v6 = vmax.f32 %v784_v17, %v1011_v44 }
 0x18b   :  { %v1043_v7 = vmax.f32 %v2095_v57, %v1027_v6 }
 0x18c   :  { %v991_v0 = vpop.f32.mrf.mxu2 }
 0x18d   :  { %1060 = vst.msk [vmem:[%s2224_s3 + $0x60] sm:$0xff] %vm1047_vm1, %v1043_v7  ;;  %v992_v28 = vadd.f32 %v991_v0, %v943_v39 }
 0x18e   :  { %v945_v32 = vpop.f32.mrf.mxu0 }
 0x18f   :  { %v1012_v36 = vmax.f32 %v992_v28, 0.0  ;;  %v946_v20 = vadd.f32 %v1816_v63, %v945_v32 }
 0x191   :  { %v1028_v37 = vmax.f32 %v785_v29, %v1012_v36 }
 0x193   :  { %v1044_v57 = vmax.f32 %v2100_v12, %v1028_v37 }
 0x194   :  { %v994_v40 = vpop.f32.mrf.mxu2 }
 0x195   :  { %1061 = vst.msk [vmem:[%s2224_s3 + $0x68] sm:$0xff] %vm1047_vm1, %v1044_v57  ;;  %v995_v15 = vadd.f32 %v994_v40, %v946_v20 }
 0x196   :  { %v947_v49 = vpop.f32.mrf.mxu0 }
 0x197   :  { %v1013_v35 = vmax.f32 %v995_v15, 0.0  ;;  %v948_v12 = vadd.f32 %v1816_v63, %v947_v49 }
 0x199   :  { %v1029_v43 = vmax.f32 %v786_v25, %v1013_v35 }
 0x19b   :  { %v1045_v16 = vmax.f32 %v2104_v24, %v1029_v43 }
 0x19c   :  { %v996_v50 = vpop.f32.mrf.mxu2 }
 0x19d   :  { %1062 = vst.msk [vmem:[%s2224_s3 + $0x70] sm:$0xff] %vm1047_vm1, %v1045_v16  ;;  %v997_v46 = vadd.f32 %v996_v50, %v948_v12 }
 0x19f   :  { %v1014_v38 = vmax.f32 %v997_v46, 0.0 }
 0x1a1   :  { %v1030_v53 = vmax.f32 %v787_v26, %v1014_v38 }
 0x1a3   :  { %v1046_v54 = vmax.f32 %v2109_v33, %v1030_v53 }
 0x1a5   :  { %1063 = vst.msk [vmem:[%s2224_s3 + $0x78] sm:$0xff] %vm1047_vm1, %v1046_v54 }

// kernel: netcv_forward.7
= control target key start
LH: loop header
LB: loop body
LE: loop exit
PB: predicated region body
PF: predicated region fallthrough
CT: control target
= control target key end

     0   :  { %vm201_vm0 = vcmask 261120   ;;  %vm599_vm1 = vcmask 523264   ;;  %s1265_s1 = inlined_call_operand.vmem [shape: bf16[288,64], index: 1, kind: input, shape index: {}]   ;;  %s1266_s0 = inlined_call_operand.vmem [shape: bf16[4,32,288], index: 0, kind: input, shape index: {}]   ;;  %s1267_s2 = inlined_call_operand.vmem [shape: f32[1,64], index: 2, kind: input, shape index: {}]   ;;  %s1268_s3 = inlined_call_operand.vmem [shape: f32[32,64], index: 3, kind: output, shape index: {}]  }
   0x1   :  { %v882_v0 = vld [vmem:[%s1265_s1 + $0x38] sm:$0xff]  ;;  %v892_v2 = vld [vmem:[%s1265_s1 + $0x88] sm:$0xff]  ;;  %v899_v3 = vld [vmem:[%s1265_s1 + $0x30] sm:$0xff] }
   0x2   :  { %v887_v1 = vld [vmem:[%s1265_s1 + $0x78] sm:$0xff]  ;;  %208 = vmatpush.bf16.msra.mxu0 %v882_v0  ;;  %v904_v4 = vld [vmem:[%s1265_s1 + $0x70] sm:$0xff]  ;;  %252 = vmatpush.bf16.msra.mxu2 %v892_v2  ;;  %v911_v5 = vld [vmem:[%s1265_s1 + $0x80] sm:$0xff] }
   0x3   :  { %227 = vmatpush.bf16.msra.mxu1 %v887_v1  ;;  %314 = vmatpush.bf16.msra.mxu3 %v882_v0  ;;  %v618_v6 = vld [vmem:[%s1266_s0 + $0x8] sm:$0xf]  ;;  %v828_v7 = vld [vmem:[%s1266_s0 + $0x10] sm:$0xf0]  ;;  %v939_v11 = vld [vmem:[%s1265_s1 + $0x20] sm:$0xff] }
   0x4   :  { %v619_v8 = vor.u32 %v828_v7, %v618_v6  ;;  %v924_v9 = vld [vmem:[%s1265_s1 + $0x28] sm:$0xff]  ;;  %v946_v12 = vld [vmem:[%s1265_s1 + $0x60] sm:$0xff]  ;;  %v953_v13 = vld [vmem:[%s1265_s1 + $0x18] sm:$0xff] }
   0x5   :  { %v931_v10 = vld [vmem:[%s1265_s1 + $0x68] sm:$0xff]  ;;  %v960_v14 = vld [vmem:[%s1265_s1 + $0x58] sm:$0xff]  ;;  %v967_v15 = vld [vmem:[%s1265_s1 + $0x10] sm:$0xff] }
   0x6   :  { %209 = vmatpush.bf16.msra.mxu0 %v899_v3  ;;  %253 = vmatpush.bf16.msra.mxu2 %v911_v5  ;;  %v974_v16 = vld [vmem:[%s1265_s1 + $0x50] sm:$0xff]  ;;  %v630_v17 = vld [vmem:[%s1266_s0 + $0x20] sm:$0xf]  ;;  %v831_v18 = vld [vmem:[%s1266_s0 + $0x28] sm:$0xf0] }
   0x7   :  { %228 = vmatpush.bf16.msra.mxu1 %v904_v4  ;;  %315 = vmatpush.bf16.msra.mxu3 %v899_v3  ;;  %v631_v19 = vor.u32 %v831_v18, %v630_v17  ;;  %v987_v20 = vld [vmem:[%s1265_s1 + $0x8] sm:$0xff]  ;;  %v1000_v22 = vld [vmem:[%s1265_s1] sm:$0xff]  ;;  %v612_v27 = vld [vmem:[%s1266_s0 + $0xc] sm:$0xf0] }
   0x8   :  { %v994_v21 = vld [vmem:[%s1265_s1 + $0x48] sm:$0xff]  ;;  %v1005_v23 = vld [vmem:[%s1265_s1 + $0x40] sm:$0xff]  ;;  %v716_v28 = vld [vmem:[%s1266_s0 + $0x30] sm:$0xf] }
   0x9   :  { %704 = vmatmul.msk.bf16.vlgmr.msra.gmra.mxu2 %vm201_vm0, %v619_v8  ;;  %v610_v24 = vld [vmem:[%s1266_s0] sm:$0xf]  ;;  %v827_v25 = vld [vmem:[%s1266_s0 + $0x8] sm:$0xf0]  ;;  %v826_v26 = vld [vmem:[%s1266_s0 + $0x4] sm:$0xf] }
   0xa   :  { %333 = vmatpush.bf16.msrb.mxu2 %v887_v1  ;;  %210 = vmatpush.bf16.msra.mxu0 %v924_v9  ;;  %v833_v29 = vld [vmem:[%s1266_s0 + $0x38] sm:$0xf0]  ;;  %v611_v30 = vor.u32 %v827_v25, %v610_v24  ;;  %v615_v31 = vor.u32 %v826_v26, %v612_v27  ;;  %v832_v33 = vld [vmem:[%s1266_s0 + $0x34] sm:$0xf]  ;;  %v718_v34 = vld [vmem:[%s1266_s0 + $0x3c] sm:$0xf0] }
   0xb   :  { %229 = vmatpush.bf16.msra.mxu1 %v931_v10  ;;  %316 = vmatpush.bf16.msra.mxu3 %v924_v9  ;;  %v717_v32 = vor.u32 %v833_v29, %v716_v28  ;;  %v721_v35 = vor.u32 %v832_v33, %v718_v34  ;;  %v622_v36 = vld [vmem:[%s1266_s0 + $0x18] sm:$0xf]  ;;  %v830_v37 = vld [vmem:[%s1266_s0 + $0x20] sm:$0xf0]  ;;  %v829_v38 = vld [vmem:[%s1266_s0 + $0x1c] sm:$0xf] }
   0xc   :  { %v624_v39 = vld [vmem:[%s1266_s0 + $0x24] sm:$0xf0]  ;;  %v836_v41 = vld [vmem:[%s1266_s0 + $0x50] sm:$0xf0]  ;;  %v623_v42 = vor.u32 %v830_v37, %v622_v36  ;;  %v835_v45 = vld [vmem:[%s1266_s0 + $0x4c] sm:$0xf] }
   0xd   :  { %v728_v40 = vld [vmem:[%s1266_s0 + $0x48] sm:$0xf]  ;;  %v627_v43 = vor.u32 %v829_v38, %v624_v39  ;;  %v730_v46 = vld [vmem:[%s1266_s0 + $0x54] sm:$0xf0]  ;;  %v834_v49 = vld [vmem:[%s1266_s0 + $0x40] sm:$0xf0] }
   0xe   :  { %334 = vmatpush.bf16.msrb.mxu2 %v904_v4  ;;  %211 = vmatpush.bf16.msra.mxu0 %v939_v11  ;;  %v729_v44 = vor.u32 %v836_v41, %v728_v40  ;;  %v733_v47 = vor.u32 %v835_v45, %v730_v46  ;;  %v724_v48 = vld [vmem:[%s1266_s0 + $0x38] sm:$0xf]  ;;  %v750_v50 = vld [vmem:[%s1266_s0 + $0x60] sm:$0xf]  ;;  %v839_v51 = vld [vmem:[%s1266_s0 + $0x68] sm:$0xf0] }
   0xf   :  { %230 = vmatpush.bf16.msra.mxu1 %v946_v12  ;;  %317 = vmatpush.bf16.msra.mxu3 %v939_v11  ;;  %v838_v52 = vld [vmem:[%s1266_s0 + $0x64] sm:$0xf]  ;;  %v752_v53 = vld [vmem:[%s1266_s0 + $0x6c] sm:$0xf0]  ;;  %v725_v54 = vor.u32 %v834_v49, %v724_v48  ;;  %v751_v55 = vor.u32 %v839_v51, %v750_v50  ;;  %v758_v57 = vld [vmem:[%s1266_s0 + $0x68] sm:$0xf] }
  0x10   :  { %v755_v56 = vor.u32 %v838_v52, %v752_v53  ;;  %v840_v58 = vld [vmem:[%s1266_s0 + $0x70] sm:$0xf0]  ;;  %v736_v60 = vld [vmem:[%s1266_s0 + $0x50] sm:$0xf]  ;;  %v837_v61 = vld [vmem:[%s1266_s0 + $0x58] sm:$0xf0] }
  0x11   :  { %v759_v59 = vor.u32 %v840_v58, %v758_v57  ;;  %v762_v62 = vld [vmem:[%s1266_s0 + $0x78] sm:$0xf]  ;;  %v842_v63 = vld [vmem:[%s1266_s0 + $0x80] sm:$0xf0]  ;;  %v843_v6 = vld [vmem:[%s1266_s0 + $0x88] sm:$0xf0] }
  0x12   :  { %335 = vmatpush.bf16.msrb.mxu2 %v931_v10  ;;  %212 = vmatpush.bf16.msra.mxu0 %v953_v13  ;;  %v784_v8 = vld [vmem:[%s1266_s0 + $0x90] sm:$0xf]  ;;  %v796_v17 = vld [vmem:[%s1266_s0 + $0xa8] sm:$0xf]  ;;  %v848_v18 = vld [vmem:[%s1266_s0 + $0xb0] sm:$0xf0] }
  0x13   :  { %231 = vmatpush.bf16.msra.mxu1 %v960_v14  ;;  %318 = vmatpush.bf16.msra.mxu3 %v953_v13  ;;  %v1204_v28 = vld [vmem:[%s1267_s2] ss:$0 sm:$0xff] }
  0x16   :  { %336 = vmatpush.bf16.msrb.mxu2 %v946_v12  ;;  %213 = vmatpush.bf16.msra.mxu0 %v967_v15 }
  0x17   :  { %232 = vmatpush.bf16.msra.mxu1 %v974_v16  ;;  %319 = vmatpush.bf16.msra.mxu3 %v967_v15 }
  0x19   :  { %705 = vmatmul.msk.bf16.gmra.mxu2 %vm201_vm0, %v631_v19  ;;  %v797_v19 = vor.u32 %v848_v18, %v796_v17 }
  0x1a   :  { %337 = vmatpush.bf16.msrb.mxu2 %v960_v14  ;;  %214 = vmatpush.bf16.msra.mxu0 %v987_v20 }
  0x1b   :  { %233 = vmatpush.bf16.msra.mxu1 %v994_v21  ;;  %320 = vmatpush.bf16.msra.mxu3 %v987_v20 }
  0x1e   :  { %338 = vmatpush.bf16.msrb.mxu2 %v974_v16  ;;  %215 = vmatpush.bf16.msra.mxu0 %v1000_v22 }
  0x1f   :  { %234 = vmatpush.bf16.msra.mxu1 %v1005_v23  ;;  %321 = vmatpush.bf16.msra.mxu3 %v1000_v22 }
  0x21   :  { %216 = vmatmul.bf16.vlgmr.msra.gmra.mxu0 %v611_v30 }
  0x22   :  { %339 = vmatpush.bf16.msrb.mxu2 %v994_v21  ;;  %235 = vmatmul.bf16.vlgmr.msra.gmra.mxu1 %v615_v31 }
  0x23   :  { %443 = vmatpush.bf16.msrb.mxu3 %v887_v1  ;;  %424 = vmatpush.bf16.msrb.mxu1 %v882_v0 }
  0x24   :  { %322 = vmatmul.bf16.vlgmr.msra.gmra.mxu3 %v717_v32  ;;  %358 = vmatpush.bf16.msrb.mxu0 %v892_v2 }
  0x26   :  { %340 = vmatpush.bf16.msrb.mxu2 %v1005_v23 }
  0x27   :  { %444 = vmatpush.bf16.msrb.mxu3 %v904_v4  ;;  %425 = vmatpush.bf16.msrb.mxu1 %v899_v3 }
  0x28   :  { %359 = vmatpush.bf16.msrb.mxu0 %v911_v5 }
  0x29   :  { %341 = vmatmul.bf16.vlgmr.msrb.gmra.mxu2 %v721_v35 }
  0x2a   :  { %468 = vmatpush.bf16.msra.mxu2 %v892_v2 }
  0x2b   :  { %445 = vmatpush.bf16.msrb.mxu3 %v931_v10  ;;  %426 = vmatpush.bf16.msrb.mxu1 %v924_v9 }
  0x2c   :  { %530 = vmatpush.bf16.msra.mxu0 %v882_v0 }
  0x2e   :  { %469 = vmatpush.bf16.msra.mxu2 %v911_v5 }
  0x2f   :  { %446 = vmatpush.bf16.msrb.mxu3 %v946_v12  ;;  %427 = vmatpush.bf16.msrb.mxu1 %v939_v11 }
  0x30   :  { %531 = vmatpush.bf16.msra.mxu0 %v899_v3 }
  0x31   :  { %221 = vmatmul.bf16.gmra.mxu0 %v623_v42 }
  0x32   :  { %850 = vmatpush.bf16.msrb.mxu2 %v882_v0  ;;  %240 = vmatmul.bf16.gmra.mxu1 %v627_v43  ;;  %v841_v0 = vld [vmem:[%s1266_s0 + $0x7c] sm:$0xf] }
  0x33   :  { %447 = vmatpush.bf16.msrb.mxu3 %v960_v14  ;;  %428 = vmatpush.bf16.msrb.mxu1 %v953_v13 }
  0x34   :  { %532 = vmatpush.bf16.msra.mxu0 %v924_v9  ;;  %327 = vmatmul.bf16.gmra.mxu3 %v729_v44 }
  0x36   :  { %851 = vmatpush.bf16.msrb.mxu2 %v899_v3  ;;  %v763_v3 = vor.u32 %v842_v63, %v762_v62 }
  0x37   :  { %448 = vmatpush.bf16.msrb.mxu3 %v974_v16  ;;  %429 = vmatpush.bf16.msrb.mxu1 %v967_v15 }
  0x38   :  { %533 = vmatpush.bf16.msra.mxu0 %v939_v11 }
  0x39   :  { %346 = vmatmul.bf16.gmra.mxu2 %v733_v47 }
  0x3a   :  { %852 = vmatpush.bf16.msrb.mxu2 %v924_v9  ;;  %v845_v9 = vld [vmem:[%s1266_s0 + $0x98] sm:$0xf0] }
  0x3b   :  { %449 = vmatpush.bf16.msrb.mxu3 %v994_v21  ;;  %430 = vmatpush.bf16.msrb.mxu1 %v987_v20 }
  0x3c   :  { %534 = vmatpush.bf16.msra.mxu0 %v953_v13 }
  0x3e   :  { %853 = vmatpush.bf16.msrb.mxu2 %v939_v11  ;;  %v786_v11 = vld [vmem:[%s1266_s0 + $0x9c] sm:$0xf0] }
  0x3f   :  { %450 = vmatpush.bf16.msrb.mxu3 %v1005_v23  ;;  %431 = vmatpush.bf16.msrb.mxu1 %v1000_v22 }
  0x40   :  { %535 = vmatpush.bf16.msra.mxu0 %v967_v15 }
  0x41   :  { %738 = vmatmul.msk.bf16.vlgmr.msrb.gmra.mxu0 %vm201_vm0, %v725_v54 }
  0x42   :  { %854 = vmatpush.bf16.msrb.mxu2 %v953_v13  ;;  %432 = vmatmul.bf16.vlgmr.msrb.gmra.mxu1 %v751_v55  ;;  %v846_v13 = vld [vmem:[%s1266_s0 + $0xa0] sm:$0xf0] }
  0x43   :  { %574 = vmatpush.bf16.msra.mxu3 %v892_v2  ;;  %549 = vmatpush.bf16.msra.mxu1 %v887_v1  ;;  %v764_v1 = vld [vmem:[%s1266_s0 + $0x84] sm:$0xf0]  ;;  %v737_v2 = vor.u32 %v837_v61, %v736_v60 }
  0x44   :  { %536 = vmatpush.bf16.msra.mxu0 %v987_v20  ;;  %451 = vmatmul.bf16.vlgmr.msrb.gmra.mxu3 %v755_v56 }
  0x46   :  { %855 = vmatpush.bf16.msrb.mxu2 %v967_v15 }
  0x47   :  { %575 = vmatpush.bf16.msra.mxu3 %v911_v5  ;;  %550 = vmatpush.bf16.msra.mxu1 %v904_v4  ;;  %v767_v4 = vor.u32 %v841_v0, %v764_v1  ;;  %v770_v5 = vld [vmem:[%s1266_s0 + $0x80] sm:$0xf] }
  0x48   :  { %537 = vmatpush.bf16.msra.mxu0 %v1000_v22  ;;  %v771_v7 = vor.u32 %v843_v6, %v770_v5 }
  0x49   :  { %772 = vmatmul.msk.bf16.vlgmr.msra.gmra.mxu2 %vm201_vm0, %v759_v59 }
  0x4a   :  { %856 = vmatpush.bf16.msrb.mxu2 %v987_v20  ;;  %v847_v20 = vld [vmem:[%s1266_s0 + $0xac] sm:$0xf] }
  0x4b   :  { %551 = vmatpush.bf16.msra.mxu1 %v931_v10  ;;  %v844_v10 = vld [vmem:[%s1266_s0 + $0x94] sm:$0xf] }
  0x4c   :  { %v789_v15 = vor.u32 %v844_v10, %v786_v11 }
  0x4e   :  { %857 = vmatpush.bf16.msrb.mxu2 %v1000_v22  ;;  %v804_v22 = vld [vmem:[%s1266_s0 + $0xb0] sm:$0xf] }
  0x4f   :  { %552 = vmatpush.bf16.msra.mxu1 %v946_v12  ;;  %v792_v12 = vld [vmem:[%s1266_s0 + $0x98] sm:$0xf] }
  0x51   :  { %739 = vmatmul.msk.bf16.gmra.mxu0 %vm201_vm0, %v737_v2 }
  0x52   :  { %437 = vmatmul.bf16.gmra.mxu1 %v763_v3 }
  0x53   :  { %553 = vmatpush.bf16.msra.mxu1 %v960_v14  ;;  %v785_v14 = vor.u32 %v845_v9, %v784_v8 }
  0x54   :  { %456 = vmatmul.bf16.gmra.mxu3 %v767_v4 }
  0x57   :  { %554 = vmatpush.bf16.msra.mxu1 %v974_v16  ;;  %v793_v16 = vor.u32 %v846_v13, %v792_v12 }
  0x59   :  { %773 = vmatmul.msk.bf16.gmra.mxu2 %vm201_vm0, %v771_v7 }
  0x5b   :  { %555 = vmatpush.bf16.msra.mxu1 %v994_v21  ;;  %v798_v21 = vld [vmem:[%s1266_s0 + $0xb4] sm:$0xf0] }
  0x5c   :  { %v801_v24 = vor.u32 %v847_v20, %v798_v21 }
  0x5f   :  { %556 = vmatpush.bf16.msra.mxu1 %v1005_v23  ;;  %v849_v23 = vld [vmem:[%s1266_s0 + $0xb8] sm:$0xf0] }
  0x60   :  { %v805_v25 = vor.u32 %v849_v23, %v804_v22 }
  0x61   :  { %538 = vmatmul.bf16.vlgmr.msra.gmra.mxu0 %v785_v14 }
  0x62   :  { %557 = vmatmul.bf16.vlgmr.msra.gmra.mxu1 %v789_v15 }
  0x64   :  { %806 = vmatmul.msk.bf16.vlgmr.msra.gmra.mxu3 %vm201_vm0, %v793_v16 }
  0x69   :  { %543 = vmatmul.bf16.vlgmr.msrb.gmra.mxu2 %v797_v19 }
  0x72   :  { %562 = vmatmul.bf16.gmra.mxu1 %v801_v24 }
  0x74   :  { %807 = vmatmul.msk.bf16.gmra.mxu3 %vm201_vm0, %v805_v25 }
  0x8c   :  { %v255_v26 = vpop.f32.mrf.mxu2 }
  0x94   :  { %v257_v27 = vpop.f32.mrf.mxu2 }
  0x9c   :  { %v260_v29 = vpop.f32.mrf.mxu2 }
  0x9e   :  { %v217_v30 = vpop.f32.mrf.mxu0 }
  0x9f   :  { %v218_v31 = vadd.f32 %v1204_v28, %v217_v30  ;;  %v236_v32 = vpop.f32.mrf.mxu1 }
  0xa1   :  { %v237_v33 = vadd.f32 %v236_v32, %v218_v31 }
  0xa3   :  { %v1207_v34 = vadd.f32 %v255_v26, %v237_v33 }
  0xa4   :  { %v262_v35 = vpop.f32.mrf.mxu2 }
  0xa5   :  { %v265_v26 = vmax.f32 %v1207_v34, 0.0 }
  0xa6   :  { %v219_v37 = vpop.f32.mrf.mxu0 }
  0xa7   :  { %v323_v36 = vpop.f32.mrf.mxu3  ;;  %v220_v38 = vadd.f32 %v1204_v28, %v219_v37  ;;  %v238_v39 = vpop.f32.mrf.mxu1 }
  0xa8   :  { %v324_v10 = vadd.f32 %v1204_v28, %v323_v36 }
  0xa9   :  { %v239_v40 = vadd.f32 %v238_v39, %v220_v38 }
  0xab   :  { %v1210_v41 = vadd.f32 %v257_v27, %v239_v40 }
  0xac   :  { %v342_v43 = vpop.f32.mrf.mxu2 }
  0xad   :  { %v343_v15 = vadd.f32 %v342_v43, %v324_v10 }
  0xae   :  { %v222_v44 = vpop.f32.mrf.mxu0 }
  0xaf   :  { %v325_v42 = vpop.f32.mrf.mxu3  ;;  %v223_v45 = vadd.f32 %v1204_v28, %v222_v44  ;;  %v241_v46 = vpop.f32.mrf.mxu1 }
  0xb0   :  { %v326_v20 = vadd.f32 %v1204_v28, %v325_v42 }
  0xb1   :  { %v242_v47 = vadd.f32 %v241_v46, %v223_v45 }
  0xb3   :  { %v1213_v48 = vadd.f32 %v260_v29, %v242_v47 }
  0xb4   :  { %v344_v50 = vpop.f32.mrf.mxu2 }
  0xb5   :  { %v345_v27 = vadd.f32 %v344_v50, %v326_v20 }
  0xb6   :  { %v224_v51 = vpop.f32.mrf.mxu0 }
  0xb7   :  { %v328_v49 = vpop.f32.mrf.mxu3  ;;  %v225_v52 = vadd.f32 %v1204_v28, %v224_v51  ;;  %v243_v53 = vpop.f32.mrf.mxu1  ;;  %v266_v51 = vmax.f32 %v1210_v41, 0.0 }
  0xb8   :  { %v329_v34 = vadd.f32 %v1204_v28, %v328_v49 }
  0xb9   :  { %v244_v54 = vadd.f32 %v243_v53, %v225_v52 }
  0xbb   :  { %v1216_v55 = vadd.f32 %v262_v35, %v244_v54 }
  0xbc   :  { %v347_v57 = vpop.f32.mrf.mxu2 }
  0xbd   :  { %v348_v53 = vadd.f32 %v347_v57, %v329_v34  ;;  %v267_v57 = vmax.f32 %v1213_v48, 0.0 }
  0xbe   :  { %v361_v58 = vpop.f32.mrf.mxu0 }
  0xbf   :  { %v1218_v56 = vpop.f32.mrf.mxu3  ;;  %v433_v59 = vpop.f32.mrf.mxu1  ;;  %v362_v16 = vadd.f32 %v361_v58, %v343_v15 }
  0xc0   :  { %v434_v11 = vadd.f32 %v1204_v28, %v433_v59 }
  0xc1   :  { %v371_v23 = vmax.f32 %v362_v16, 0.0 }
  0xc3   :  { %v375_v36 = vmax.f32 %v265_v26, %v371_v23 }
  0xc4   :  { %v1220_v60 = vpop.f32.mrf.mxu2 }
  0xc6   :  { %v363_v62 = vpop.f32.mrf.mxu0 }
  0xc7   :  { %v452_v61 = vpop.f32.mrf.mxu3  ;;  %v435_v63 = vpop.f32.mrf.mxu1  ;;  %v364_v35 = vadd.f32 %v363_v62, %v345_v27 }
  0xc8   :  { %v453_v17 = vadd.f32 %v452_v61, %v434_v11  ;;  %v436_v30 = vadd.f32 %v1204_v28, %v435_v63 }
  0xc9   :  { %v372_v43 = vmax.f32 %v364_v35, 0.0 }
  0xcb   :  { %v376_v59 = vmax.f32 %v266_v51, %v372_v43 }
  0xcc   :  { %v471_v1 = vpop.f32.mrf.mxu2 }
  0xcd   :  { %v472_v19 = vadd.f32 %v471_v1, %v453_v17 }
  0xce   :  { %v366_v2 = vpop.f32.mrf.mxu0 }
  0xcf   :  { %v454_v0 = vpop.f32.mrf.mxu3  ;;  %v438_v3 = vpop.f32.mrf.mxu1  ;;  %v481_v31 = vmax.f32 %v472_v19, 0.0  ;;  %v367_v61 = vadd.f32 %v366_v2, %v348_v53 }
  0xd0   :  { %v455_v37 = vadd.f32 %v454_v0, %v436_v30  ;;  %v439_v46 = vadd.f32 %v1204_v28, %v438_v3  ;;  %v331_v3 = vadd.f32 %v1204_v28, %v1218_v56 }
  0xd1   :  { %v373_v11 = vmax.f32 %v367_v61, 0.0 }
  0xd2   :  { %v350_v2 = vadd.f32 %v1220_v60, %v331_v3 }
  0xd4   :  { %v473_v5 = vpop.f32.mrf.mxu2 }
  0xd5   :  { %v474_v39 = vadd.f32 %v473_v5, %v455_v37 }
  0xd6   :  { %v1222_v6 = vpop.f32.mrf.mxu0 }
  0xd7   :  { %v457_v4 = vpop.f32.mrf.mxu3  ;;  %v1224_v7 = vpop.f32.mrf.mxu1  ;;  %v482_v54 = vmax.f32 %v474_v39, 0.0  ;;  %v369_v15 = vadd.f32 %v1222_v6, %v350_v2 }
  0xd8   :  { %v458_v62 = vadd.f32 %v457_v4, %v439_v46  ;;  %v441_v4 = vadd.f32 %v1204_v28, %v1224_v7 }
  0xdc   :  { %v476_v9 = vpop.f32.mrf.mxu2 }
  0xdd   :  { %v477_v0 = vadd.f32 %v476_v9, %v458_v62 }
  0xde   :  { %v539_v12 = vpop.f32.mrf.mxu0 }
  0xdf   :  { %v1226_v8 = vpop.f32.mrf.mxu3  ;;  %v540_v13 = vadd.f32 %v1204_v28, %v539_v12  ;;  %v558_v14 = vpop.f32.mrf.mxu1  ;;  %v483_v9 = vmax.f32 %v477_v0, 0.0 }
  0xe0   :  { %v460_v16 = vadd.f32 %v1226_v8, %v441_v4 }
  0xe1   :  { %v559_v18 = vadd.f32 %v558_v14, %v540_v13  ;;  %v377_v14 = vmax.f32 %v267_v57, %v373_v11 }
  0xe4   :  { %v478_v21 = vpop.f32.mrf.mxu2 }
  0xe6   :  { %v541_v25 = vpop.f32.mrf.mxu0 }
  0xe7   :  { %v577_v22 = vpop.f32.mrf.mxu3  ;;  %v560_v29 = vpop.f32.mrf.mxu1  ;;  %v542_v33 = vadd.f32 %v1204_v28, %v541_v25 }
  0xe8   :  { %v578_v24 = vadd.f32 %v577_v22, %v559_v18  ;;  %v479_v18 = vadd.f32 %v478_v21, %v460_v16  ;;  %v374_v22 = vmax.f32 %v369_v15, 0.0 }
  0xe9   :  { %v561_v42 = vadd.f32 %v560_v29, %v542_v33 }
  0xea   :  { %v587_v32 = vmax.f32 %v578_v24, 0.0  ;;  %v484_v7 = vmax.f32 %v479_v18, 0.0 }
  0xec   :  { %v591_v38 = vmax.f32 %v481_v31, %v587_v32  ;;  %v544_v44 = vpop.f32.mrf.mxu2 }
  0xed   :  { %v545_v47 = vadd.f32 %v1204_v28, %v544_v44 }
  0xee   :  { %v595_v40 = vmax.f32 %v375_v36, %v591_v38 }
  0xef   :  { %v579_v45 = vpop.f32.mrf.mxu3  ;;  %v563_v52 = vpop.f32.mrf.mxu1 }
  0xf0   :  { %600 = vst.msk [vmem:[%s1268_s3] sm:$0xff] %vm599_vm1, %v595_v40  ;;  %v580_v50 = vadd.f32 %v579_v45, %v561_v42  ;;  %v564_v63 = vadd.f32 %v563_v52, %v545_v47 }
  0xf2   :  { %v588_v58 = vmax.f32 %v580_v50, 0.0 }
  0xf4   :  { %v592_v49 = vmax.f32 %v482_v54, %v588_v58  ;;  %v546_v5 = vpop.f32.mrf.mxu2 }
  0xf5   :  { %v547_v12 = vadd.f32 %v1204_v28, %v546_v5  ;;  %v268_v28 = vmax.f32 %v1216_v55, 0.0 }
  0xf6   :  { %v596_v1 = vmax.f32 %v376_v59, %v592_v49 }
  0xf7   :  { %v582_v10 = vpop.f32.mrf.mxu3  ;;  %v565_v13 = vpop.f32.mrf.mxu1  ;;  %v378_v24 = vmax.f32 %v268_v28, %v374_v22 }
  0xf8   :  { %601 = vst.msk [vmem:[%s1268_s3 + $0x8] sm:$0xff] %vm599_vm1, %v596_v1  ;;  %v583_v41 = vadd.f32 %v582_v10, %v564_v63  ;;  %v566_v20 = vadd.f32 %v565_v13, %v547_v12 }
  0xfa   :  { %v589_v56 = vmax.f32 %v583_v41, 0.0 }
  0xfc   :  { %v593_v17 = vmax.f32 %v483_v9, %v589_v56 }
  0xfe   :  { %v597_v19 = vmax.f32 %v377_v14, %v593_v17 }
  0xff   :  { %v584_v48 = vpop.f32.mrf.mxu3 }
 0x100   :  { %602 = vst.msk [vmem:[%s1268_s3 + $0x10] sm:$0xff] %vm599_vm1, %v597_v19  ;;  %v585_v60 = vadd.f32 %v584_v48, %v566_v20 }
 0x102   :  { %v590_v23 = vmax.f32 %v585_v60, 0.0 }
 0x104   :  { %v594_v6 = vmax.f32 %v484_v7, %v590_v23 }
 0x106   :  { %v598_v25 = vmax.f32 %v378_v24, %v594_v6 }
 0x108   :  { %603 = vst.msk [vmem:[%s1268_s3 + $0x18] sm:$0xff] %vm599_vm1, %v598_v25 }

// kernel: netcv_forward.8
= control target key start
LH: loop header
LB: loop body
LE: loop exit
PB: predicated region body
PF: predicated region fallthrough
CT: control target
= control target key end

     0   :  { %vm327_vm0 = vcmask 523264   ;;  %s1259_s1 = inlined_call_operand.vmem [shape: bf16[576,128], index: 1, kind: input, shape index: {}]   ;;  %s1260_s2 = inlined_call_operand.vmem [shape: f32[1,128], index: 2, kind: input, shape index: {}]   ;;  %s1261_s0 = inlined_call_operand.vmem [shape: bf16[4,8,576], index: 0, kind: input, shape index: {}]   ;;  %s1262_s3 = inlined_call_operand.vmem [shape: f32[8,128], index: 3, kind: output, shape index: {}]  }
   0x1   :  { %v892_v0 = vld [vmem:[%s1259_s1 + $0x38] sm:$0xff]  ;;  %v914_v4 = vld [vmem:[%s1259_s1 + $0x30] sm:$0xff]  ;;  %v938_v8 = vld [vmem:[%s1259_s1 + $0x28] sm:$0xff] }
   0x2   :  { %v897_v1 = vld [vmem:[%s1259_s1 + $0x78] sm:$0xff]  ;;  %331 = vmatpush.bf16.msra.mxu0 %v892_v0  ;;  %v919_v5 = vld [vmem:[%s1259_s1 + $0x70] sm:$0xff]  ;;  %v943_v9 = vld [vmem:[%s1259_s1 + $0x68] sm:$0xff] }
   0x3   :  { %v902_v2 = vld [vmem:[%s1259_s1 + $0xb8] sm:$0xff]  ;;  %344 = vmatpush.bf16.msra.mxu1 %v897_v1  ;;  %v926_v6 = vld [vmem:[%s1259_s1 + $0xb0] sm:$0xff]  ;;  %v950_v10 = vld [vmem:[%s1259_s1 + $0xa8] sm:$0xff] }
   0x4   :  { %v907_v3 = vld [vmem:[%s1259_s1 + $0xf8] sm:$0xff]  ;;  %357 = vmatpush.bf16.msra.mxu2 %v902_v2  ;;  %v931_v7 = vld [vmem:[%s1259_s1 + $0xf0] sm:$0xff]  ;;  %v955_v11 = vld [vmem:[%s1259_s1 + $0xe8] sm:$0xff] }
   0x5   :  { %370 = vmatpush.bf16.msra.mxu3 %v907_v3  ;;  %v962_v12 = vld [vmem:[%s1259_s1 + $0x20] sm:$0xff]  ;;  %v986_v16 = vld [vmem:[%s1259_s1 + $0x18] sm:$0xff]  ;;  %v1010_v20 = vld [vmem:[%s1259_s1 + $0x10] sm:$0xff] }
   0x6   :  { %332 = vmatpush.bf16.msra.mxu0 %v914_v4  ;;  %v967_v13 = vld [vmem:[%s1259_s1 + $0x60] sm:$0xff]  ;;  %v991_v17 = vld [vmem:[%s1259_s1 + $0x58] sm:$0xff]  ;;  %v1015_v21 = vld [vmem:[%s1259_s1 + $0x50] sm:$0xff] }
   0x7   :  { %345 = vmatpush.bf16.msra.mxu1 %v919_v5  ;;  %v974_v14 = vld [vmem:[%s1259_s1 + $0xa0] sm:$0xff]  ;;  %v998_v18 = vld [vmem:[%s1259_s1 + $0x98] sm:$0xff]  ;;  %v1022_v22 = vld [vmem:[%s1259_s1 + $0x90] sm:$0xff] }
   0x8   :  { %358 = vmatpush.bf16.msra.mxu2 %v926_v6  ;;  %v979_v15 = vld [vmem:[%s1259_s1 + $0xe0] sm:$0xff]  ;;  %v1003_v19 = vld [vmem:[%s1259_s1 + $0xd8] sm:$0xff]  ;;  %v1027_v23 = vld [vmem:[%s1259_s1 + $0xd0] sm:$0xff] }
   0x9   :  { %371 = vmatpush.bf16.msra.mxu3 %v931_v7  ;;  %v1034_v24 = vld [vmem:[%s1259_s1 + $0x8] sm:$0xff]  ;;  %v88_v28 = vld [vmem:[%s1261_s0] sm:$0xff]  ;;  %v1086_v38 = vld [vmem:[%s1259_s1 + $0x118] sm:$0xff] }
   0xa   :  { %333 = vmatpush.bf16.msra.mxu0 %v938_v8  ;;  %v1039_v25 = vld [vmem:[%s1259_s1 + $0x48] sm:$0xff]  ;;  %v1064_v30 = vld [vmem:[%s1259_s1] sm:$0xff]  ;;  %v97_v32 = vunpack.c.l.b16 %v88_v28  ;;  %v98_v36 = vunpack.c.h.b16 %v88_v28  ;;  %v1097_v43 = vld [vmem:[%s1259_s1 + $0x110] sm:$0xff] }
   0xb   :  { %346 = vmatpush.bf16.msra.mxu1 %v943_v9  ;;  %v1044_v26 = vld [vmem:[%s1259_s1 + $0x88] sm:$0xff]  ;;  %v1069_v31 = vld [vmem:[%s1259_s1 + $0x40] sm:$0xff]  ;;  %v90_v46 = vld [vmem:[%s1261_s0 + $0x10] sm:$0xf] }
   0xc   :  { %359 = vmatpush.bf16.msra.mxu2 %v950_v10  ;;  %v1051_v27 = vld [vmem:[%s1259_s1 + $0xc8] sm:$0xff]  ;;  %v1076_v34 = vld [vmem:[%s1259_s1 + $0x80] sm:$0xff]  ;;  %v102_v39 = vpack.c.b16 %v97_v32, %v97_v32  ;;  %v103_v41 = vpack.c.b16 %v98_v36, %v98_v36  ;;  %v101_v47 = vunpack.c.l.b16 %v90_v46  ;;  %v820_v49 = vld [vmem:[%s1261_s0 + $0x14] sm:$0xff] }
   0xd   :  { %372 = vmatpush.bf16.msra.mxu3 %v955_v11  ;;  %v89_v29 = vld [vmem:[%s1261_s0 + $0x8] sm:$0xff]  ;;  %v1081_v35 = vld [vmem:[%s1259_s1 + $0xc0] sm:$0xff]  ;;  %v404_v51 = vunpack.c.l.b16 %v820_v49  ;;  %v405_v52 = vunpack.c.h.b16 %v820_v49 }
   0xe   :  { %334 = vmatpush.bf16.msra.mxu0 %v962_v12  ;;  %v99_v33 = vunpack.c.l.b16 %v89_v29  ;;  %v100_v37 = vunpack.c.h.b16 %v89_v29  ;;  %v1106_v44 = vld [vmem:[%s1259_s1 + $0x108] sm:$0xff]  ;;  %v1115_v45 = vld [vmem:[%s1259_s1 + $0x100] sm:$0xff]  ;;  %v106_v48 = vpack.c.b16 %v101_v47, %v101_v47 }
   0xf   :  { %347 = vmatpush.bf16.msra.mxu1 %v967_v13  ;;  %v821_v50 = vld [vmem:[%s1261_s0 + $0x1c] sm:$0xff]  ;;  %v409_v54 = vpack.c.b16 %v404_v51, %v404_v51  ;;  %v410_v55 = vpack.c.b16 %v405_v52, %v405_v52  ;;  %v822_v58 = vld [vmem:[%s1261_s0 + $0x24] sm:$0xf]  ;;  %v824_v62 = vld [vmem:[%s1261_s0 + $0x28] sm:$0xff] }
  0x10   :  { %360 = vmatpush.bf16.msra.mxu2 %v974_v14  ;;  %v104_v40 = vpack.c.b16 %v99_v33, %v99_v33  ;;  %v105_v42 = vpack.c.b16 %v100_v37, %v100_v37  ;;  %v406_v53 = vunpack.c.l.b16 %v821_v50  ;;  %v407_v57 = vunpack.c.h.b16 %v821_v50  ;;  %v825_v33 = vld [vmem:[%s1261_s0 + $0x30] sm:$0xff]  ;;  %v826_v37 = vld [vmem:[%s1261_s0 + $0x38] sm:$0xf] }
  0x11   :  { %373 = vmatpush.bf16.msra.mxu3 %v979_v15  ;;  %v408_v60 = vunpack.c.l.b16 %v822_v58  ;;  %v495_v63 = vunpack.c.l.b16 %v824_v62  ;;  %v496_v28 = vunpack.c.h.b16 %v824_v62  ;;  %v497_v36 = vunpack.c.l.b16 %v825_v33 }
  0x12   :  { %335 = vmatpush.bf16.msra.mxu0 %v986_v16  ;;  %v411_v56 = vpack.c.b16 %v406_v53, %v406_v53  ;;  %v412_v59 = vpack.c.b16 %v407_v57, %v407_v57 }
  0x13   :  { %348 = vmatpush.bf16.msra.mxu1 %v991_v17  ;;  %v413_v61 = vpack.c.b16 %v408_v60, %v408_v60  ;;  %v500_v29 = vpack.c.b16 %v495_v63, %v495_v63  ;;  %v501_v32 = vpack.c.b16 %v496_v28, %v496_v28 }
  0x14   :  { %361 = vmatpush.bf16.msra.mxu2 %v998_v18 }
  0x15   :  { %374 = vmatpush.bf16.msra.mxu3 %v1003_v19 }
  0x16   :  { %336 = vmatpush.bf16.msra.mxu0 %v1010_v20 }
  0x17   :  { %349 = vmatpush.bf16.msra.mxu1 %v1015_v21 }
  0x18   :  { %362 = vmatpush.bf16.msra.mxu2 %v1022_v22 }
  0x19   :  { %375 = vmatpush.bf16.msra.mxu3 %v1027_v23 }
  0x1a   :  { %337 = vmatpush.bf16.msra.mxu0 %v1034_v24 }
  0x1b   :  { %350 = vmatpush.bf16.msra.mxu1 %v1039_v25 }
  0x1c   :  { %363 = vmatpush.bf16.msra.mxu2 %v1044_v26 }
  0x1d   :  { %376 = vmatpush.bf16.msra.mxu3 %v1051_v27 }
  0x1e   :  { %338 = vmatpush.bf16.msra.mxu0 %v1064_v30 }
  0x1f   :  { %351 = vmatpush.bf16.msra.mxu1 %v1069_v31 }
  0x20   :  { %364 = vmatpush.bf16.msra.mxu2 %v1076_v34 }
  0x21   :  { %377 = vmatpush.bf16.msra.mxu3 %v1081_v35  ;;  %339 = vmatmul.bf16.vlgmr.msra.gmra.mxu0 %v102_v39  ;;  %v502_v39 = vpack.c.b16 %v497_v36, %v497_v36 }
  0x22   :  { %387 = vmatpush.bf16.msrb.mxu0 %v1086_v38  ;;  %352 = vmatmul.bf16.vlgmr.msra.gmra.mxu1 %v103_v41 }
  0x23   :  { %421 = vmatpush.bf16.msrb.mxu1 %v892_v0  ;;  %365 = vmatmul.bf16.vlgmr.msra.gmra.mxu2 %v104_v40 }
  0x24   :  { %434 = vmatpush.bf16.msrb.mxu2 %v897_v1  ;;  %378 = vmatmul.bf16.vlgmr.msra.gmra.mxu3 %v105_v42 }
  0x25   :  { %447 = vmatpush.bf16.msrb.mxu3 %v902_v2 }
  0x26   :  { %388 = vmatpush.bf16.msrb.mxu0 %v1097_v43 }
  0x27   :  { %422 = vmatpush.bf16.msrb.mxu1 %v914_v4 }
  0x28   :  { %435 = vmatpush.bf16.msrb.mxu2 %v919_v5 }
  0x29   :  { %448 = vmatpush.bf16.msrb.mxu3 %v926_v6 }
  0x2a   :  { %389 = vmatpush.bf16.msrb.mxu0 %v1106_v44 }
  0x2b   :  { %423 = vmatpush.bf16.msrb.mxu1 %v938_v8 }
  0x2c   :  { %436 = vmatpush.bf16.msrb.mxu2 %v943_v9 }
  0x2d   :  { %449 = vmatpush.bf16.msrb.mxu3 %v950_v10 }
  0x2e   :  { %390 = vmatpush.bf16.msrb.mxu0 %v1115_v45 }
  0x2f   :  { %424 = vmatpush.bf16.msrb.mxu1 %v962_v12 }
  0x30   :  { %437 = vmatpush.bf16.msrb.mxu2 %v967_v13 }
  0x31   :  { %450 = vmatpush.bf16.msrb.mxu3 %v974_v14  ;;  %819 = vmatmul.msk.bf16.vlgmr.msrb.gmra.mxu0 %vm327_vm0, %v106_v48 }
  0x32   :  { %460 = vmatpush.bf16.msra.mxu0 %v907_v3 }
  0x33   :  { %425 = vmatpush.bf16.msrb.mxu1 %v986_v16 }
  0x34   :  { %438 = vmatpush.bf16.msrb.mxu2 %v991_v17 }
  0x35   :  { %451 = vmatpush.bf16.msrb.mxu3 %v998_v18 }
  0x36   :  { %461 = vmatpush.bf16.msra.mxu0 %v931_v7 }
  0x37   :  { %426 = vmatpush.bf16.msrb.mxu1 %v1010_v20 }
  0x38   :  { %439 = vmatpush.bf16.msrb.mxu2 %v1015_v21 }
  0x39   :  { %452 = vmatpush.bf16.msrb.mxu3 %v1022_v22 }
  0x3a   :  { %462 = vmatpush.bf16.msra.mxu0 %v955_v11 }
  0x3b   :  { %427 = vmatpush.bf16.msrb.mxu1 %v1034_v24 }
  0x3c   :  { %440 = vmatpush.bf16.msrb.mxu2 %v1039_v25 }
  0x3d   :  { %453 = vmatpush.bf16.msrb.mxu3 %v1044_v26 }
  0x3e   :  { %463 = vmatpush.bf16.msra.mxu0 %v979_v15 }
  0x3f   :  { %428 = vmatpush.bf16.msrb.mxu1 %v1064_v30 }
  0x40   :  { %441 = vmatpush.bf16.msrb.mxu2 %v1069_v31 }
  0x41   :  { %454 = vmatpush.bf16.msrb.mxu3 %v1076_v34 }
  0x42   :  { %464 = vmatpush.bf16.msra.mxu0 %v1003_v19  ;;  %429 = vmatmul.bf16.vlgmr.msrb.gmra.mxu1 %v409_v54 }
  0x43   :  { %477 = vmatpush.bf16.msra.mxu1 %v1086_v38  ;;  %442 = vmatmul.bf16.vlgmr.msrb.gmra.mxu2 %v410_v55 }
  0x44   :  { %512 = vmatpush.bf16.msra.mxu2 %v892_v0  ;;  %455 = vmatmul.bf16.vlgmr.msrb.gmra.mxu3 %v411_v56 }
  0x45   :  { %525 = vmatpush.bf16.msra.mxu3 %v897_v1 }
  0x46   :  { %465 = vmatpush.bf16.msra.mxu0 %v1027_v23 }
  0x47   :  { %478 = vmatpush.bf16.msra.mxu1 %v1097_v43 }
  0x48   :  { %513 = vmatpush.bf16.msra.mxu2 %v914_v4 }
  0x49   :  { %526 = vmatpush.bf16.msra.mxu3 %v919_v5 }
  0x4a   :  { %466 = vmatpush.bf16.msra.mxu0 %v1051_v27 }
  0x4b   :  { %479 = vmatpush.bf16.msra.mxu1 %v1106_v44 }
  0x4c   :  { %514 = vmatpush.bf16.msra.mxu2 %v938_v8 }
  0x4d   :  { %527 = vmatpush.bf16.msra.mxu3 %v943_v9 }
  0x4e   :  { %467 = vmatpush.bf16.msra.mxu0 %v1081_v35 }
  0x4f   :  { %480 = vmatpush.bf16.msra.mxu1 %v1115_v45 }
  0x50   :  { %515 = vmatpush.bf16.msra.mxu2 %v962_v12 }
  0x51   :  { %528 = vmatpush.bf16.msra.mxu3 %v967_v13  ;;  %468 = vmatmul.bf16.vlgmr.msra.gmra.mxu0 %v412_v59 }
  0x52   :  { %538 = vmatpush.bf16.msrb.mxu0 %v902_v2  ;;  %823 = vmatmul.msk.bf16.vlgmr.msra.gmra.mxu1 %vm327_vm0, %v413_v61 }
  0x53   :  { %551 = vmatpush.bf16.msrb.mxu1 %v907_v3 }
  0x54   :  { %516 = vmatpush.bf16.msra.mxu2 %v986_v16 }
  0x55   :  { %529 = vmatpush.bf16.msra.mxu3 %v991_v17 }
  0x56   :  { %539 = vmatpush.bf16.msrb.mxu0 %v926_v6 }
  0x57   :  { %552 = vmatpush.bf16.msrb.mxu1 %v931_v7 }
  0x58   :  { %517 = vmatpush.bf16.msra.mxu2 %v1010_v20 }
  0x59   :  { %530 = vmatpush.bf16.msra.mxu3 %v1015_v21 }
  0x5a   :  { %540 = vmatpush.bf16.msrb.mxu0 %v950_v10 }
  0x5b   :  { %553 = vmatpush.bf16.msrb.mxu1 %v955_v11 }
  0x5c   :  { %518 = vmatpush.bf16.msra.mxu2 %v1034_v24 }
  0x5d   :  { %531 = vmatpush.bf16.msra.mxu3 %v1039_v25 }
  0x5e   :  { %541 = vmatpush.bf16.msrb.mxu0 %v974_v14 }
  0x5f   :  { %554 = vmatpush.bf16.msrb.mxu1 %v979_v15 }
  0x60   :  { %519 = vmatpush.bf16.msra.mxu2 %v1064_v30 }
  0x61   :  { %532 = vmatpush.bf16.msra.mxu3 %v1069_v31 }
  0x62   :  { %542 = vmatpush.bf16.msrb.mxu0 %v998_v18 }
  0x63   :  { %555 = vmatpush.bf16.msrb.mxu1 %v1003_v19  ;;  %520 = vmatmul.bf16.vlgmr.msra.gmra.mxu2 %v500_v29 }
  0x64   :  { %568 = vmatpush.bf16.msrb.mxu2 %v1086_v38  ;;  %533 = vmatmul.bf16.vlgmr.msra.gmra.mxu3 %v501_v32 }
  0x65   :  { %602 = vmatpush.bf16.msrb.mxu3 %v892_v0  ;;  %v498_v0 = vunpack.c.h.b16 %v825_v33 }
  0x66   :  { %543 = vmatpush.bf16.msrb.mxu0 %v1022_v22 }
  0x67   :  { %556 = vmatpush.bf16.msrb.mxu1 %v1027_v23  ;;  %v503_v40 = vpack.c.b16 %v498_v0, %v498_v0 }
  0x68   :  { %569 = vmatpush.bf16.msrb.mxu2 %v1097_v43 }
  0x69   :  { %603 = vmatpush.bf16.msrb.mxu3 %v914_v4  ;;  %v499_v4 = vunpack.c.l.b16 %v826_v37 }
  0x6a   :  { %544 = vmatpush.bf16.msrb.mxu0 %v1044_v26 }
  0x6b   :  { %557 = vmatpush.bf16.msrb.mxu1 %v1051_v27 }
  0x6c   :  { %570 = vmatpush.bf16.msrb.mxu2 %v1106_v44 }
  0x6d   :  { %604 = vmatpush.bf16.msrb.mxu3 %v938_v8  ;;  %v504_v8 = vpack.c.b16 %v499_v4, %v499_v4 }
  0x6e   :  { %545 = vmatpush.bf16.msrb.mxu0 %v1076_v34 }
  0x6f   :  { %558 = vmatpush.bf16.msrb.mxu1 %v1081_v35 }
  0x70   :  { %571 = vmatpush.bf16.msrb.mxu2 %v1115_v45 }
  0x71   :  { %605 = vmatpush.bf16.msrb.mxu3 %v962_v12  ;;  %546 = vmatmul.bf16.vlgmr.msrb.gmra.mxu0 %v502_v39 }
  0x72   :  { %615 = vmatpush.bf16.msra.mxu0 %v897_v1  ;;  %559 = vmatmul.bf16.vlgmr.msrb.gmra.mxu1 %v503_v40  ;;  %v828_v1 = vld [vmem:[%s1261_s0 + $0x3c] sm:$0xff] }
  0x73   :  { %628 = vmatpush.bf16.msra.mxu1 %v902_v2  ;;  %827 = vmatmul.msk.bf16.vlgmr.msrb.gmra.mxu2 %vm327_vm0, %v504_v8  ;;  %v585_v2 = vunpack.c.l.b16 %v828_v1 }
  0x74   :  { %641 = vmatpush.bf16.msra.mxu2 %v907_v3 }
  0x75   :  { %606 = vmatpush.bf16.msrb.mxu3 %v986_v16  ;;  %v590_v3 = vpack.c.b16 %v585_v2, %v585_v2  ;;  %v868_v16 = vld [vmem:[%s1260_s2] ss:$0 sm:$0xff] }
  0x76   :  { %616 = vmatpush.bf16.msra.mxu0 %v919_v5  ;;  %v829_v5 = vld [vmem:[%s1261_s0 + $0x44] sm:$0xff] }
  0x77   :  { %629 = vmatpush.bf16.msra.mxu1 %v926_v6  ;;  %v586_v6 = vunpack.c.h.b16 %v828_v1 }
  0x78   :  { %642 = vmatpush.bf16.msra.mxu2 %v931_v7  ;;  %v587_v7 = vunpack.c.l.b16 %v829_v5 }
  0x79   :  { %607 = vmatpush.bf16.msrb.mxu3 %v1010_v20  ;;  %v591_v12 = vpack.c.b16 %v586_v6, %v586_v6 }
  0x7a   :  { %617 = vmatpush.bf16.msra.mxu0 %v943_v9  ;;  %v830_v9 = vld [vmem:[%s1261_s0 + $0x4c] sm:$0xf] }
  0x7b   :  { %630 = vmatpush.bf16.msra.mxu1 %v950_v10  ;;  %v588_v10 = vunpack.c.h.b16 %v829_v5 }
  0x7c   :  { %643 = vmatpush.bf16.msra.mxu2 %v955_v11  ;;  %v589_v11 = vunpack.c.l.b16 %v830_v9 }
  0x7d   :  { %608 = vmatpush.bf16.msrb.mxu3 %v1034_v24 }
  0x7e   :  { %618 = vmatpush.bf16.msra.mxu0 %v967_v13  ;;  %v592_v13 = vpack.c.b16 %v587_v7, %v587_v7 }
  0x7f   :  { %631 = vmatpush.bf16.msra.mxu1 %v974_v14  ;;  %v593_v14 = vpack.c.b16 %v588_v10, %v588_v10 }
  0x80   :  { %644 = vmatpush.bf16.msra.mxu2 %v979_v15  ;;  %v594_v15 = vpack.c.b16 %v589_v11, %v589_v11 }
  0x81   :  { %609 = vmatpush.bf16.msrb.mxu3 %v1064_v30 }
  0x82   :  { %619 = vmatpush.bf16.msra.mxu0 %v991_v17 }
  0x83   :  { %632 = vmatpush.bf16.msra.mxu1 %v998_v18 }
  0x84   :  { %645 = vmatpush.bf16.msra.mxu2 %v1003_v19  ;;  %610 = vmatmul.bf16.vlgmr.msrb.gmra.mxu3 %v590_v3 }
  0x85   :  { %658 = vmatpush.bf16.msra.mxu3 %v1086_v38 }
  0x86   :  { %620 = vmatpush.bf16.msra.mxu0 %v1015_v21 }
  0x87   :  { %633 = vmatpush.bf16.msra.mxu1 %v1022_v22 }
  0x88   :  { %646 = vmatpush.bf16.msra.mxu2 %v1027_v23 }
  0x89   :  { %659 = vmatpush.bf16.msra.mxu3 %v1097_v43 }
  0x8a   :  { %621 = vmatpush.bf16.msra.mxu0 %v1039_v25 }
  0x8b   :  { %634 = vmatpush.bf16.msra.mxu1 %v1044_v26 }
  0x8c   :  { %647 = vmatpush.bf16.msra.mxu2 %v1051_v27 }
  0x8d   :  { %660 = vmatpush.bf16.msra.mxu3 %v1106_v44 }
  0x8e   :  { %622 = vmatpush.bf16.msra.mxu0 %v1069_v31 }
  0x8f   :  { %635 = vmatpush.bf16.msra.mxu1 %v1076_v34 }
  0x90   :  { %648 = vmatpush.bf16.msra.mxu2 %v1081_v35 }
  0x91   :  { %661 = vmatpush.bf16.msra.mxu3 %v1115_v45  ;;  %623 = vmatmul.bf16.vlgmr.msra.gmra.mxu0 %v591_v12 }
  0x92   :  { %636 = vmatmul.bf16.vlgmr.msra.gmra.mxu1 %v592_v13 }
  0x93   :  { %649 = vmatmul.bf16.vlgmr.msra.gmra.mxu2 %v593_v14 }
  0x94   :  { %831 = vmatmul.msk.bf16.vlgmr.msra.gmra.mxu3 %vm327_vm0, %v594_v15 }
  0x9e   :  { %v340_v17 = vpop.f32.mrf.mxu0 }
  0x9f   :  { %v341_v18 = vadd.f32 %v868_v16, %v340_v17  ;;  %v353_v19 = vpop.f32.mrf.mxu1 }
  0xa1   :  { %v354_v20 = vadd.f32 %v353_v19, %v341_v18 }
  0xa6   :  { %v366_v21 = vpop.f32.mrf.mxu2  ;;  %v342_v24 = vpop.f32.mrf.mxu0 }
  0xa7   :  { %v367_v22 = vadd.f32 %v366_v21, %v354_v20  ;;  %v379_v23 = vpop.f32.mrf.mxu3  ;;  %v355_v26 = vpop.f32.mrf.mxu1 }
  0xa9   :  { %v380_v25 = vadd.f32 %v379_v23, %v367_v22 }
  0xae   :  { %v368_v27 = vpop.f32.mrf.mxu2  ;;  %v392_v31 = vpop.f32.mrf.mxu0 }
  0xaf   :  { %v381_v30 = vpop.f32.mrf.mxu3  ;;  %v393_v34 = vadd.f32 %v392_v31, %v380_v25 }
  0xb1   :  { %v396_v53 = vmax.f32 %v393_v34, 0.0 }
  0xb6   :  { %v394_v35 = vpop.f32.mrf.mxu0 }
  0xbf   :  { %v430_v38 = vpop.f32.mrf.mxu1 }
  0xc0   :  { %v431_v41 = vadd.f32 %v868_v16, %v430_v38 }
  0xc6   :  { %v443_v42 = vpop.f32.mrf.mxu2 }
  0xc7   :  { %v444_v43 = vadd.f32 %v443_v42, %v431_v41  ;;  %v456_v44 = vpop.f32.mrf.mxu3  ;;  %v432_v45 = vpop.f32.mrf.mxu1 }
  0xc9   :  { %v457_v46 = vadd.f32 %v456_v44, %v444_v43 }
  0xce   :  { %v469_v47 = vpop.f32.mrf.mxu0  ;;  %v445_v49 = vpop.f32.mrf.mxu2 }
  0xcf   :  { %v470_v48 = vadd.f32 %v469_v47, %v457_v46  ;;  %v458_v50 = vpop.f32.mrf.mxu3  ;;  %v482_v51 = vpop.f32.mrf.mxu1 }
  0xd1   :  { %v483_v52 = vadd.f32 %v482_v51, %v470_v48 }
  0xd3   :  { %v486_v54 = vmax.f32 %v483_v52, 0.0 }
  0xd5   :  { %v487_v56 = vmax.f32 %v396_v53, %v486_v54 }
  0xd6   :  { %v471_v55 = vpop.f32.mrf.mxu0 }
  0xd7   :  { %v484_v57 = vpop.f32.mrf.mxu1 }
  0xe6   :  { %v521_v58 = vpop.f32.mrf.mxu2 }
  0xe7   :  { %v534_v59 = vpop.f32.mrf.mxu3  ;;  %v522_v36 = vadd.f32 %v868_v16, %v521_v58 }
  0xe9   :  { %v535_v37 = vadd.f32 %v534_v59, %v522_v36 }
  0xee   :  { %v547_v60 = vpop.f32.mrf.mxu0  ;;  %v523_v61 = vpop.f32.mrf.mxu2 }
  0xef   :  { %v536_v62 = vpop.f32.mrf.mxu3  ;;  %v560_v63 = vpop.f32.mrf.mxu1  ;;  %v548_v39 = vadd.f32 %v547_v60, %v535_v37 }
  0xf1   :  { %v561_v3 = vadd.f32 %v560_v63, %v548_v39 }
  0xf6   :  { %v549_v28 = vpop.f32.mrf.mxu0  ;;  %v573_v32 = vpop.f32.mrf.mxu2 }
  0xf7   :  { %v562_v29 = vpop.f32.mrf.mxu1  ;;  %v574_v7 = vadd.f32 %v573_v32, %v561_v3 }
  0xf9   :  { %v577_v14 = vmax.f32 %v574_v7, 0.0 }
  0xfe   :  { %v575_v33 = vpop.f32.mrf.mxu2 }
 0x107   :  { %v611_v0 = vpop.f32.mrf.mxu3 }
 0x108   :  { %v612_v4 = vadd.f32 %v868_v16, %v611_v0 }
 0x10e   :  { %v624_v40 = vpop.f32.mrf.mxu0 }
 0x10f   :  { %v637_v8 = vpop.f32.mrf.mxu1  ;;  %v613_v1 = vpop.f32.mrf.mxu3  ;;  %v625_v2 = vadd.f32 %v624_v40, %v612_v4 }
 0x111   :  { %v638_v5 = vadd.f32 %v637_v8, %v625_v2 }
 0x116   :  { %v650_v6 = vpop.f32.mrf.mxu2  ;;  %v626_v10 = vpop.f32.mrf.mxu0 }
 0x117   :  { %v651_v9 = vadd.f32 %v650_v6, %v638_v5  ;;  %v639_v11 = vpop.f32.mrf.mxu1  ;;  %v663_v12 = vpop.f32.mrf.mxu3 }
 0x119   :  { %v664_v13 = vadd.f32 %v663_v12, %v651_v9 }
 0x11b   :  { %v667_v15 = vmax.f32 %v664_v13, 0.0 }
 0x11d   :  { %v668_v17 = vmax.f32 %v577_v14, %v667_v15 }
 0x11e   :  { %v652_v18 = vpop.f32.mrf.mxu2 }
 0x11f   :  { %v669_v19 = vmax.f32 %v487_v56, %v668_v17  ;;  %v665_v20 = vpop.f32.mrf.mxu3 }
 0x121   :  { %670 = vst [vmem:[%s1262_s3] sm:$0xff] %v669_v19 }

// kernel: netcv_forward.9
= control target key start
LH: loop header
LB: loop body
LE: loop exit
PB: predicated region body
PF: predicated region fallthrough
CT: control target
= control target key end

     0   :  { %v1724_v0 = vmov 0   ;;  %vm1113_vm0 = vcmask 1024   ;;  %s2444_s0 = inlined_call_operand.vmem [shape: f32[2,1], index: 0, kind: input, shape index: {}]   ;;  %s2445_s4 = inlined_call_operand.vmem [shape: bf16[256,128], index: 4, kind: input, shape index: {}]   ;;  %s2446_s5 = inlined_call_operand.vmem [shape: f32[1,128], index: 5, kind: input, shape index: {}]   ;;  %s2447_s7 = inlined_call_operand.vmem [shape: bf16[512,256], index: 7, kind: input, shape index: {}]   ;;  %s2448_s2 = inlined_call_operand.vmem [shape: bf16[1,256], index: 2, kind: input, shape index: {}]   ;;  %s2449_s3 = inlined_call_operand.vmem [shape: f32[1,256], index: 3, kind: input, shape index: {}]   ;;  %s2450_s1 = inlined_call_operand.vmem [shape: f32[2,512], index: 1, kind: input, shape index: {}]   ;;  %s2451_s6 = inlined_call_operand.vmem [shape: bf16[128,256], index: 6, kind: input, shape index: {}]   ;;  %s2452_s9 = inlined_call_operand.vmem [shape: bf16[256,128], index: 9, kind: input, shape index: {}]   ;;  %s2453_s10 = inlined_call_operand.vmem [shape: f32[1,128], index: 10, kind: input, shape index: {}]   ;;  %s2454_s11 = inlined_call_operand.vmem [shape: bf16[128,1], index: 11, kind: input, shape index: {}]   ;;  %s2455_s8 = inlined_call_operand.vmem [shape: f32[1,256], index: 8, kind: input, shape index: {}]   ;;  %s2456_s12 = inlined_call_operand.<no memory space> [shape: f32[1,1], index: 12, kind: input, shape index: {}]   ;;  %s2457_s13 = inlined_call_operand.vmem [shape: f32[2,1], index: 13, kind: output, shape index: {}]  }
   0x1   :  { %1720 = vset.pattern.permute.xlu0 %v1724_v0  ;;  %v46_v1 = vld [vmem:[%s2444_s0] sm:$0x3]  ;;  %v1606_v2 = vld [vmem:[%s2445_s4 + $0x38] sm:$0xff]  ;;  %v1605_v4 = vld [vmem:[%s2445_s4 + $0x30] sm:$0xff] }
   0x2   :  { %v1614_v3 = vld [vmem:[%s2445_s4 + $0x78] sm:$0xff]  ;;  %66 = vperm.xlu0 %1720, %v46_v1   ;;  %222 = vmatpush.bf16.msra.mxu0 %v1606_v2  ;;  %v1613_v5 = vld [vmem:[%s2445_s4 + $0x70] sm:$0xff]  ;;  %v1604_v6 = vld [vmem:[%s2445_s4 + $0x28] sm:$0xff] }
   0x3   :  { %235 = vmatpush.bf16.msra.mxu1 %v1614_v3  ;;  %v1612_v7 = vld [vmem:[%s2445_s4 + $0x68] sm:$0xff]  ;;  %v1603_v8 = vld [vmem:[%s2445_s4 + $0x20] sm:$0xff]  ;;  %v1602_v10 = vld [vmem:[%s2445_s4 + $0x18] sm:$0xff] }
   0x4   :  { %v1611_v9 = vld [vmem:[%s2445_s4 + $0x60] sm:$0xff]  ;;  %v1610_v11 = vld [vmem:[%s2445_s4 + $0x58] sm:$0xff]  ;;  %v1601_v12 = vld [vmem:[%s2445_s4 + $0x10] sm:$0xff] }
   0x5   :  { %v1609_v13 = vld [vmem:[%s2445_s4 + $0x50] sm:$0xff]  ;;  %v1600_v14 = vld [vmem:[%s2445_s4 + $0x8] sm:$0xff]  ;;  %v1599_v16 = vld [vmem:[%s2445_s4] sm:$0xff] }
   0x6   :  { %223 = vmatpush.bf16.msra.mxu0 %v1605_v4  ;;  %v1608_v15 = vld [vmem:[%s2445_s4 + $0x48] sm:$0xff]  ;;  %v1607_v17 = vld [vmem:[%s2445_s4 + $0x40] sm:$0xff]  ;;  %v1241_v18 = vld [vmem:[%s2447_s7 + $0x70] sm:$0xf] }
   0x7   :  { %236 = vmatpush.bf16.msra.mxu1 %v1613_v5  ;;  %v1646_v19 = vld [vmem:[%s2447_s7 + $0x74] sm:$0xf0]  ;;  %v1305_v20 = vld [vmem:[%s2447_s7 + $0xf0] sm:$0xf]  ;;  %v1233_v23 = vld [vmem:[%s2447_s7 + $0x60] sm:$0xf] }
   0x8   :  { %v1242_v21 = vor.u32 %v1646_v19, %v1241_v18  ;;  %v1662_v22 = vld [vmem:[%s2447_s7 + $0xf4] sm:$0xf0]  ;;  %v1644_v24 = vld [vmem:[%s2447_s7 + $0x64] sm:$0xf0]  ;;  %v1297_v26 = vld [vmem:[%s2447_s7 + $0xe0] sm:$0xf] }
   0x9   :  { %v1306_v25 = vor.u32 %v1662_v22, %v1305_v20  ;;  %v1660_v27 = vld [vmem:[%s2447_s7 + $0xe4] sm:$0xf0]  ;;  %v62_v28 = vld [vmem:[%s2448_s2] sm:$0x3]  ;;  %v1234_v29 = vor.u32 %v1644_v24, %v1233_v23  ;;  %v1225_v31 = vld [vmem:[%s2447_s7 + $0x50] sm:$0xf] }
   0xa   :  { %224 = vmatpush.bf16.msra.mxu0 %v1604_v6  ;;  %650 = vmatpush.bf16.msra.mxu2 %v1242_v21  ;;  %v1298_v30 = vor.u32 %v1660_v27, %v1297_v26  ;;  %v1642_v32 = vld [vmem:[%s2447_s7 + $0x54] sm:$0xf0]  ;;  %v1289_v33 = vld [vmem:[%s2447_s7 + $0xd0] sm:$0xf]  ;;  %v63_v35 = vunpack.c.l.bf16 %v62_v28  ;;  %v1217_v37 = vld [vmem:[%s2447_s7 + $0x40] sm:$0xf] }
   0xb   :  { %237 = vmatpush.bf16.msra.mxu1 %v1612_v7  ;;  %663 = vmatpush.bf16.msra.mxu3 %v1306_v25  ;;  %v1658_v34 = vld [vmem:[%s2447_s7 + $0xd4] sm:$0xf0]  ;;  %v1226_v36 = vor.u32 %v1642_v32, %v1225_v31  ;;  %v1640_v38 = vld [vmem:[%s2447_s7 + $0x44] sm:$0xf0]  ;;  %v1369_v40 = vld [vmem:[%s2447_s7 + $0x170] sm:$0xf] }
   0xc   :  { %v1290_v39 = vor.u32 %v1658_v34, %v1289_v33  ;;  %v1678_v41 = vld [vmem:[%s2447_s7 + $0x174] sm:$0xf0]  ;;  %v1433_v42 = vld [vmem:[%s2447_s7 + $0x1f0] sm:$0xf]  ;;  %v1281_v43 = vld [vmem:[%s2447_s7 + $0xc0] sm:$0xf]  ;;  %v1218_v51 = vor.u32 %v1640_v38, %v1217_v37 }
   0xd   :  { %v1656_v44 = vld [vmem:[%s2447_s7 + $0xc4] sm:$0xf0]  ;;  %v1370_v45 = vor.u32 %v1678_v41, %v1369_v40  ;;  %v1694_v46 = vld [vmem:[%s2447_s7 + $0x1f4] sm:$0xf0]  ;;  %v1909_v47 = vperm.slane %v63_v35, 0  ;;  %v1911_v48 = vperm.slane %v63_v35, 2 }
   0xe   :  { %225 = vmatpush.bf16.msra.mxu0 %v1603_v8  ;;  %651 = vmatpush.bf16.msra.mxu2 %v1234_v29  ;;  %v1434_v49 = vor.u32 %v1694_v46, %v1433_v42  ;;  %v1361_v50 = vld [vmem:[%s2447_s7 + $0x160] sm:$0xf]  ;;  %v1676_v52 = vld [vmem:[%s2447_s7 + $0x164] sm:$0xf0]  ;;  %v1282_v55 = vor.u32 %v1656_v44, %v1281_v43  ;;  %v1209_v56 = vld [vmem:[%s2447_s7 + $0x30] sm:$0xf] }
   0xf   :  { %238 = vmatpush.bf16.msra.mxu1 %v1611_v9  ;;  %664 = vmatpush.bf16.msra.mxu3 %v1298_v30  ;;  %v1425_v53 = vld [vmem:[%s2447_s7 + $0x1e0] sm:$0xf]  ;;  %v1692_v54 = vld [vmem:[%s2447_s7 + $0x1e4] sm:$0xf0]  ;;  %v1638_v57 = vld [vmem:[%s2447_s7 + $0x34] sm:$0xf0]  ;;  %v1362_v59 = vor.u32 %v1676_v52, %v1361_v50 }
  0x10   :  { %v1273_v58 = vld [vmem:[%s2447_s7 + $0xb0] sm:$0xf]  ;;  %v1426_v60 = vor.u32 %v1692_v54, %v1425_v53  ;;  %v1654_v61 = vld [vmem:[%s2447_s7 + $0xb4] sm:$0xf0]  ;;  %v1210_v0 = vor.u32 %v1638_v57, %v1209_v56  ;;  %v1201_v1 = vld [vmem:[%s2447_s7 + $0x20] sm:$0xf] }
  0x11   :  { %v1353_v62 = vld [vmem:[%s2447_s7 + $0x150] sm:$0xf]  ;;  %v1674_v63 = vld [vmem:[%s2447_s7 + $0x154] sm:$0xf0]  ;;  %v1274_v5 = vor.u32 %v1654_v61, %v1273_v58  ;;  %v1636_v6 = vld [vmem:[%s2447_s7 + $0x24] sm:$0xf0] }
  0x12   :  { %226 = vmatpush.bf16.msra.mxu0 %v1602_v10  ;;  %652 = vmatpush.bf16.msra.mxu2 %v1226_v36  ;;  %v1354_v2 = vor.u32 %v1674_v63, %v1353_v62  ;;  %v1417_v3 = vld [vmem:[%s2447_s7 + $0x1d0] sm:$0xf]  ;;  %v1690_v4 = vld [vmem:[%s2447_s7 + $0x1d4] sm:$0xf0]  ;;  %v1345_v8 = vld [vmem:[%s2447_s7 + $0x140] sm:$0xf] }
  0x13   :  { %239 = vmatpush.bf16.msra.mxu1 %v1610_v11  ;;  %665 = vmatpush.bf16.msra.mxu3 %v1290_v39  ;;  %v1418_v7 = vor.u32 %v1690_v4, %v1417_v3  ;;  %v1672_v9 = vld [vmem:[%s2447_s7 + $0x144] sm:$0xf0]  ;;  %v74_v10 = vperm.slane %v1909_v47, 0  ;;  %v75_v11 = vperm.slane %v1911_v48, 0  ;;  %v1193_v18 = vld [vmem:[%s2447_s7 + $0x10] sm:$0xf] }
  0x14   :  { %v1634_v19 = vld [vmem:[%s2447_s7 + $0x14] sm:$0xf0]  ;;  %v1257_v20 = vld [vmem:[%s2447_s7 + $0x90] sm:$0xf]  ;;  %v1346_v21 = vor.u32 %v1672_v9, %v1345_v8  ;;  %v1185_v34 = vld [vmem:[%s2447_s7] sm:$0xf] }
  0x15   :  { %v1650_v23 = vld [vmem:[%s2447_s7 + $0x94] sm:$0xf0]  ;;  %v1337_v25 = vld [vmem:[%s2447_s7 + $0x130] sm:$0xf]  ;;  %v1194_v32 = vor.u32 %v1634_v19, %v1193_v18  ;;  %v1632_v35 = vld [vmem:[%s2447_s7 + $0x4] sm:$0xf0] }
  0x16   :  { %227 = vmatpush.bf16.msra.mxu0 %v1601_v12  ;;  %653 = vmatpush.bf16.msra.mxu2 %v1218_v51  ;;  %v1265_v12 = vld [vmem:[%s2447_s7 + $0xa0] sm:$0xf]  ;;  %v1670_v26 = vld [vmem:[%s2447_s7 + $0x134] sm:$0xf0]  ;;  %v1401_v27 = vld [vmem:[%s2447_s7 + $0x1b0] sm:$0xf]  ;;  %v1258_v33 = vor.u32 %v1650_v23, %v1257_v20  ;;  %v1186_v51 = vor.u32 %v1632_v35, %v1185_v34 }
  0x17   :  { %240 = vmatpush.bf16.msra.mxu1 %v1609_v13  ;;  %666 = vmatpush.bf16.msra.mxu3 %v1282_v55  ;;  %v1652_v13 = vld [vmem:[%s2447_s7 + $0xa4] sm:$0xf0]  ;;  %v1686_v28 = vld [vmem:[%s2447_s7 + $0x1b4] sm:$0xf0]  ;;  %v1338_v36 = vor.u32 %v1670_v26, %v1337_v25  ;;  %v1249_v39 = vld [vmem:[%s2447_s7 + $0x80] sm:$0xf] }
  0x18   :  { %v1266_v22 = vor.u32 %v1652_v13, %v1265_v12  ;;  %v1402_v40 = vor.u32 %v1686_v28, %v1401_v27  ;;  %v1329_v41 = vld [vmem:[%s2447_s7 + $0x120] sm:$0xf]  ;;  %v1668_v42 = vld [vmem:[%s2447_s7 + $0x124] sm:$0xf0]  ;;  %v1645_v44 = vld [vmem:[%s2447_s7 + $0x74] sm:$0xf] }
  0x19   :  { %v1648_v43 = vld [vmem:[%s2447_s7 + $0x84] sm:$0xf0]  ;;  %v1661_v48 = vld [vmem:[%s2447_s7 + $0xf4] sm:$0xf]  ;;  %v47_v50 = vld [vmem:[%s2450_s1] sm:$0xff]  ;;  %v1330_v52 = vor.u32 %v1668_v42, %v1329_v41 }
  0x1a   :  { %228 = vmatpush.bf16.msra.mxu0 %v1600_v14  ;;  %v78_v14 = vld [vmem:[%s2449_s3] sm:$0x3]  ;;  %654 = vmatpush.bf16.msra.mxu2 %v1210_v0  ;;  %v1684_v54 = vld [vmem:[%s2447_s7 + $0x1a4] sm:$0xf0]  ;;  %49 = vst [vmem:[#allocation1] ss:$4 sm:$0xff] %v47_v50 }
  0x1b   :  { %241 = vmatpush.bf16.msra.mxu1 %v1608_v15  ;;  %v1409_v15 = vld [vmem:[%s2447_s7 + $0x1c0] sm:$0xf]  ;;  %667 = vmatpush.bf16.msra.mxu3 %v1274_v5  ;;  %v80_v29 = vperm.slane %v78_v14, 0  ;;  %v81_v30 = vperm.slane %v78_v14, 1  ;;  %v1321_v57 = vld [vmem:[%s2447_s7 + $0x110] sm:$0xf] }
  0x1c   :  { %v1393_v53 = vld [vmem:[%s2447_s7 + $0x1a0] sm:$0xf]  ;;  %v1666_v58 = vld [vmem:[%s2447_s7 + $0x114] sm:$0xf0]  ;;  %v1643_v0 = vld [vmem:[%s2447_s7 + $0x64] sm:$0xf] }
  0x1d   :  { %v1394_v3 = vor.u32 %v1684_v54, %v1393_v53  ;;  %v1299_v4 = vld [vmem:[%s2447_s7 + $0xe8] sm:$0xf0]  ;;  %v1322_v5 = vor.u32 %v1666_v58, %v1321_v57  ;;  %v1641_v8 = vld [vmem:[%s2447_s7 + $0x54] sm:$0xf]  ;;  %v1227_v9 = vld [vmem:[%s2447_s7 + $0x58] sm:$0xf0] }
  0x1e   :  { %229 = vmatpush.bf16.msra.mxu0 %v1599_v16  ;;  %v1688_v16 = vld [vmem:[%s2447_s7 + $0x1c4] sm:$0xf0]  ;;  %v1657_v13 = vld [vmem:[%s2447_s7 + $0xd4] sm:$0xf]  ;;  %v1291_v20 = vld [vmem:[%s2447_s7 + $0xd8] sm:$0xf0] }
  0x1f   :  { %242 = vmatpush.bf16.msra.mxu1 %v1607_v17  ;;  %v1202_v17 = vor.u32 %v1636_v6, %v1201_v1  ;;  %v1410_v24 = vor.u32 %v1688_v16, %v1409_v15  ;;  %668 = vmatpush.bf16.msra.mxu3 %v1266_v22  ;;  %v1235_v1 = vld [vmem:[%s2447_s7 + $0x68] sm:$0xf0]  ;;  %v1385_v6 = vld [vmem:[%s2447_s7 + $0x190] sm:$0xf]  ;;  %v1677_v14 = vld [vmem:[%s2447_s7 + $0x174] sm:$0xf] }
  0x20   :  { %v1238_v12 = vor.u32 %v1643_v0, %v1235_v1  ;;  %v1371_v15 = vld [vmem:[%s2447_s7 + $0x178] sm:$0xf0]  ;;  %v1680_v25 = vld [vmem:[%s2447_s7 + $0x184] sm:$0xf0]  ;;  %v1693_v27 = vld [vmem:[%s2447_s7 + $0x1f4] sm:$0xf] }
  0x21   :  { %655 = vmatpush.bf16.msra.mxu2 %v1202_v17  ;;  %v50_v18 = vld.sshfl [vmem:[#allocation1] sm:$0xff pattern:$0x73625140]  ;;  %v51_v19 = vld.sshfl [vmem:[#allocation1 + $0x8] sm:$0xff pattern:$0x73625140]  ;;  %v1374_v26 = vor.u32 %v1677_v14, %v1371_v15 }
  0x22   :  { %676 = vmatpush.bf16.msrb.mxu0 %v1370_v45  ;;  %v1243_v45 = vld [vmem:[%s2447_s7 + $0x78] sm:$0xf0]  ;;  %v2091_v23 = vpack.c.bf16 %v51_v19, %v51_v19  ;;  %v1219_v34 = vld [vmem:[%s2447_s7 + $0x48] sm:$0xf0]  ;;  %v1689_v53 = vld [vmem:[%s2447_s7 + $0x1d4] sm:$0xf] }
  0x23   :  { %689 = vmatpush.bf16.msrb.mxu1 %v1434_v49  ;;  %v1307_v49 = vld [vmem:[%s2447_s7 + $0xf8] sm:$0xf0]  ;;  %669 = vmatpush.bf16.msra.mxu3 %v1258_v33  ;;  %v1639_v33 = vld [vmem:[%s2447_s7 + $0x44] sm:$0xf]  ;;  %v1427_v41 = vld [vmem:[%s2447_s7 + $0x1e8] sm:$0xf0] }
  0x24   :  { %v1310_v63 = vor.u32 %v1661_v48, %v1307_v49  ;;  %v1435_v28 = vld [vmem:[%s2447_s7 + $0x1f8] sm:$0xf0]  ;;  %v1222_v42 = vor.u32 %v1639_v33, %v1219_v34  ;;  %v52_v48 = vld.sshfl [vmem:[#allocation1 + $0x10] sm:$0xff pattern:$0x73625140] }
  0x25   :  { %656 = vmatpush.bf16.msra.mxu2 %v1194_v32  ;;  %v1294_v32 = vor.u32 %v1657_v13, %v1291_v20  ;;  %v1653_v49 = vld [vmem:[%s2447_s7 + $0xb4] sm:$0xf]  ;;  %v1275_v50 = vld [vmem:[%s2447_s7 + $0xb8] sm:$0xf0]  ;;  %v1347_v57 = vld [vmem:[%s2447_s7 + $0x148] sm:$0xf0]  ;;  %v2161_v58 = vpack.c.bf16 %v52_v48, %v52_v48 }
  0x26   :  { %677 = vmatpush.bf16.msrb.mxu0 %v1362_v59  ;;  %v1250_v59 = vor.u32 %v1648_v43, %v1249_v39  ;;  %v1637_v43 = vld [vmem:[%s2447_s7 + $0x34] sm:$0xf]  ;;  %v1419_v54 = vld [vmem:[%s2447_s7 + $0x1d8] sm:$0xf0]  ;;  %v1651_v0 = vld [vmem:[%s2447_s7 + $0xa4] sm:$0xf] }
  0x27   :  { %690 = vmatpush.bf16.msrb.mxu1 %v1426_v60  ;;  %v1246_v60 = vor.u32 %v1645_v44, %v1243_v45  ;;  %v1673_v44 = vld [vmem:[%s2447_s7 + $0x154] sm:$0xf]  ;;  %v1355_v45 = vld [vmem:[%s2447_s7 + $0x158] sm:$0xf0]  ;;  %v1267_v1 = vld [vmem:[%s2447_s7 + $0xa8] sm:$0xf0] }
  0x28   :  { %670 = vmatpush.bf16.msra.mxu3 %v1250_v59  ;;  %v53_v59 = vld.sshfl [vmem:[#allocation1 + $0x18] sm:$0xff pattern:$0x73625140]  ;;  %v1631_v19 = vld [vmem:[%s2447_s7 + $0x4] sm:$0xf] }
  0x29   :  { %657 = vmatpush.bf16.msra.mxu2 %v1186_v51  ;;  %v1259_v13 = vld [vmem:[%s2447_s7 + $0x98] sm:$0xf0]  ;;  %v1667_v20 = vld [vmem:[%s2447_s7 + $0x124] sm:$0xf]  ;;  %v1681_v48 = vld [vmem:[%s2447_s7 + $0x194] sm:$0xf] }
  0x2a   :  { %678 = vmatpush.bf16.msrb.mxu0 %v1354_v2  ;;  %v1659_v2 = vld [vmem:[%s2447_s7 + $0xe4] sm:$0xf] }
  0x2b   :  { %691 = vmatpush.bf16.msrb.mxu1 %v1418_v7  ;;  %v1682_v7 = vld [vmem:[%s2447_s7 + $0x194] sm:$0xf0]  ;;  %v1302_v16 = vor.u32 %v1659_v2, %v1299_v4  ;;  %671 = vmatmul.bf16.vlgmr.msra.gmra.mxu3 %v2091_v23  ;;  %v1422_v2 = vor.u32 %v1689_v53, %v1419_v54  ;;  %v1687_v4 = vld [vmem:[%s2447_s7 + $0x1c4] sm:$0xf]  ;;  %v1481_v54 = vld [vmem:[%s2451_s6 + $0x50] sm:$0xf] }
  0x2c   :  { %715 = vmatpush.bf16.msrb.mxu3 %v1310_v63  ;;  %v1386_v17 = vor.u32 %v1682_v7, %v1385_v6  ;;  %v2169_v63 = vpack.c.bf16 %v53_v59, %v53_v59  ;;  %v1669_v7 = vld [vmem:[%s2447_s7 + $0x134] sm:$0xf]  ;;  %v1683_v34 = vld [vmem:[%s2447_s7 + $0x1a4] sm:$0xf]  ;;  %v1483_v59 = vld [vmem:[%s2451_s6 + $0x58] sm:$0xf0] }
  0x2d   :  { %702 = vmatpush.bf16.msrb.mxu2 %v1246_v60  ;;  %v1278_v60 = vor.u32 %v1653_v49, %v1275_v50  ;;  %v1387_v49 = vld [vmem:[%s2447_s7 + $0x198] sm:$0xf0]  ;;  %v1663_v50 = vld [vmem:[%s2447_s7 + $0x104] sm:$0xf] }
  0x2e   :  { %679 = vmatpush.bf16.msrb.mxu0 %v1346_v21  ;;  %v2089_v21 = vpack.c.bf16 %v50_v18, %v50_v18 }
  0x2f   :  { %692 = vmatpush.bf16.msrb.mxu1 %v1410_v24  ;;  %v1377_v24 = vld [vmem:[%s2447_s7 + $0x180] sm:$0xf] }
  0x30   :  { %716 = vmatpush.bf16.msrb.mxu3 %v1302_v16  ;;  %v1378_v35 = vor.u32 %v1680_v25, %v1377_v24  ;;  %658 = vmatmul.bf16.vlgmr.msra.gmra.mxu2 %v2089_v21  ;;  %v1685_v16 = vld [vmem:[%s2447_s7 + $0x1b4] sm:$0xf]  ;;  %v1187_v25 = vld [vmem:[%s2447_s7 + $0x8] sm:$0xf0] }
  0x31   :  { %703 = vmatpush.bf16.msrb.mxu2 %v1238_v12  ;;  %v1649_v12 = vld [vmem:[%s2447_s7 + $0x94] sm:$0xf] }
  0x32   :  { %680 = vmatpush.bf16.msrb.mxu0 %v1338_v36  ;;  %v1655_v36 = vld [vmem:[%s2447_s7 + $0xc4] sm:$0xf]  ;;  %v1262_v24 = vor.u32 %v1649_v12, %v1259_v13  ;;  %v1459_v12 = vld [vmem:[%s2451_s6 + $0x28] sm:$0xf0] }
  0x33   :  { %693 = vmatpush.bf16.msrb.mxu1 %v1402_v40  ;;  %v1691_v40 = vld [vmem:[%s2447_s7 + $0x1e4] sm:$0xf] }
  0x34   :  { %717 = vmatpush.bf16.msrb.mxu3 %v1294_v32  ;;  %v1430_v51 = vor.u32 %v1691_v40, %v1427_v41  ;;  %v1499_v32 = vld [vmem:[%s2451_s6 + $0x78] sm:$0xf0] }
  0x36   :  { %681 = vmatpush.bf16.msrb.mxu0 %v1330_v52  ;;  %v1358_v52 = vor.u32 %v1673_v44, %v1355_v45  ;;  %v1627_v44 = vld [vmem:[%s2451_s6 + $0x64] sm:$0xf] }
  0x37   :  { %694 = vmatpush.bf16.msrb.mxu1 %v1394_v3 }
  0x3a   :  { %682 = vmatpush.bf16.msrb.mxu0 %v1322_v5  ;;  %v1411_v5 = vld [vmem:[%s2447_s7 + $0x1c8] sm:$0xf0] }
  0x3b   :  { %695 = vmatpush.bf16.msrb.mxu1 %v1386_v17  ;;  %v1414_v14 = vor.u32 %v1687_v4, %v1411_v5  ;;  %v1403_v17 = vld [vmem:[%s2447_s7 + $0x1b8] sm:$0xf0]  ;;  %v1465_v4 = vld [vmem:[%s2451_s6 + $0x30] sm:$0xf]  ;;  %v1622_v5 = vld [vmem:[%s2451_s6 + $0x34] sm:$0xf0] }
  0x3f   :  { %696 = vmatpush.bf16.msrb.mxu1 %v1378_v35  ;;  %v1395_v35 = vld [vmem:[%s2447_s7 + $0x1a8] sm:$0xf0] }
  0x40   :  { %v1398_v45 = vor.u32 %v1683_v34, %v1395_v35 }
  0x74   :  { %v67_v31 = vpop.permute.xlu0 %66 }
  0x75   :  { %v76_v37 = vmul.f32 %v74_v10, %v67_v31  ;;  %v77_v38 = vmul.f32 %v75_v11, %v67_v31  ;;  %v1313_v10 = vld [vmem:[%s2447_s7 + $0x100] sm:$0xf]  ;;  %v1664_v11 = vld [vmem:[%s2447_s7 + $0x104] sm:$0xf0]  ;;  %v1363_v31 = vld [vmem:[%s2447_s7 + $0x168] sm:$0xf0] }
  0x76   :  { %v1314_v22 = vor.u32 %v1664_v11, %v1313_v10  ;;  %v1633_v10 = vld [vmem:[%s2447_s7 + $0x14] sm:$0xf]  ;;  %v1195_v11 = vld [vmem:[%s2447_s7 + $0x18] sm:$0xf0] }
  0x77   :  { %v84_v46 = vadd.f32 %v80_v29, %v76_v37  ;;  %v85_v47 = vadd.f32 %v81_v30, %v77_v38  ;;  %v1230_v29 = vor.u32 %v1641_v8, %v1227_v9  ;;  %v1675_v30 = vld [vmem:[%s2447_s7 + $0x164] sm:$0xf]  ;;  %v1283_v37 = vld [vmem:[%s2447_s7 + $0xc8] sm:$0xf0]  ;;  %v1438_v38 = vor.u32 %v1693_v27, %v1435_v28  ;;  %v1339_v8 = vld [vmem:[%s2447_s7 + $0x138] sm:$0xf0] }
  0x78   :  { %683 = vmatpush.bf16.msrb.mxu0 %v1314_v22  ;;  %v1366_v39 = vor.u32 %v1675_v30, %v1363_v31  ;;  %v1270_v9 = vor.u32 %v1651_v0, %v1267_v1  ;;  %v1342_v15 = vor.u32 %v1669_v7, %v1339_v8  ;;  %v1198_v18 = vor.u32 %v1633_v10, %v1195_v11  ;;  %v1331_v22 = vld [vmem:[%s2447_s7 + $0x128] sm:$0xf0]  ;;  %v1497_v28 = vld [vmem:[%s2451_s6 + $0x70] sm:$0xf]  ;;  %v1629_v30 = vld [vmem:[%s2451_s6 + $0x74] sm:$0xf] }
  0x79   :  { %v86_v55 = vmax.f32 %v84_v46, 0.0  ;;  %v87_v56 = vmax.f32 %v85_v47, 0.0  ;;  %704 = vmatpush.bf16.msrb.mxu2 %v1230_v29  ;;  %v1286_v46 = vor.u32 %v1655_v36, %v1283_v37  ;;  %v1211_v47 = vld [vmem:[%s2447_s7 + $0x38] sm:$0xf0]  ;;  %v1251_v27 = vld [vmem:[%s2447_s7 + $0x88] sm:$0xf0]  ;;  %v1406_v31 = vor.u32 %v1685_v16, %v1403_v17 }
  0x7a   :  { %v1630_v29 = vld [vmem:[%s2451_s6 + $0x74] sm:$0xf0]  ;;  %v1334_v33 = vor.u32 %v1667_v20, %v1331_v22  ;;  %v1190_v36 = vor.u32 %v1631_v19, %v1187_v25  ;;  %v1665_v37 = vld [vmem:[%s2447_s7 + $0x114] sm:$0xf]  ;;  %v1502_v41 = vor.u32 %v1629_v30, %v1499_v32  ;;  %v1624_v0 = vld [vmem:[%s2451_s6 + $0x44] sm:$0xf0]  ;;  %v1466_v8 = vor.u32 %v1622_v5, %v1465_v4 }
  0x7b   :  { %v88_v61 = vpack.c.bf16 %v86_v55, %v86_v55  ;;  %v89_v62 = vpack.c.bf16 %v87_v56, %v87_v56  ;;  %v1671_v55 = vld [vmem:[%s2447_s7 + $0x144] sm:$0xf]  ;;  %v1214_v56 = vor.u32 %v1637_v43, %v1211_v47  ;;  %718 = vmatpush.bf16.msrb.mxu3 %v1286_v46  ;;  %v1498_v40 = vor.u32 %v1630_v29, %v1497_v28  ;;  %v1628_v43 = vld [vmem:[%s2451_s6 + $0x64] sm:$0xf0]  ;;  %v1491_v46 = vld [vmem:[%s2451_s6 + $0x68] sm:$0xf0] }
  0x7c   :  { %v1350_v3 = vor.u32 %v1671_v55, %v1347_v57  ;;  %v1494_v53 = vor.u32 %v1627_v44, %v1491_v46  ;;  %v1626_v55 = vld [vmem:[%s2451_s6 + $0x54] sm:$0xf0]  ;;  %v1625_v57 = vld [vmem:[%s2451_s6 + $0x54] sm:$0xf]  ;;  %v1623_v1 = vld [vmem:[%s2451_s6 + $0x44] sm:$0xf] }
  0x7d   :  { %230 = vmatmul.bf16.vlgmr.msra.gmra.mxu0 %v88_v61  ;;  %243 = vmatmul.bf16.vlgmr.msra.gmra.mxu1 %v89_v62  ;;  %v1635_v61 = vld [vmem:[%s2447_s7 + $0x24] sm:$0xf]  ;;  %v1203_v62 = vld [vmem:[%s2447_s7 + $0x28] sm:$0xf0]  ;;  %v1467_v7 = vld [vmem:[%s2451_s6 + $0x38] sm:$0xf0] }
  0x7e   :  { %728 = vmatpush.bf16.msra.mxu0 %v1374_v26  ;;  %741 = vmatpush.bf16.msra.mxu1 %v1438_v38  ;;  %v1206_v6 = vor.u32 %v1635_v61, %v1203_v62  ;;  %v1647_v26 = vld [vmem:[%s2447_s7 + $0x84] sm:$0xf]  ;;  %v1323_v38 = vld [vmem:[%s2447_s7 + $0x118] sm:$0xf0]  ;;  %v1482_v61 = vor.u32 %v1626_v55, %v1481_v54  ;;  %v1486_v62 = vor.u32 %v1625_v57, %v1483_v59  ;;  %v1457_v10 = vld [vmem:[%s2451_s6 + $0x20] sm:$0xf] }
  0x7f   :  { %705 = vmatpush.bf16.msrb.mxu2 %v1222_v42  ;;  %719 = vmatpush.bf16.msrb.mxu3 %v1278_v60  ;;  %v1489_v42 = vld [vmem:[%s2451_s6 + $0x60] sm:$0xf]  ;;  %v1326_v47 = vor.u32 %v1665_v37, %v1323_v38  ;;  %v1619_v11 = vld [vmem:[%s2451_s6 + $0x24] sm:$0xf]  ;;  %v1379_v16 = vld [vmem:[%s2447_s7 + $0x188] sm:$0xf0] }
  0x80   :  { %v1618_v19 = vld [vmem:[%s2451_s6 + $0x14] sm:$0xf0]  ;;  %v1617_v20 = vld [vmem:[%s2451_s6 + $0x14] sm:$0xf]  ;;  %v1615_v28 = vld [vmem:[%s2451_s6 + $0x4] sm:$0xf] }
  0x81   :  { %v1443_v30 = vld [vmem:[%s2451_s6 + $0x8] sm:$0xf0]  ;;  %v1706_v4 = vld [vmem:[%s2452_s9 + $0x58] sm:$0xff]  ;;  %v1697_v5 = vld [vmem:[%s2452_s9 + $0x10] sm:$0xff] }
  0x82   :  { %729 = vmatpush.bf16.msra.mxu0 %v1366_v39  ;;  %742 = vmatpush.bf16.msra.mxu1 %v1430_v51  ;;  %v1254_v39 = vor.u32 %v1647_v26, %v1251_v27  ;;  %v1315_v51 = vld [vmem:[%s2447_s7 + $0x108] sm:$0xf0]  ;;  %v1441_v26 = vld [vmem:[%s2451_s6] sm:$0xf]  ;;  %v1616_v27 = vld [vmem:[%s2451_s6 + $0x4] sm:$0xf0] }
  0x83   :  { %706 = vmatpush.bf16.msrb.mxu2 %v1214_v56  ;;  %720 = vmatpush.bf16.msrb.mxu3 %v1270_v9  ;;  %v1390_v56 = vor.u32 %v1681_v48, %v1387_v49  ;;  %v1318_v60 = vor.u32 %v1663_v50, %v1315_v51  ;;  %v1442_v29 = vor.u32 %v1616_v27, %v1441_v26  ;;  %v1708_v48 = vld [vmem:[%s2452_s9 + $0x68] sm:$0xff] }
  0x86   :  { %730 = vmatpush.bf16.msra.mxu0 %v1358_v52  ;;  %743 = vmatpush.bf16.msra.mxu1 %v1422_v2  ;;  %v1490_v52 = vor.u32 %v1628_v43, %v1489_v42  ;;  %v1701_v42 = vld [vmem:[%s2452_s9 + $0x30] sm:$0xff] }
  0x87   :  { %707 = vmatpush.bf16.msrb.mxu2 %v1206_v6  ;;  %721 = vmatpush.bf16.msrb.mxu3 %v1262_v24  ;;  %v1621_v6 = vld [vmem:[%s2451_s6 + $0x34] sm:$0xf]  ;;  %v1451_v24 = vld [vmem:[%s2451_s6 + $0x18] sm:$0xf0] }
  0x88   :  { %v1470_v9 = vor.u32 %v1621_v6, %v1467_v7  ;;  %v1454_v25 = vor.u32 %v1617_v20, %v1451_v24  ;;  %v1709_v43 = vld [vmem:[%s2452_s9 + $0x70] sm:$0xff] }
  0x89   :  { %v1705_v6 = vld [vmem:[%s2452_s9 + $0x50] sm:$0xff] }
  0x8a   :  { %731 = vmatpush.bf16.msra.mxu0 %v1350_v3  ;;  %744 = vmatpush.bf16.msra.mxu1 %v1414_v14  ;;  %v1462_v14 = vor.u32 %v1619_v11, %v1459_v12  ;;  %v1703_v11 = vld [vmem:[%s2452_s9 + $0x40] sm:$0xff]  ;;  %v1718_v12 = vld [vmem:[%s2454_s11 + $0x38] sm:$0xff] }
  0x8b   :  { %708 = vmatpush.bf16.msrb.mxu2 %v1198_v18  ;;  %722 = vmatpush.bf16.msrb.mxu3 %v1254_v39  ;;  %v1449_v18 = vld [vmem:[%s2451_s6 + $0x10] sm:$0xf] }
  0x8c   :  { %v1450_v22 = vor.u32 %v1618_v19, %v1449_v18  ;;  %v860_v18 = vld [vmem:[%s2455_s8] sm:$0x3] }
  0x8d   :  { %697 = vmatmul.bf16.vlgmr.msrb.gmra.mxu1 %v2169_v63  ;;  %684 = vmatmul.bf16.vlgmr.msrb.gmra.mxu0 %v2161_v58  ;;  %v862_v20 = vperm.slane %v860_v18, 0 }
  0x8e   :  { %732 = vmatpush.bf16.msra.mxu0 %v1342_v15  ;;  %745 = vmatpush.bf16.msra.mxu1 %v1406_v31  ;;  %v1679_v15 = vld [vmem:[%s2447_s7 + $0x184] sm:$0xf]  ;;  %v1446_v31 = vor.u32 %v1615_v28, %v1443_v30 }
  0x8f   :  { %709 = vmatpush.bf16.msrb.mxu2 %v1190_v36  ;;  %847 = vmatpush.bf16.msra.mxu3 %v1502_v41  ;;  %v1382_v17 = vor.u32 %v1679_v15, %v1379_v16  ;;  %v1710_v41 = vld [vmem:[%s2452_s9 + $0x78] sm:$0xff]  ;;  %v1715_v15 = vld [vmem:[%s2454_s11 + $0x20] sm:$0xff] }
  0x90   :  { %723 = vmatmul.bf16.vlgmr.msrb.gmra.mxu3 %v2091_v23  ;;  %v1475_v23 = vld [vmem:[%s2451_s6 + $0x48] sm:$0xf0]  ;;  %v1714_v16 = vld [vmem:[%s2454_s11 + $0x18] sm:$0xff] }
  0x91   :  { %v1478_v3 = vor.u32 %v1623_v1, %v1475_v23  ;;  %v1699_v23 = vld [vmem:[%s2452_s9 + $0x20] sm:$0xff] }
  0x92   :  { %733 = vmatpush.bf16.msra.mxu0 %v1334_v33  ;;  %746 = vmatpush.bf16.msra.mxu1 %v1398_v45 }
  0x93   :  { %834 = vmatpush.bf16.msra.mxu2 %v1498_v40  ;;  %848 = vmatpush.bf16.msra.mxu3 %v1494_v53  ;;  %v1702_v40 = vld [vmem:[%s2452_s9 + $0x38] sm:$0xff] }
  0x94   :  { %710 = vmatmul.bf16.vlgmr.msrb.gmra.mxu2 %v2089_v21  ;;  %v1473_v21 = vld [vmem:[%s2451_s6 + $0x40] sm:$0xf] }
  0x95   :  { %v1474_v2 = vor.u32 %v1624_v0, %v1473_v21 }
  0x96   :  { %734 = vmatpush.bf16.msra.mxu0 %v1326_v47  ;;  %747 = vmatpush.bf16.msra.mxu1 %v1390_v56  ;;  %v1700_v47 = vld [vmem:[%s2452_s9 + $0x28] sm:$0xff] }
  0x97   :  { %835 = vmatpush.bf16.msra.mxu2 %v1490_v52  ;;  %849 = vmatpush.bf16.msra.mxu3 %v1486_v62 }
  0x9a   :  { %735 = vmatpush.bf16.msra.mxu0 %v1318_v60  ;;  %748 = vmatpush.bf16.msra.mxu1 %v1382_v17  ;;  %v1713_v17 = vld [vmem:[%s2454_s11 + $0x10] sm:$0xff] }
  0x9b   :  { %836 = vmatpush.bf16.msra.mxu2 %v1482_v61  ;;  %850 = vmatpush.bf16.msra.mxu3 %v1478_v3  ;;  %v1698_v3 = vld [vmem:[%s2452_s9 + $0x18] sm:$0xff] }
  0x9d   :  { %736 = vmatmul.bf16.vlgmr.msra.gmra.mxu0 %v2161_v58  ;;  %v1620_v58 = vld [vmem:[%s2451_s6 + $0x24] sm:$0xf0]  ;;  %749 = vmatmul.bf16.vlgmr.msra.gmra.mxu1 %v2169_v63  ;;  %v1721_v63 = vld [vmem:[%s2446_s5] ss:$0 sm:$0xff] }
  0x9e   :  { %v1458_v13 = vor.u32 %v1620_v58, %v1457_v10  ;;  %1004 = vmatpush.bf16.msrb.mxu0 %v1702_v40  ;;  %1017 = vmatpush.bf16.msrb.mxu1 %v1710_v41  ;;  %v1704_v10 = vld [vmem:[%s2452_s9 + $0x48] sm:$0xff]  ;;  %v1695_v58 = vld [vmem:[%s2452_s9] sm:$0xff] }
  0x9f   :  { %837 = vmatpush.bf16.msra.mxu2 %v1474_v2  ;;  %851 = vmatpush.bf16.msra.mxu3 %v1470_v9  ;;  %v1707_v2 = vld [vmem:[%s2452_s9 + $0x60] sm:$0xff]  ;;  %v1696_v9 = vld [vmem:[%s2452_s9 + $0x8] sm:$0xff] }
  0xa2   :  { %1005 = vmatpush.bf16.msrb.mxu0 %v1701_v42  ;;  %1018 = vmatpush.bf16.msrb.mxu1 %v1709_v43 }
  0xa3   :  { %838 = vmatpush.bf16.msra.mxu2 %v1466_v8  ;;  %852 = vmatpush.bf16.msra.mxu3 %v1462_v14  ;;  %v1716_v14 = vld [vmem:[%s2454_s11 + $0x28] sm:$0xff] }
  0xa6   :  { %1006 = vmatpush.bf16.msrb.mxu0 %v1700_v47  ;;  %1019 = vmatpush.bf16.msrb.mxu1 %v1708_v48 }
  0xa7   :  { %839 = vmatpush.bf16.msra.mxu2 %v1458_v13  ;;  %853 = vmatpush.bf16.msra.mxu3 %v1454_v25  ;;  %v1717_v13 = vld [vmem:[%s2454_s11 + $0x30] sm:$0xff] }
  0xaa   :  { %1007 = vmatpush.bf16.msrb.mxu0 %v1699_v23  ;;  %1020 = vmatpush.bf16.msrb.mxu1 %v1707_v2 }
  0xab   :  { %840 = vmatpush.bf16.msra.mxu2 %v1450_v22  ;;  %854 = vmatpush.bf16.msra.mxu3 %v1446_v31  ;;  %v863_v22 = vperm.slane %v860_v18, 1 }
  0xae   :  { %v672_v44 = vpop.f32.mrf.mxu3  ;;  %1008 = vmatpush.bf16.msrb.mxu0 %v1698_v3  ;;  %1021 = vmatpush.bf16.msrb.mxu1 %v1706_v4 }
  0xaf   :  { %841 = vmatpush.bf16.msra.mxu2 %v1442_v29 }
  0xb2   :  { %1009 = vmatpush.bf16.msrb.mxu0 %v1697_v5  ;;  %1022 = vmatpush.bf16.msrb.mxu1 %v1705_v6 }
  0xb3   :  { %v659_v45 = vpop.f32.mrf.mxu2  ;;  %1100 = vmatpush.bf16.msrb.mxu2 %v1718_v12 }
  0xb4   :  { %v673_v46 = vadd.f32 %v672_v44, %v659_v45 }
  0xb6   :  { %v674_v52 = vpop.f32.mrf.mxu3  ;;  %1010 = vmatpush.bf16.msrb.mxu0 %v1696_v9  ;;  %1023 = vmatpush.bf16.msrb.mxu1 %v1704_v10 }
  0xb7   :  { %1101 = vmatpush.bf16.msrb.mxu2 %v1717_v13 }
  0xba   :  { %1011 = vmatpush.bf16.msrb.mxu0 %v1695_v58  ;;  %1024 = vmatpush.bf16.msrb.mxu1 %v1703_v11 }
  0xbb   :  { %v661_v54 = vpop.f32.mrf.mxu2  ;;  %1102 = vmatpush.bf16.msrb.mxu2 %v1716_v14 }
  0xbf   :  { %1103 = vmatpush.bf16.msrb.mxu2 %v1715_v15 }
  0xc3   :  { %1104 = vmatpush.bf16.msrb.mxu2 %v1714_v16 }
  0xc7   :  { %1105 = vmatpush.bf16.msrb.mxu2 %v1713_v17 }
  0xfa   :  { %v231_v32 = vpop.f32.mrf.mxu0  ;;  %v244_v33 = vpop.f32.mrf.mxu1 }
  0xfb   :  { %v232_v34 = vadd.f32 %v1721_v63, %v231_v32 }
  0xfd   :  { %v245_v35 = vadd.f32 %v244_v33, %v232_v34 }
  0xff   :  { %v248_v36 = vmax.f32 %v245_v35, 0.0  ;;  %v1712_v35 = vld [vmem:[%s2454_s11 + $0x8] sm:$0xff] }
 0x100   :  { %1106 = vmatpush.bf16.msrb.mxu2 %v1712_v35 }
 0x101   :  { %v249_v37 = vpack.c.bf16 %v248_v36, %v248_v36  ;;  %v1711_v36 = vld [vmem:[%s2454_s11] sm:$0xff] }
 0x102   :  { %v233_v38 = vpop.f32.mrf.mxu0  ;;  %v246_v39 = vpop.f32.mrf.mxu1 }
 0x103   :  { %842 = vmatmul.bf16.vlgmr.msra.gmra.mxu2 %v249_v37  ;;  %855 = vmatmul.bf16.vlgmr.msra.gmra.mxu3 %v249_v37  ;;  %v18_v37 = vstv %s2456_s12  ;;  %v1722_v38 = vld [vmem:[%s2453_s10] ss:$0 sm:$0xff] }
 0x104   :  { %1107 = vmatpush.bf16.msrb.mxu2 %v1711_v36  ;;  %19 = vst [vmem:[#allocation2] sm:$0x1] %v18_v37 }
 0x10a   :  { %v698_v49 = vpop.f32.mrf.mxu1  ;;  %v685_v50 = vpop.f32.mrf.mxu0 }
 0x10b   :  { %v686_v51 = vadd.f32 %v685_v50, %v673_v46  ;;  %v1723_v47 = vld [vmem:[#allocation2] ss:$0 sm:$0xff] }
 0x10d   :  { %v699_v53 = vadd.f32 %v698_v49, %v686_v51 }
 0x112   :  { %v700_v55 = vpop.f32.mrf.mxu1  ;;  %v687_v56 = vpop.f32.mrf.mxu0 }
 0x113   :  { %v724_v59 = vpop.f32.mrf.mxu3 }
 0x117   :  { %v711_v57 = vpop.f32.mrf.mxu2 }
 0x118   :  { %v725_v61 = vadd.f32 %v724_v59, %v711_v57 }
 0x11a   :  { %v737_v60 = vpop.f32.mrf.mxu0  ;;  %v750_v7 = vpop.f32.mrf.mxu1 }
 0x11b   :  { %v738_v62 = vadd.f32 %v737_v60, %v725_v61  ;;  %v726_v0 = vpop.f32.mrf.mxu3 }
 0x11d   :  { %v751_v19 = vadd.f32 %v750_v7, %v738_v62 }
 0x11f   :  { %v713_v21 = vpop.f32.mrf.mxu2 }
 0x122   :  { %v739_v1 = vpop.f32.mrf.mxu0  ;;  %v752_v8 = vpop.f32.mrf.mxu1 }
 0x186   :  { %v843_v24 = vpop.f32.mrf.mxu2  ;;  %v856_v25 = vpop.f32.mrf.mxu3 }
 0x187   :  { %v844_v26 = vadd.f32 %v843_v24, %v699_v53  ;;  %v857_v27 = vadd.f32 %v856_v25, %v751_v19 }
 0x189   :  { %v866_v28 = vadd.f32 %v862_v20, %v844_v26  ;;  %v867_v29 = vadd.f32 %v863_v22, %v857_v27 }
 0x18b   :  { %v868_v30 = vmax.f32 %v866_v28, 0.0  ;;  %v869_v31 = vmax.f32 %v867_v29, 0.0 }
 0x18d   :  { %v870_v63 = vpack.c.bf16 %v868_v30, %v868_v30  ;;  %v871_v32 = vpack.c.bf16 %v869_v31, %v869_v31 }
 0x18e   :  { %v845_v33 = vpop.f32.mrf.mxu2  ;;  %v858_v34 = vpop.f32.mrf.mxu3 }
 0x18f   :  { %1012 = vmatmul.bf16.vlgmr.msrb.gmra.mxu0 %v870_v63  ;;  %1025 = vmatmul.bf16.vlgmr.msrb.gmra.mxu1 %v871_v32 }
 0x20c   :  { %v1013_v39 = vpop.f32.mrf.mxu0  ;;  %v1026_v40 = vpop.f32.mrf.mxu1 }
 0x20d   :  { %v1014_v41 = vadd.f32 %v1722_v38, %v1013_v39 }
 0x20f   :  { %v1027_v42 = vadd.f32 %v1026_v40, %v1014_v41 }
 0x211   :  { %v1030_v43 = vmax.f32 %v1027_v42, 0.0 }
 0x213   :  { %v1031_v44 = vpack.c.bf16 %v1030_v43, %v1030_v43 }
 0x214   :  { %v1015_v45 = vpop.f32.mrf.mxu0  ;;  %v1028_v46 = vpop.f32.mrf.mxu1 }
 0x215   :  { %1108 = vmatmul.bf16.vlgmr.msrb.gmra.mxu2 %v1031_v44 }
 0x298   :  { %v1109_v48 = vpop.f32.mrf.mxu2 }
 0x299   :  { %v1110_v49 = vadd.f32 %v1723_v47, %v1109_v48 }
 0x29b   :  { %1114 = vst.msk [vmem:[%s2457_s13] sm:$0x3] %vm1113_vm0, %v1110_v49 }
 0x2a0   :  { %v1111_v50 = vpop.f32.mrf.mxu2 }

</bundles_post_ra>
